<compile_context>
chip_gen: v7x
topology: tpu7x:2x2x1
jax: 0.10.0
libtpu: 0.0.40
codegen_flags: <defaults>
</compile_context>

<pallas_src>
import functools
import math

import jax
import jax.numpy as jnp
from jax.experimental import pallas as pl
from jax.experimental.pallas import tpu as pltpu

LANE = 128
SUBLANE = 8


def _round_up(v, m):
    return ((v + m - 1) // m) * m


def _device_kind():
    try:
        return jax.devices()[0].device_kind.lower()
    except Exception:
        return ""


def _is_v5e(kind):
    return ("v5e" in kind) or ("v5 lite" in kind) or ("v5litepod" in kind)


def _default_tm():
    return 1024 if _is_v5e(_device_kind()) else 2048


def _default_epilogue_dtype(compute_dtype):
    # f32 compute -> f32 epilogue (exactness path).  v5e has no bf16 VALU, so
    # keep its epilogue in f32; v6e/v7x run the bias-add + ReLU in bf16.
    if jnp.dtype(compute_dtype) == jnp.dtype(jnp.float32):
        return jnp.float32
    if _is_v5e(_device_kind()):
        return jnp.float32
    return compute_dtype


# ---------------------------------------------------------------------------
# Static structure helpers
# ---------------------------------------------------------------------------
def _compute_layer_flags(net_depth, skip_layer, output_enabled):
    """For each compute layer (hidden layers + optional output layer), True iff
    its input is the skip concat [x, inputs] (handled as a split matmul)."""
    flags = []
    for i in range(net_depth):
        prev = i - 1
        flags.append(bool(skip_layer is not None and prev > 0 and prev % skip_layer == 0))
    if output_enabled:
        prev = net_depth - 1
        flags.append(bool(skip_layer is not None and prev > 0 and prev % skip_layer == 0))
    return tuple(flags)


def _prepare_params(params, flags, net_width, out_pad, output_enabled,
                    compute_dtype, epilogue_dtype):
    """Split skip-layer weights, pad the output projection to a lane-dense
    width, cast matmul operands to compute_dtype and biases to epilogue_dtype."""
    kparams = []
    n = len(flags)
    for li, has_skip in enumerate(flags):
        w = params[2 * li]
        b = params[2 * li + 1]
        is_output = output_enabled and li == n - 1
        if is_output and out_pad > w.shape[1]:
            w = jnp.pad(w, ((0, 0), (0, out_pad - w.shape[1])))
            b = jnp.pad(b, ((0, 0), (0, out_pad - b.shape[1])))
        if has_skip:
            w_top, w_bot = w[:net_width], w[net_width:]
            kparams += [
                w_top.astype(compute_dtype),
                w_bot.astype(compute_dtype),
                b.astype(epilogue_dtype),
            ]
        else:
            kparams += [w.astype(compute_dtype), b.astype(epilogue_dtype)]
    return kparams


# ---------------------------------------------------------------------------
# Kernel
# ---------------------------------------------------------------------------
def mlp_kernel(x_ref, *refs, flags, output_enabled, final_concat,
               compute_dtype, epilogue_dtype):
    out_ref = refs[-1]
    prefs = refs[:-1]

    inputs_raw = x_ref[...]
    inputs_c = (inputs_raw if inputs_raw.dtype == jnp.dtype(compute_dtype)
                else inputs_raw.astype(compute_dtype))

    x = inputs_c  # layer 0 reuses the already-cast inputs
    idx = 0
    n_layers = len(flags)
    for li, has_skip in enumerate(flags):
        is_output = output_enabled and (li == n_layers - 1)
        x_c = x if x.dtype == jnp.dtype(compute_dtype) else x.astype(compute_dtype)
        if has_skip:
            # Split matmul instead of concatenating [x, inputs]:
            #   concat([x, inputs]) @ W == x @ W_top + inputs @ W_bottom
            w_top = prefs[idx][...]
            w_bot = prefs[idx + 1][...]
            b = prefs[idx + 2][...]
            idx += 3
            h = jnp.dot(x_c, w_top, preferred_element_type=jnp.float32)
            h = h + jnp.dot(inputs_c, w_bot, preferred_element_type=jnp.float32)
        else:
            w = prefs[idx][...]
            b = prefs[idx + 1][...]
            idx += 2
            h = jnp.dot(x_c, w, preferred_element_type=jnp.float32)
        # Epilogue: cast once, bias-add + ReLU in epilogue_dtype
        # (bf16 on v6e/v7x, f32 on v5e / exactness path).
        h = h.astype(epilogue_dtype) + b
        if not is_output:
            h = jnp.maximum(h, 0.0)  # hidden_activation = ReLU
        x = h

    if final_concat:
        # output_enabled=False and the last hidden layer triggered the skip:
        # the module's output *is* the concat.
        x = jnp.concatenate(
            [x.astype(out_ref.dtype), inputs_raw.astype(out_ref.dtype)], axis=-1)

    # Lane-dense store: zero-pad remaining columns if the logical width is
    # narrower than the padded output block.
    width = x.shape[-1]
    out_w = out_ref.shape[-1]
    if width < out_w:
        x = jnp.concatenate(
            [x.astype(out_ref.dtype),
             jnp.zeros((x.shape[0], out_w - width), out_ref.dtype)],
            axis=-1,
        )
    out_ref[...] = x.astype(out_ref.dtype)


# ---------------------------------------------------------------------------
# Parameter construction (matches the PyTorch module's shapes / init style)
# ---------------------------------------------------------------------------
def xavier_uniform(key, fan_in, fan_out, dtype=jnp.float32):
    bound = math.sqrt(6.0 / (fan_in + fan_out))
    return jax.random.uniform(
        key, (fan_in, fan_out), dtype=dtype, minval=-bound, maxval=bound
    )


def make_mlp_params(key, input_dim, output_dim, net_depth=8, net_width=256,
                    skip_layer=4, output_enabled=True):
    params = []
    in_features = input_dim
    keys = jax.random.split(key, net_depth + 1)
    for i in range(net_depth):
        w = xavier_uniform(keys[i], in_features, net_width)
        b = jnp.zeros((1, net_width), jnp.float32)  # bias_init = zeros
        params.extend([w, b])
        if skip_layer is not None and i % skip_layer == 0 and i > 0:
            in_features = net_width + input_dim
        else:
            in_features = net_width
    if output_enabled:
        w = xavier_uniform(keys[-1], in_features, output_dim)
        b = jnp.zeros((1, output_dim), jnp.float32)
        params.extend([w, b])
    return params


# ---------------------------------------------------------------------------
# Pallas wrapper
# ---------------------------------------------------------------------------
def mlp_forward_pallas(
    x,
    params,
    *,
    net_depth=8,
    net_width=256,
    skip_layer=4,
    output_enabled=True,
    tm=None,
    compute_dtype=jnp.bfloat16,
    epilogue_dtype=None,
):
    N, input_dim = x.shape
    if tm is None:
        tm = _default_tm()
    if epilogue_dtype is None:
        epilogue_dtype = _default_epilogue_dtype(compute_dtype)

    flags = _compute_layer_flags(net_depth, skip_layer, output_enabled)
    final_concat = (
        (not output_enabled)
        and skip_layer is not None
        and (net_depth - 1) > 0
        and (net_depth - 1) % skip_layer == 0
    )

    if output_enabled:
        out_dim = params[2 * net_depth].shape[1]
    else:
        out_dim = net_width + (input_dim if final_concat else 0)
    out_pad = _round_up(out_dim, LANE)  # lane-dense write-back on all paths

    # Batch tile: large by default (amortizes ~0.35us/step), but keep the grid
    # at >= 8 steps when the batch allows so v7x can shard over both TCs and
    # per-TC double-buffering stays effective.  No host-side row padding: the
    # grid uses cdiv and Pallas masks the partial last block.
    rows8 = _round_up(max(N, 1), SUBLANE)
    tm_eff = max(SUBLANE, min(tm, rows8))
    target_steps = 8
    if rows8 // tm_eff < target_steps and rows8 >= target_steps * SUBLANE:
        tm_eff = max(SUBLANE, ((rows8 // target_steps) // SUBLANE) * SUBLANE)
    grid_m = pl.cdiv(N, tm_eff)

    kparams = _prepare_params(
        params, flags, net_width, out_pad, output_enabled, compute_dtype, epilogue_dtype
    )

    kernel = functools.partial(
        mlp_kernel,
        flags=flags,
        output_enabled=output_enabled,
        final_concat=final_concat,
        compute_dtype=compute_dtype,
        epilogue_dtype=epilogue_dtype,
    )

    out_dtype = x.dtype
    out_itemsize = jnp.dtype(out_dtype).itemsize

    # Advisory cost estimate (unpadded output columns).
    n_layers = net_depth + (1 if output_enabled else 0)
    flops_per_row = sum(
        2 * params[2 * i].shape[0] * params[2 * i].shape[1] for i in range(n_layers)
    )
    param_bytes = sum(int(p.size) * p.dtype.itemsize for p in kparams)
    bytes_accessed = (
        int(N) * input_dim * x.dtype.itemsize
        + int(N) * int(out_pad) * out_itemsize
        + param_bytes
    )
    cost = pl.CostEstimate(
        flops=int(flops_per_row) * int(N),
        transcendentals=0,
        bytes_accessed=int(bytes_accessed),
    )

    # Explicit VMEM budget so large tiles don't trip the default scoped limit
    # (16 MiB on v5e); clamped to stay well inside v7x's 64 MiB physical VMEM.
    io_bytes = (
        2 * tm_eff * input_dim * x.dtype.itemsize
        + 2 * tm_eff * out_pad * out_itemsize
    )
    act_bytes = 4 * tm_eff * max(net_width, out_pad) * 4  # a few live f32 tiles
    vmem_limit = int(
        min(max(2 * (param_bytes + io_bytes + act_bytes), 32 * 1024 * 1024),
            48 * 1024 * 1024)
    )

    def _build(param_pipeline_mode):
        if param_pipeline_mode is None:
            param_specs = [pl.BlockSpec(p.shape, lambda i: (0, 0)) for p in kparams]
        else:
            # Constant index map -> single-buffer the weights/biases to save VMEM.
            param_specs = [
                pl.BlockSpec(p.shape, lambda i: (0, 0), pipeline_mode=param_pipeline_mode)
                for p in kparams
            ]
        return pl.pallas_call(
            kernel,
            out_shape=jax.ShapeDtypeStruct((N, out_pad), out_dtype),
            grid_spec=pltpu.PrefetchScalarGridSpec(
                num_scalar_prefetch=0,
                grid=(grid_m,),
                in_specs=[pl.BlockSpec((tm_eff, input_dim), lambda i: (i, 0))]
                + param_specs,
                out_specs=pl.BlockSpec((tm_eff, out_pad), lambda i: (i, 0)),
            ),
            compiler_params=pltpu.CompilerParams(
                dimension_semantics=("parallel",),  # v7x: shard batch over 2 TCs
                vmem_limit_bytes=vmem_limit,
            ),
            cost_estimate=cost,
        )

    try:
        out = _build(pl.Buffered(1))(x, *kparams)
    except Exception:
        # Fallback if this Pallas build rejects single-buffered specs.
        out = _build(None)(x, *kparams)

    return out[:, :out_dim]


# ---------------------------------------------------------------------------
# Pure-JAX reference (matches the PyTorch forward semantics)
# ---------------------------------------------------------------------------
def mlp_forward_ref(x, params, *, net_depth=8, skip_layer=4, output_enabled=True):
    inputs = x
    for i in range(net_depth):
        w, b = params[2 * i], params[2 * i + 1]
        x = x @ w + b
        x = jnp.maximum(x, 0.0)
        if skip_layer is not None and i % skip_layer == 0 and i > 0:
            x = jnp.concatenate([x, inputs], axis=-1)
    if output_enabled:
        w, b = params[2 * net_depth], params[2 * net_depth + 1]
        x = x @ w + b
    return x


if __name__ == "__main__":
    # Small but representative configuration.  The batch is intentionally NOT
    # a multiple of the tile so the partial-last-block path is exercised, and
    # the grid heuristic produces multiple steps.
    batch = 1000
    input_dim = 16
    output_dim = 8
    net_depth = 8
    net_width = 128
    skip_layer = 4

    key = jax.random.PRNGKey(0)
    kx, kp = jax.random.split(key)

    x = jax.random.normal(kx, (batch, input_dim), jnp.float32)
    params = make_mlp_params(
        kp,
        input_dim=input_dim,
        output_dim=output_dim,
        net_depth=net_depth,
        net_width=net_width,
        skip_layer=skip_layer,
        output_enabled=True,
    )

    ref = mlp_forward_ref(
        x, params, net_depth=net_depth, skip_layer=skip_layer, output_enabled=True
    )

    # 1) Exactness check: full-f32 compute + f32 epilogue must match tightly.
    out_f32 = mlp_forward_pallas(
        x,
        params,
        net_depth=net_depth,
        net_width=net_width,
        skip_layer=skip_layer,
        output_enabled=True,
        compute_dtype=jnp.float32,
    )
    out_f32 = jax.block_until_ready(out_f32)
    assert out_f32.shape == (batch, output_dim)
    assert jnp.allclose(out_f32, ref, atol=1e-5, rtol=1e-5), "f32 mismatch vs reference"

    # 2) Performance path: bf16 MXU operands, f32 accumulation, bf16 epilogue
    #    on v6e/v7x (f32 epilogue auto-selected on v5e).
    out_bf16 = mlp_forward_pallas(
        x,
        params,
        net_depth=net_depth,
        net_width=net_width,
        skip_layer=skip_layer,
        output_enabled=True,
        compute_dtype=jnp.bfloat16,
    )
    out_bf16 = jax.block_until_ready(out_bf16)
    assert out_bf16.shape == (batch, output_dim)
    assert jnp.allclose(out_bf16, ref, atol=4e-1, rtol=2e-1), "bf16 path diverged"

    print("KERNEL_OK")
</pallas_src>

<mosaic_0001>
module attributes {stable_mosaic.version = 11 : i64} {
  func.func @mlp_kernel(%arg0: i32, %arg1: memref<120x16xf32, #tpu.memory_space<vmem>>, %arg2: memref<16x128xf32, #tpu.memory_space<vmem>>, %arg3: memref<1x128xf32, #tpu.memory_space<vmem>>, %arg4: memref<128x128xf32, #tpu.memory_space<vmem>>, %arg5: memref<1x128xf32, #tpu.memory_space<vmem>>, %arg6: memref<128x128xf32, #tpu.memory_space<vmem>>, %arg7: memref<1x128xf32, #tpu.memory_space<vmem>>, %arg8: memref<128x128xf32, #tpu.memory_space<vmem>>, %arg9: memref<1x128xf32, #tpu.memory_space<vmem>>, %arg10: memref<128x128xf32, #tpu.memory_space<vmem>>, %arg11: memref<1x128xf32, #tpu.memory_space<vmem>>, %arg12: memref<128x128xf32, #tpu.memory_space<vmem>>, %arg13: memref<16x128xf32, #tpu.memory_space<vmem>>, %arg14: memref<1x128xf32, #tpu.memory_space<vmem>>, %arg15: memref<128x128xf32, #tpu.memory_space<vmem>>, %arg16: memref<1x128xf32, #tpu.memory_space<vmem>>, %arg17: memref<128x128xf32, #tpu.memory_space<vmem>>, %arg18: memref<1x128xf32, #tpu.memory_space<vmem>>, %arg19: memref<128x128xf32, #tpu.memory_space<vmem>>, %arg20: memref<1x128xf32, #tpu.memory_space<vmem>>, %arg21: memref<120x128xf32, #tpu.memory_space<vmem>>) attributes {dimension_semantics = [#tpu.dimension_semantics<parallel>], iteration_bounds = array<i64: 9>, scalar_prefetch = 0 : i64, scratch_operands = 0 : i64, tpu.core_type = #tpu.core_type<tc>, window_params = [{transform_indices = @transform_0, window_bounds = array<i64: 120, 16>}, {pipeline_mode = #tpu.pipeline_mode<synchronous>, transform_indices = @transform_1, window_bounds = array<i64: 16, 128>}, {pipeline_mode = #tpu.pipeline_mode<synchronous>, transform_indices = @transform_2, window_bounds = array<i64: 1, 128>}, {pipeline_mode = #tpu.pipeline_mode<synchronous>, transform_indices = @transform_3, window_bounds = array<i64: 128, 128>}, {pipeline_mode = #tpu.pipeline_mode<synchronous>, transform_indices = @transform_4, window_bounds = array<i64: 1, 128>}, {pipeline_mode = #tpu.pipeline_mode<synchronous>, transform_indices = @transform_5, window_bounds = array<i64: 128, 128>}, {pipeline_mode = #tpu.pipeline_mode<synchronous>, transform_indices = @transform_6, window_bounds = array<i64: 1, 128>}, {pipeline_mode = #tpu.pipeline_mode<synchronous>, transform_indices = @transform_7, window_bounds = array<i64: 128, 128>}, {pipeline_mode = #tpu.pipeline_mode<synchronous>, transform_indices = @transform_8, window_bounds = array<i64: 1, 128>}, {pipeline_mode = #tpu.pipeline_mode<synchronous>, transform_indices = @transform_9, window_bounds = array<i64: 128, 128>}, {pipeline_mode = #tpu.pipeline_mode<synchronous>, transform_indices = @transform_10, window_bounds = array<i64: 1, 128>}, {pipeline_mode = #tpu.pipeline_mode<synchronous>, transform_indices = @transform_11, window_bounds = array<i64: 128, 128>}, {pipeline_mode = #tpu.pipeline_mode<synchronous>, transform_indices = @transform_12, window_bounds = array<i64: 16, 128>}, {pipeline_mode = #tpu.pipeline_mode<synchronous>, transform_indices = @transform_13, window_bounds = array<i64: 1, 128>}, {pipeline_mode = #tpu.pipeline_mode<synchronous>, transform_indices = @transform_14, window_bounds = array<i64: 128, 128>}, {pipeline_mode = #tpu.pipeline_mode<synchronous>, transform_indices = @transform_15, window_bounds = array<i64: 1, 128>}, {pipeline_mode = #tpu.pipeline_mode<synchronous>, transform_indices = @transform_16, window_bounds = array<i64: 128, 128>}, {pipeline_mode = #tpu.pipeline_mode<synchronous>, transform_indices = @transform_17, window_bounds = array<i64: 1, 128>}, {pipeline_mode = #tpu.pipeline_mode<synchronous>, transform_indices = @transform_18, window_bounds = array<i64: 128, 128>}, {pipeline_mode = #tpu.pipeline_mode<synchronous>, transform_indices = @transform_19, window_bounds = array<i64: 1, 128>}, {transform_indices = @transform_20, window_bounds = array<i64: 120, 128>}]} {
    %c0 = arith.constant 0 : index
    %c0_0 = arith.constant 0 : index
    %0 = vector.load %arg1[%c0, %c0_0] : memref<120x16xf32, #tpu.memory_space<vmem>>, vector<120x16xf32>
    %c0_1 = arith.constant 0 : index
    %c0_2 = arith.constant 0 : index
    %1 = vector.load %arg2[%c0_1, %c0_2] : memref<16x128xf32, #tpu.memory_space<vmem>>, vector<16x128xf32>
    %c0_3 = arith.constant 0 : index
    %c0_4 = arith.constant 0 : index
    %2 = vector.load %arg3[%c0_3, %c0_4] : memref<1x128xf32, #tpu.memory_space<vmem>>, vector<1x128xf32>
    %cst = arith.constant dense<0.000000e+00> : vector<120x128xf32>
    %3 = tpu.matmul %0, %1, %cst {dimension_numbers = #tpu.dot_dimension_numbers<[1], [0], [0], [1], [0, 0, 1, 1], [], []>} : vector<120x16xf32>, vector<16x128xf32>, vector<120x128xf32> -> vector<120x128xf32>
    %4 = vector.broadcast %2 : vector<1x128xf32> to vector<120x128xf32>
    %5 = arith.addf %3, %4 : vector<120x128xf32>
    %cst_5 = arith.constant 0.000000e+00 : f32
    %6 = vector.broadcast %cst_5 : f32 to vector<120x128xf32>
    %7 = arith.maximumf %5, %6 : vector<120x128xf32>
    %c0_6 = arith.constant 0 : index
    %c0_7 = arith.constant 0 : index
    %8 = vector.load %arg4[%c0_6, %c0_7] : memref<128x128xf32, #tpu.memory_space<vmem>>, vector<128x128xf32>
    %c0_8 = arith.constant 0 : index
    %c0_9 = arith.constant 0 : index
    %9 = vector.load %arg5[%c0_8, %c0_9] : memref<1x128xf32, #tpu.memory_space<vmem>>, vector<1x128xf32>
    %cst_10 = arith.constant dense<0.000000e+00> : vector<120x128xf32>
    %10 = tpu.matmul %7, %8, %cst_10 {dimension_numbers = #tpu.dot_dimension_numbers<[1], [0], [0], [1], [0, 0, 1, 1], [], []>} : vector<120x128xf32>, vector<128x128xf32>, vector<120x128xf32> -> vector<120x128xf32>
    %11 = vector.broadcast %9 : vector<1x128xf32> to vector<120x128xf32>
    %12 = arith.addf %10, %11 : vector<120x128xf32>
    %cst_11 = arith.constant 0.000000e+00 : f32
    %13 = vector.broadcast %cst_11 : f32 to vector<120x128xf32>
    %14 = arith.maximumf %12, %13 : vector<120x128xf32>
    %c0_12 = arith.constant 0 : index
    %c0_13 = arith.constant 0 : index
    %15 = vector.load %arg6[%c0_12, %c0_13] : memref<128x128xf32, #tpu.memory_space<vmem>>, vector<128x128xf32>
    %c0_14 = arith.constant 0 : index
    %c0_15 = arith.constant 0 : index
    %16 = vector.load %arg7[%c0_14, %c0_15] : memref<1x128xf32, #tpu.memory_space<vmem>>, vector<1x128xf32>
    %cst_16 = arith.constant dense<0.000000e+00> : vector<120x128xf32>
    %17 = tpu.matmul %14, %15, %cst_16 {dimension_numbers = #tpu.dot_dimension_numbers<[1], [0], [0], [1], [0, 0, 1, 1], [], []>} : vector<120x128xf32>, vector<128x128xf32>, vector<120x128xf32> -> vector<120x128xf32>
    %18 = vector.broadcast %16 : vector<1x128xf32> to vector<120x128xf32>
    %19 = arith.addf %17, %18 : vector<120x128xf32>
    %cst_17 = arith.constant 0.000000e+00 : f32
    %20 = vector.broadcast %cst_17 : f32 to vector<120x128xf32>
    %21 = arith.maximumf %19, %20 : vector<120x128xf32>
    %c0_18 = arith.constant 0 : index
    %c0_19 = arith.constant 0 : index
    %22 = vector.load %arg8[%c0_18, %c0_19] : memref<128x128xf32, #tpu.memory_space<vmem>>, vector<128x128xf32>
    %c0_20 = arith.constant 0 : index
    %c0_21 = arith.constant 0 : index
    %23 = vector.load %arg9[%c0_20, %c0_21] : memref<1x128xf32, #tpu.memory_space<vmem>>, vector<1x128xf32>
    %cst_22 = arith.constant dense<0.000000e+00> : vector<120x128xf32>
    %24 = tpu.matmul %21, %22, %cst_22 {dimension_numbers = #tpu.dot_dimension_numbers<[1], [0], [0], [1], [0, 0, 1, 1], [], []>} : vector<120x128xf32>, vector<128x128xf32>, vector<120x128xf32> -> vector<120x128xf32>
    %25 = vector.broadcast %23 : vector<1x128xf32> to vector<120x128xf32>
    %26 = arith.addf %24, %25 : vector<120x128xf32>
    %cst_23 = arith.constant 0.000000e+00 : f32
    %27 = vector.broadcast %cst_23 : f32 to vector<120x128xf32>
    %28 = arith.maximumf %26, %27 : vector<120x128xf32>
    %c0_24 = arith.constant 0 : index
    %c0_25 = arith.constant 0 : index
    %29 = vector.load %arg10[%c0_24, %c0_25] : memref<128x128xf32, #tpu.memory_space<vmem>>, vector<128x128xf32>
    %c0_26 = arith.constant 0 : index
    %c0_27 = arith.constant 0 : index
    %30 = vector.load %arg11[%c0_26, %c0_27] : memref<1x128xf32, #tpu.memory_space<vmem>>, vector<1x128xf32>
    %cst_28 = arith.constant dense<0.000000e+00> : vector<120x128xf32>
    %31 = tpu.matmul %28, %29, %cst_28 {dimension_numbers = #tpu.dot_dimension_numbers<[1], [0], [0], [1], [0, 0, 1, 1], [], []>} : vector<120x128xf32>, vector<128x128xf32>, vector<120x128xf32> -> vector<120x128xf32>
    %32 = vector.broadcast %30 : vector<1x128xf32> to vector<120x128xf32>
    %33 = arith.addf %31, %32 : vector<120x128xf32>
    %cst_29 = arith.constant 0.000000e+00 : f32
    %34 = vector.broadcast %cst_29 : f32 to vector<120x128xf32>
    %35 = arith.maximumf %33, %34 : vector<120x128xf32>
    %c0_30 = arith.constant 0 : index
    %c0_31 = arith.constant 0 : index
    %36 = vector.load %arg12[%c0_30, %c0_31] : memref<128x128xf32, #tpu.memory_space<vmem>>, vector<128x128xf32>
    %c0_32 = arith.constant 0 : index
    %c0_33 = arith.constant 0 : index
    %37 = vector.load %arg13[%c0_32, %c0_33] : memref<16x128xf32, #tpu.memory_space<vmem>>, vector<16x128xf32>
    %c0_34 = arith.constant 0 : index
    %c0_35 = arith.constant 0 : index
    %38 = vector.load %arg14[%c0_34, %c0_35] : memref<1x128xf32, #tpu.memory_space<vmem>>, vector<1x128xf32>
    %cst_36 = arith.constant dense<0.000000e+00> : vector<120x128xf32>
    %39 = tpu.matmul %35, %36, %cst_36 {dimension_numbers = #tpu.dot_dimension_numbers<[1], [0], [0], [1], [0, 0, 1, 1], [], []>} : vector<120x128xf32>, vector<128x128xf32>, vector<120x128xf32> -> vector<120x128xf32>
    %cst_37 = arith.constant dense<0.000000e+00> : vector<120x128xf32>
    %40 = tpu.matmul %0, %37, %cst_37 {dimension_numbers = #tpu.dot_dimension_numbers<[1], [0], [0], [1], [0, 0, 1, 1], [], []>} : vector<120x16xf32>, vector<16x128xf32>, vector<120x128xf32> -> vector<120x128xf32>
    %41 = arith.addf %39, %40 : vector<120x128xf32>
    %42 = vector.broadcast %38 : vector<1x128xf32> to vector<120x128xf32>
    %43 = arith.addf %41, %42 : vector<120x128xf32>
    %cst_38 = arith.constant 0.000000e+00 : f32
    %44 = vector.broadcast %cst_38 : f32 to vector<120x128xf32>
    %45 = arith.maximumf %43, %44 : vector<120x128xf32>
    %c0_39 = arith.constant 0 : index
    %c0_40 = arith.constant 0 : index
    %46 = vector.load %arg15[%c0_39, %c0_40] : memref<128x128xf32, #tpu.memory_space<vmem>>, vector<128x128xf32>
    %c0_41 = arith.constant 0 : index
    %c0_42 = arith.constant 0 : index
    %47 = vector.load %arg16[%c0_41, %c0_42] : memref<1x128xf32, #tpu.memory_space<vmem>>, vector<1x128xf32>
    %cst_43 = arith.constant dense<0.000000e+00> : vector<120x128xf32>
    %48 = tpu.matmul %45, %46, %cst_43 {dimension_numbers = #tpu.dot_dimension_numbers<[1], [0], [0], [1], [0, 0, 1, 1], [], []>} : vector<120x128xf32>, vector<128x128xf32>, vector<120x128xf32> -> vector<120x128xf32>
    %49 = vector.broadcast %47 : vector<1x128xf32> to vector<120x128xf32>
    %50 = arith.addf %48, %49 : vector<120x128xf32>
    %cst_44 = arith.constant 0.000000e+00 : f32
    %51 = vector.broadcast %cst_44 : f32 to vector<120x128xf32>
    %52 = arith.maximumf %50, %51 : vector<120x128xf32>
    %c0_45 = arith.constant 0 : index
    %c0_46 = arith.constant 0 : index
    %53 = vector.load %arg17[%c0_45, %c0_46] : memref<128x128xf32, #tpu.memory_space<vmem>>, vector<128x128xf32>
    %c0_47 = arith.constant 0 : index
    %c0_48 = arith.constant 0 : index
    %54 = vector.load %arg18[%c0_47, %c0_48] : memref<1x128xf32, #tpu.memory_space<vmem>>, vector<1x128xf32>
    %cst_49 = arith.constant dense<0.000000e+00> : vector<120x128xf32>
    %55 = tpu.matmul %52, %53, %cst_49 {dimension_numbers = #tpu.dot_dimension_numbers<[1], [0], [0], [1], [0, 0, 1, 1], [], []>} : vector<120x128xf32>, vector<128x128xf32>, vector<120x128xf32> -> vector<120x128xf32>
    %56 = vector.broadcast %54 : vector<1x128xf32> to vector<120x128xf32>
    %57 = arith.addf %55, %56 : vector<120x128xf32>
    %cst_50 = arith.constant 0.000000e+00 : f32
    %58 = vector.broadcast %cst_50 : f32 to vector<120x128xf32>
    %59 = arith.maximumf %57, %58 : vector<120x128xf32>
    %c0_51 = arith.constant 0 : index
    %c0_52 = arith.constant 0 : index
    %60 = vector.load %arg19[%c0_51, %c0_52] : memref<128x128xf32, #tpu.memory_space<vmem>>, vector<128x128xf32>
    %c0_53 = arith.constant 0 : index
    %c0_54 = arith.constant 0 : index
    %61 = vector.load %arg20[%c0_53, %c0_54] : memref<1x128xf32, #tpu.memory_space<vmem>>, vector<1x128xf32>
    %cst_55 = arith.constant dense<0.000000e+00> : vector<120x128xf32>
    %62 = tpu.matmul %59, %60, %cst_55 {dimension_numbers = #tpu.dot_dimension_numbers<[1], [0], [0], [1], [0, 0, 1, 1], [], []>} : vector<120x128xf32>, vector<128x128xf32>, vector<120x128xf32> -> vector<120x128xf32>
    %63 = vector.broadcast %61 : vector<1x128xf32> to vector<120x128xf32>
    %64 = arith.addf %62, %63 : vector<120x128xf32>
    %c0_56 = arith.constant 0 : index
    %c0_57 = arith.constant 0 : index
    %65 = vector.load %arg21[%c0_56, %c0_57] : memref<120x128xf32, #tpu.memory_space<vmem>>, vector<120x128xf32>
    tpu.vector_store %arg21[%c0_56, %c0_57], %64 {strides = array<i32>} : memref<120x128xf32, #tpu.memory_space<vmem>>, vector<120x128xf32>,
    return
  }
  func.func @transform_0(%arg0: i32) -> (i32, i32) {
    %c0_i32 = arith.constant 0 : i32
    %c0_i32_0 = arith.constant 0 : i32
    return %arg0, %c0_i32 : i32, i32
  }
  func.func @transform_1(%arg0: i32) -> (i32, i32) {
    %c0_i32 = arith.constant 0 : i32
    %c0_i32_0 = arith.constant 0 : i32
    %c0_i32_1 = arith.constant 0 : i32
    return %c0_i32, %c0_i32_0 : i32, i32
  }
  func.func @transform_2(%arg0: i32) -> (i32, i32) {
    %c0_i32 = arith.constant 0 : i32
    %c0_i32_0 = arith.constant 0 : i32
    %c0_i32_1 = arith.constant 0 : i32
    return %c0_i32, %c0_i32_0 : i32, i32
  }
  func.func @transform_3(%arg0: i32) -> (i32, i32) {
    %c0_i32 = arith.constant 0 : i32
    %c0_i32_0 = arith.constant 0 : i32
    %c0_i32_1 = arith.constant 0 : i32
    return %c0_i32, %c0_i32_0 : i32, i32
  }
  func.func @transform_4(%arg0: i32) -> (i32, i32) {
    %c0_i32 = arith.constant 0 : i32
    %c0_i32_0 = arith.constant 0 : i32
    %c0_i32_1 = arith.constant 0 : i32
    return %c0_i32, %c0_i32_0 : i32, i32
  }
  func.func @transform_5(%arg0: i32) -> (i32, i32) {
    %c0_i32 = arith.constant 0 : i32
    %c0_i32_0 = arith.constant 0 : i32
    %c0_i32_1 = arith.constant 0 : i32
    return %c0_i32, %c0_i32_0 : i32, i32
  }
  func.func @transform_6(%arg0: i32) -> (i32, i32) {
    %c0_i32 = arith.constant 0 : i32
    %c0_i32_0 = arith.constant 0 : i32
    %c0_i32_1 = arith.constant 0 : i32
    return %c0_i32, %c0_i32_0 : i32, i32
  }
  func.func @transform_7(%arg0: i32) -> (i32, i32) {
    %c0_i32 = arith.constant 0 : i32
    %c0_i32_0 = arith.constant 0 : i32
    %c0_i32_1 = arith.constant 0 : i32
    return %c0_i32, %c0_i32_0 : i32, i32
  }
  func.func @transform_8(%arg0: i32) -> (i32, i32) {
    %c0_i32 = arith.constant 0 : i32
    %c0_i32_0 = arith.constant 0 : i32
    %c0_i32_1 = arith.constant 0 : i32
    return %c0_i32, %c0_i32_0 : i32, i32
  }
  func.func @transform_9(%arg0: i32) -> (i32, i32) {
    %c0_i32 = arith.constant 0 : i32
    %c0_i32_0 = arith.constant 0 : i32
    %c0_i32_1 = arith.constant 0 : i32
    return %c0_i32, %c0_i32_0 : i32, i32
  }
  func.func @transform_10(%arg0: i32) -> (i32, i32) {
    %c0_i32 = arith.constant 0 : i32
    %c0_i32_0 = arith.constant 0 : i32
    %c0_i32_1 = arith.constant 0 : i32
    return %c0_i32, %c0_i32_0 : i32, i32
  }
  func.func @transform_11(%arg0: i32) -> (i32, i32) {
    %c0_i32 = arith.constant 0 : i32
    %c0_i32_0 = arith.constant 0 : i32
    %c0_i32_1 = arith.constant 0 : i32
    return %c0_i32, %c0_i32_0 : i32, i32
  }
  func.func @transform_12(%arg0: i32) -> (i32, i32) {
    %c0_i32 = arith.constant 0 : i32
    %c0_i32_0 = arith.constant 0 : i32
    %c0_i32_1 = arith.constant 0 : i32
    return %c0_i32, %c0_i32_0 : i32, i32
  }
  func.func @transform_13(%arg0: i32) -> (i32, i32) {
    %c0_i32 = arith.constant 0 : i32
    %c0_i32_0 = arith.constant 0 : i32
    %c0_i32_1 = arith.constant 0 : i32
    return %c0_i32, %c0_i32_0 : i32, i32
  }
  func.func @transform_14(%arg0: i32) -> (i32, i32) {
    %c0_i32 = arith.constant 0 : i32
    %c0_i32_0 = arith.constant 0 : i32
    %c0_i32_1 = arith.constant 0 : i32
    return %c0_i32, %c0_i32_0 : i32, i32
  }
  func.func @transform_15(%arg0: i32) -> (i32, i32) {
    %c0_i32 = arith.constant 0 : i32
    %c0_i32_0 = arith.constant 0 : i32
    %c0_i32_1 = arith.constant 0 : i32
    return %c0_i32, %c0_i32_0 : i32, i32
  }
  func.func @transform_16(%arg0: i32) -> (i32, i32) {
    %c0_i32 = arith.constant 0 : i32
    %c0_i32_0 = arith.constant 0 : i32
    %c0_i32_1 = arith.constant 0 : i32
    return %c0_i32, %c0_i32_0 : i32, i32
  }
  func.func @transform_17(%arg0: i32) -> (i32, i32) {
    %c0_i32 = arith.constant 0 : i32
    %c0_i32_0 = arith.constant 0 : i32
    %c0_i32_1 = arith.constant 0 : i32
    return %c0_i32, %c0_i32_0 : i32, i32
  }
  func.func @transform_18(%arg0: i32) -> (i32, i32) {
    %c0_i32 = arith.constant 0 : i32
    %c0_i32_0 = arith.constant 0 : i32
    %c0_i32_1 = arith.constant 0 : i32
    return %c0_i32, %c0_i32_0 : i32, i32
  }
  func.func @transform_19(%arg0: i32) -> (i32, i32) {
    %c0_i32 = arith.constant 0 : i32
    %c0_i32_0 = arith.constant 0 : i32
    %c0_i32_1 = arith.constant 0 : i32
    return %c0_i32, %c0_i32_0 : i32, i32
  }
  func.func @transform_20(%arg0: i32) -> (i32, i32) {
    %c0_i32 = arith.constant 0 : i32
    %c0_i32_0 = arith.constant 0 : i32
    return %arg0, %c0_i32 : i32, i32
  }
}

module attributes {stable_mosaic.version = 11 : i64} {
  func.func @mlp_kernel(%arg0: i32, %arg1: memref<120x16xf32, #tpu.memory_space<vmem>>, %arg2: memref<16x128xf32, #tpu.memory_space<vmem>>, %arg3: memref<1x128xf32, #tpu.memory_space<vmem>>, %arg4: memref<128x128xf32, #tpu.memory_space<vmem>>, %arg5: memref<1x128xf32, #tpu.memory_space<vmem>>, %arg6: memref<128x128xf32, #tpu.memory_space<vmem>>, %arg7: memref<1x128xf32, #tpu.memory_space<vmem>>, %arg8: memref<128x128xf32, #tpu.memory_space<vmem>>, %arg9: memref<1x128xf32, #tpu.memory_space<vmem>>, %arg10: memref<128x128xf32, #tpu.memory_space<vmem>>, %arg11: memref<1x128xf32, #tpu.memory_space<vmem>>, %arg12: memref<128x128xf32, #tpu.memory_space<vmem>>, %arg13: memref<16x128xf32, #tpu.memory_space<vmem>>, %arg14: memref<1x128xf32, #tpu.memory_space<vmem>>, %arg15: memref<128x128xf32, #tpu.memory_space<vmem>>, %arg16: memref<1x128xf32, #tpu.memory_space<vmem>>, %arg17: memref<128x128xf32, #tpu.memory_space<vmem>>, %arg18: memref<1x128xf32, #tpu.memory_space<vmem>>, %arg19: memref<128x128xf32, #tpu.memory_space<vmem>>, %arg20: memref<1x128xf32, #tpu.memory_space<vmem>>, %arg21: memref<120x128xf32, #tpu.memory_space<vmem>>) attributes {dimension_semantics = [#tpu.dimension_semantics<parallel>], iteration_bounds = array<i64: 9>, scalar_prefetch = 0 : i64, scratch_operands = 0 : i64, tpu.core_type = #tpu.core_type<tc>, window_params = [{transform_indices = @transform_0, window_bounds = array<i64: 120, 16>}, {pipeline_mode = #tpu.pipeline_mode<synchronous>, transform_indices = @transform_1, window_bounds = array<i64: 16, 128>}, {pipeline_mode = #tpu.pipeline_mode<synchronous>, transform_indices = @transform_2, window_bounds = array<i64: 1, 128>}, {pipeline_mode = #tpu.pipeline_mode<synchronous>, transform_indices = @transform_3, window_bounds = array<i64: 128, 128>}, {pipeline_mode = #tpu.pipeline_mode<synchronous>, transform_indices = @transform_4, window_bounds = array<i64: 1, 128>}, {pipeline_mode = #tpu.pipeline_mode<synchronous>, transform_indices = @transform_5, window_bounds = array<i64: 128, 128>}, {pipeline_mode = #tpu.pipeline_mode<synchronous>, transform_indices = @transform_6, window_bounds = array<i64: 1, 128>}, {pipeline_mode = #tpu.pipeline_mode<synchronous>, transform_indices = @transform_7, window_bounds = array<i64: 128, 128>}, {pipeline_mode = #tpu.pipeline_mode<synchronous>, transform_indices = @transform_8, window_bounds = array<i64: 1, 128>}, {pipeline_mode = #tpu.pipeline_mode<synchronous>, transform_indices = @transform_9, window_bounds = array<i64: 128, 128>}, {pipeline_mode = #tpu.pipeline_mode<synchronous>, transform_indices = @transform_10, window_bounds = array<i64: 1, 128>}, {pipeline_mode = #tpu.pipeline_mode<synchronous>, transform_indices = @transform_11, window_bounds = array<i64: 128, 128>}, {pipeline_mode = #tpu.pipeline_mode<synchronous>, transform_indices = @transform_12, window_bounds = array<i64: 16, 128>}, {pipeline_mode = #tpu.pipeline_mode<synchronous>, transform_indices = @transform_13, window_bounds = array<i64: 1, 128>}, {pipeline_mode = #tpu.pipeline_mode<synchronous>, transform_indices = @transform_14, window_bounds = array<i64: 128, 128>}, {pipeline_mode = #tpu.pipeline_mode<synchronous>, transform_indices = @transform_15, window_bounds = array<i64: 1, 128>}, {pipeline_mode = #tpu.pipeline_mode<synchronous>, transform_indices = @transform_16, window_bounds = array<i64: 128, 128>}, {pipeline_mode = #tpu.pipeline_mode<synchronous>, transform_indices = @transform_17, window_bounds = array<i64: 1, 128>}, {pipeline_mode = #tpu.pipeline_mode<synchronous>, transform_indices = @transform_18, window_bounds = array<i64: 128, 128>}, {pipeline_mode = #tpu.pipeline_mode<synchronous>, transform_indices = @transform_19, window_bounds = array<i64: 1, 128>}, {transform_indices = @transform_20, window_bounds = array<i64: 120, 128>}]} {
    %c0 = arith.constant 0 : index
    %c0_0 = arith.constant 0 : index
    %0 = vector.load %arg1[%c0, %c0_0] : memref<120x16xf32, #tpu.memory_space<vmem>>, vector<120x16xf32>
    %c0_1 = arith.constant 0 : index
    %c0_2 = arith.constant 0 : index
    %1 = vector.load %arg2[%c0_1, %c0_2] : memref<16x128xf32, #tpu.memory_space<vmem>>, vector<16x128xf32>
    %c0_3 = arith.constant 0 : index
    %c0_4 = arith.constant 0 : index
    %2 = vector.load %arg3[%c0_3, %c0_4] : memref<1x128xf32, #tpu.memory_space<vmem>>, vector<1x128xf32>
    %cst = arith.constant dense<0.000000e+00> : vector<120x128xf32>
    %3 = tpu.matmul %0, %1, %cst {dimension_numbers = #tpu.dot_dimension_numbers<[1], [0], [0], [1], [0, 0, 1, 1], [], []>} : vector<120x16xf32>, vector<16x128xf32>, vector<120x128xf32> -> vector<120x128xf32>
    %4 = vector.broadcast %2 : vector<1x128xf32> to vector<120x128xf32>
    %5 = arith.addf %3, %4 : vector<120x128xf32>
    %cst_5 = arith.constant 0.000000e+00 : f32
    %6 = vector.broadcast %cst_5 : f32 to vector<120x128xf32>
    %7 = arith.maximumf %5, %6 : vector<120x128xf32>
    %c0_6 = arith.constant 0 : index
    %c0_7 = arith.constant 0 : index
    %8 = vector.load %arg4[%c0_6, %c0_7] : memref<128x128xf32, #tpu.memory_space<vmem>>, vector<128x128xf32>
    %c0_8 = arith.constant 0 : index
    %c0_9 = arith.constant 0 : index
    %9 = vector.load %arg5[%c0_8, %c0_9] : memref<1x128xf32, #tpu.memory_space<vmem>>, vector<1x128xf32>
    %cst_10 = arith.constant dense<0.000000e+00> : vector<120x128xf32>
    %10 = tpu.matmul %7, %8, %cst_10 {dimension_numbers = #tpu.dot_dimension_numbers<[1], [0], [0], [1], [0, 0, 1, 1], [], []>} : vector<120x128xf32>, vector<128x128xf32>, vector<120x128xf32> -> vector<120x128xf32>
    %11 = vector.broadcast %9 : vector<1x128xf32> to vector<120x128xf32>
    %12 = arith.addf %10, %11 : vector<120x128xf32>
    %cst_11 = arith.constant 0.000000e+00 : f32
    %13 = vector.broadcast %cst_11 : f32 to vector<120x128xf32>
    %14 = arith.maximumf %12, %13 : vector<120x128xf32>
    %c0_12 = arith.constant 0 : index
    %c0_13 = arith.constant 0 : index
    %15 = vector.load %arg6[%c0_12, %c0_13] : memref<128x128xf32, #tpu.memory_space<vmem>>, vector<128x128xf32>
    %c0_14 = arith.constant 0 : index
    %c0_15 = arith.constant 0 : index
    %16 = vector.load %arg7[%c0_14, %c0_15] : memref<1x128xf32, #tpu.memory_space<vmem>>, vector<1x128xf32>
    %cst_16 = arith.constant dense<0.000000e+00> : vector<120x128xf32>
    %17 = tpu.matmul %14, %15, %cst_16 {dimension_numbers = #tpu.dot_dimension_numbers<[1], [0], [0], [1], [0, 0, 1, 1], [], []>} : vector<120x128xf32>, vector<128x128xf32>, vector<120x128xf32> -> vector<120x128xf32>
    %18 = vector.broadcast %16 : vector<1x128xf32> to vector<120x128xf32>
    %19 = arith.addf %17, %18 : vector<120x128xf32>
    %cst_17 = arith.constant 0.000000e+00 : f32
    %20 = vector.broadcast %cst_17 : f32 to vector<120x128xf32>
    %21 = arith.maximumf %19, %20 : vector<120x128xf32>
    %c0_18 = arith.constant 0 : index
    %c0_19 = arith.constant 0 : index
    %22 = vector.load %arg8[%c0_18, %c0_19] : memref<128x128xf32, #tpu.memory_space<vmem>>, vector<128x128xf32>
    %c0_20 = arith.constant 0 : index
    %c0_21 = arith.constant 0 : index
    %23 = vector.load %arg9[%c0_20, %c0_21] : memref<1x128xf32, #tpu.memory_space<vmem>>, vector<1x128xf32>
    %cst_22 = arith.constant dense<0.000000e+00> : vector<120x128xf32>
    %24 = tpu.matmul %21, %22, %cst_22 {dimension_numbers = #tpu.dot_dimension_numbers<[1], [0], [0], [1], [0, 0, 1, 1], [], []>} : vector<120x128xf32>, vector<128x128xf32>, vector<120x128xf32> -> vector<120x128xf32>
    %25 = vector.broadcast %23 : vector<1x128xf32> to vector<120x128xf32>
    %26 = arith.addf %24, %25 : vector<120x128xf32>
    %cst_23 = arith.constant 0.000000e+00 : f32
    %27 = vector.broadcast %cst_23 : f32 to vector<120x128xf32>
    %28 = arith.maximumf %26, %27 : vector<120x128xf32>
    %c0_24 = arith.constant 0 : index
    %c0_25 = arith.constant 0 : index
    %29 = vector.load %arg10[%c0_24, %c0_25] : memref<128x128xf32, #tpu.memory_space<vmem>>, vector<128x128xf32>
    %c0_26 = arith.constant 0 : index
    %c0_27 = arith.constant 0 : index
    %30 = vector.load %arg11[%c0_26, %c0_27] : memref<1x128xf32, #tpu.memory_space<vmem>>, vector<1x128xf32>
    %cst_28 = arith.constant dense<0.000000e+00> : vector<120x128xf32>
    %31 = tpu.matmul %28, %29, %cst_28 {dimension_numbers = #tpu.dot_dimension_numbers<[1], [0], [0], [1], [0, 0, 1, 1], [], []>} : vector<120x128xf32>, vector<128x128xf32>, vector<120x128xf32> -> vector<120x128xf32>
    %32 = vector.broadcast %30 : vector<1x128xf32> to vector<120x128xf32>
    %33 = arith.addf %31, %32 : vector<120x128xf32>
    %cst_29 = arith.constant 0.000000e+00 : f32
    %34 = vector.broadcast %cst_29 : f32 to vector<120x128xf32>
    %35 = arith.maximumf %33, %34 : vector<120x128xf32>
    %c0_30 = arith.constant 0 : index
    %c0_31 = arith.constant 0 : index
    %36 = vector.load %arg12[%c0_30, %c0_31] : memref<128x128xf32, #tpu.memory_space<vmem>>, vector<128x128xf32>
    %c0_32 = arith.constant 0 : index
    %c0_33 = arith.constant 0 : index
    %37 = vector.load %arg13[%c0_32, %c0_33] : memref<16x128xf32, #tpu.memory_space<vmem>>, vector<16x128xf32>
    %c0_34 = arith.constant 0 : index
    %c0_35 = arith.constant 0 : index
    %38 = vector.load %arg14[%c0_34, %c0_35] : memref<1x128xf32, #tpu.memory_space<vmem>>, vector<1x128xf32>
    %cst_36 = arith.constant dense<0.000000e+00> : vector<120x128xf32>
    %39 = tpu.matmul %35, %36, %cst_36 {dimension_numbers = #tpu.dot_dimension_numbers<[1], [0], [0], [1], [0, 0, 1, 1], [], []>} : vector<120x128xf32>, vector<128x128xf32>, vector<120x128xf32> -> vector<120x128xf32>
    %cst_37 = arith.constant dense<0.000000e+00> : vector<120x128xf32>
    %40 = tpu.matmul %0, %37, %cst_37 {dimension_numbers = #tpu.dot_dimension_numbers<[1], [0], [0], [1], [0, 0, 1, 1], [], []>} : vector<120x16xf32>, vector<16x128xf32>, vector<120x128xf32> -> vector<120x128xf32>
    %41 = arith.addf %39, %40 : vector<120x128xf32>
    %42 = vector.broadcast %38 : vector<1x128xf32> to vector<120x128xf32>
    %43 = arith.addf %41, %42 : vector<120x128xf32>
    %cst_38 = arith.constant 0.000000e+00 : f32
    %44 = vector.broadcast %cst_38 : f32 to vector<120x128xf32>
    %45 = arith.maximumf %43, %44 : vector<120x128xf32>
    %c0_39 = arith.constant 0 : index
    %c0_40 = arith.constant 0 : index
    %46 = vector.load %arg15[%c0_39, %c0_40] : memref<128x128xf32, #tpu.memory_space<vmem>>, vector<128x128xf32>
    %c0_41 = arith.constant 0 : index
    %c0_42 = arith.constant 0 : index
    %47 = vector.load %arg16[%c0_41, %c0_42] : memref<1x128xf32, #tpu.memory_space<vmem>>, vector<1x128xf32>
    %cst_43 = arith.constant dense<0.000000e+00> : vector<120x128xf32>
    %48 = tpu.matmul %45, %46, %cst_43 {dimension_numbers = #tpu.dot_dimension_numbers<[1], [0], [0], [1], [0, 0, 1, 1], [], []>} : vector<120x128xf32>, vector<128x128xf32>, vector<120x128xf32> -> vector<120x128xf32>
    %49 = vector.broadcast %47 : vector<1x128xf32> to vector<120x128xf32>
    %50 = arith.addf %48, %49 : vector<120x128xf32>
    %cst_44 = arith.constant 0.000000e+00 : f32
    %51 = vector.broadcast %cst_44 : f32 to vector<120x128xf32>
    %52 = arith.maximumf %50, %51 : vector<120x128xf32>
    %c0_45 = arith.constant 0 : index
    %c0_46 = arith.constant 0 : index
    %53 = vector.load %arg17[%c0_45, %c0_46] : memref<128x128xf32, #tpu.memory_space<vmem>>, vector<128x128xf32>
    %c0_47 = arith.constant 0 : index
    %c0_48 = arith.constant 0 : index
    %54 = vector.load %arg18[%c0_47, %c0_48] : memref<1x128xf32, #tpu.memory_space<vmem>>, vector<1x128xf32>
    %cst_49 = arith.constant dense<0.000000e+00> : vector<120x128xf32>
    %55 = tpu.matmul %52, %53, %cst_49 {dimension_numbers = #tpu.dot_dimension_numbers<[1], [0], [0], [1], [0, 0, 1, 1], [], []>} : vector<120x128xf32>, vector<128x128xf32>, vector<120x128xf32> -> vector<120x128xf32>
    %56 = vector.broadcast %54 : vector<1x128xf32> to vector<120x128xf32>
    %57 = arith.addf %55, %56 : vector<120x128xf32>
    %cst_50 = arith.constant 0.000000e+00 : f32
    %58 = vector.broadcast %cst_50 : f32 to vector<120x128xf32>
    %59 = arith.maximumf %57, %58 : vector<120x128xf32>
    %c0_51 = arith.constant 0 : index
    %c0_52 = arith.constant 0 : index
    %60 = vector.load %arg19[%c0_51, %c0_52] : memref<128x128xf32, #tpu.memory_space<vmem>>, vector<128x128xf32>
    %c0_53 = arith.constant 0 : index
    %c0_54 = arith.constant 0 : index
    %61 = vector.load %arg20[%c0_53, %c0_54] : memref<1x128xf32, #tpu.memory_space<vmem>>, vector<1x128xf32>
    %cst_55 = arith.constant dense<0.000000e+00> : vector<120x128xf32>
    %62 = tpu.matmul %59, %60, %cst_55 {dimension_numbers = #tpu.dot_dimension_numbers<[1], [0], [0], [1], [0, 0, 1, 1], [], []>} : vector<120x128xf32>, vector<128x128xf32>, vector<120x128xf32> -> vector<120x128xf32>
    %63 = vector.broadcast %61 : vector<1x128xf32> to vector<120x128xf32>
    %64 = arith.addf %62, %63 : vector<120x128xf32>
    %c0_56 = arith.constant 0 : index
    %c0_57 = arith.constant 0 : index
    %65 = vector.load %arg21[%c0_56, %c0_57] : memref<120x128xf32, #tpu.memory_space<vmem>>, vector<120x128xf32>
    tpu.vector_store %arg21[%c0_56, %c0_57], %64 {strides = array<i32>} : memref<120x128xf32, #tpu.memory_space<vmem>>, vector<120x128xf32>,
    return
  }
  func.func @transform_0(%arg0: i32) -> (i32, i32) {
    %c0_i32 = arith.constant 0 : i32
    %c0_i32_0 = arith.constant 0 : i32
    return %arg0, %c0_i32 : i32, i32
  }
  func.func @transform_1(%arg0: i32) -> (i32, i32) {
    %c0_i32 = arith.constant 0 : i32
    %c0_i32_0 = arith.constant 0 : i32
    %c0_i32_1 = arith.constant 0 : i32
    return %c0_i32, %c0_i32_0 : i32, i32
  }
  func.func @transform_2(%arg0: i32) -> (i32, i32) {
    %c0_i32 = arith.constant 0 : i32
    %c0_i32_0 = arith.constant 0 : i32
    %c0_i32_1 = arith.constant 0 : i32
    return %c0_i32, %c0_i32_0 : i32, i32
  }
  func.func @transform_3(%arg0: i32) -> (i32, i32) {
    %c0_i32 = arith.constant 0 : i32
    %c0_i32_0 = arith.constant 0 : i32
    %c0_i32_1 = arith.constant 0 : i32
    return %c0_i32, %c0_i32_0 : i32, i32
  }
  func.func @transform_4(%arg0: i32) -> (i32, i32) {
    %c0_i32 = arith.constant 0 : i32
    %c0_i32_0 = arith.constant 0 : i32
    %c0_i32_1 = arith.constant 0 : i32
    return %c0_i32, %c0_i32_0 : i32, i32
  }
  func.func @transform_5(%arg0: i32) -> (i32, i32) {
    %c0_i32 = arith.constant 0 : i32
    %c0_i32_0 = arith.constant 0 : i32
    %c0_i32_1 = arith.constant 0 : i32
    return %c0_i32, %c0_i32_0 : i32, i32
  }
  func.func @transform_6(%arg0: i32) -> (i32, i32) {
    %c0_i32 = arith.constant 0 : i32
    %c0_i32_0 = arith.constant 0 : i32
    %c0_i32_1 = arith.constant 0 : i32
    return %c0_i32, %c0_i32_0 : i32, i32
  }
  func.func @transform_7(%arg0: i32) -> (i32, i32) {
    %c0_i32 = arith.constant 0 : i32
    %c0_i32_0 = arith.constant 0 : i32
    %c0_i32_1 = arith.constant 0 : i32
    return %c0_i32, %c0_i32_0 : i32, i32
  }
  func.func @transform_8(%arg0: i32) -> (i32, i32) {
    %c0_i32 = arith.constant 0 : i32
    %c0_i32_0 = arith.constant 0 : i32
    %c0_i32_1 = arith.constant 0 : i32
    return %c0_i32, %c0_i32_0 : i32, i32
  }
  func.func @transform_9(%arg0: i32) -> (i32, i32) {
    %c0_i32 = arith.constant 0 : i32
    %c0_i32_0 = arith.constant 0 : i32
    %c0_i32_1 = arith.constant 0 : i32
    return %c0_i32, %c0_i32_0 : i32, i32
  }
  func.func @transform_10(%arg0: i32) -> (i32, i32) {
    %c0_i32 = arith.constant 0 : i32
    %c0_i32_0 = arith.constant 0 : i32
    %c0_i32_1 = arith.constant 0 : i32
    return %c0_i32, %c0_i32_0 : i32, i32
  }
  func.func @transform_11(%arg0: i32) -> (i32, i32) {
    %c0_i32 = arith.constant 0 : i32
    %c0_i32_0 = arith.constant 0 : i32
    %c0_i32_1 = arith.constant 0 : i32
    return %c0_i32, %c0_i32_0 : i32, i32
  }
  func.func @transform_12(%arg0: i32) -> (i32, i32) {
    %c0_i32 = arith.constant 0 : i32
    %c0_i32_0 = arith.constant 0 : i32
    %c0_i32_1 = arith.constant 0 : i32
    return %c0_i32, %c0_i32_0 : i32, i32
  }
  func.func @transform_13(%arg0: i32) -> (i32, i32) {
    %c0_i32 = arith.constant 0 : i32
    %c0_i32_0 = arith.constant 0 : i32
    %c0_i32_1 = arith.constant 0 : i32
    return %c0_i32, %c0_i32_0 : i32, i32
  }
  func.func @transform_14(%arg0: i32) -> (i32, i32) {
    %c0_i32 = arith.constant 0 : i32
    %c0_i32_0 = arith.constant 0 : i32
    %c0_i32_1 = arith.constant 0 : i32
    return %c0_i32, %c0_i32_0 : i32, i32
  }
  func.func @transform_15(%arg0: i32) -> (i32, i32) {
    %c0_i32 = arith.constant 0 : i32
    %c0_i32_0 = arith.constant 0 : i32
    %c0_i32_1 = arith.constant 0 : i32
    return %c0_i32, %c0_i32_0 : i32, i32
  }
  func.func @transform_16(%arg0: i32) -> (i32, i32) {
    %c0_i32 = arith.constant 0 : i32
    %c0_i32_0 = arith.constant 0 : i32
    %c0_i32_1 = arith.constant 0 : i32
    return %c0_i32, %c0_i32_0 : i32, i32
  }
  func.func @transform_17(%arg0: i32) -> (i32, i32) {
    %c0_i32 = arith.constant 0 : i32
    %c0_i32_0 = arith.constant 0 : i32
    %c0_i32_1 = arith.constant 0 : i32
    return %c0_i32, %c0_i32_0 : i32, i32
  }
  func.func @transform_18(%arg0: i32) -> (i32, i32) {
    %c0_i32 = arith.constant 0 : i32
    %c0_i32_0 = arith.constant 0 : i32
    %c0_i32_1 = arith.constant 0 : i32
    return %c0_i32, %c0_i32_0 : i32, i32
  }
  func.func @transform_19(%arg0: i32) -> (i32, i32) {
    %c0_i32 = arith.constant 0 : i32
    %c0_i32_0 = arith.constant 0 : i32
    %c0_i32_1 = arith.constant 0 : i32
    return %c0_i32, %c0_i32_0 : i32, i32
  }
  func.func @transform_20(%arg0: i32) -> (i32, i32) {
    %c0_i32 = arith.constant 0 : i32
    %c0_i32_0 = arith.constant 0 : i32
    return %arg0, %c0_i32 : i32, i32
  }
}

</mosaic_0001>

<bundles_post_ra>
// kernel: tpu_custom_call.1
= control target key start
LH: loop header
LB: loop body
LE: loop exit
PB: predicated region body
PF: predicated region fallthrough
CT: control target
= control target key end

     0   :  { %s5248_s0 = inlined_call_operand.vmem [shape: f32[1000,16], index: 0, kind: input, shape index: {}]   ;;  %s5249_s1 = inlined_call_operand.vmem [shape: f32[16,128], index: 1, kind: input, shape index: {}]   ;;  %s5250_s2 = inlined_call_operand.vmem [shape: f32[1,128], index: 2, kind: input, shape index: {}]   ;;  %s5251_s3 = inlined_call_operand.vmem [shape: f32[128,128], index: 3, kind: input, shape index: {}]   ;;  %s5252_s4 = inlined_call_operand.vmem [shape: f32[1,128], index: 4, kind: input, shape index: {}]   ;;  %s5253_s5 = inlined_call_operand.vmem [shape: f32[128,128], index: 5, kind: input, shape index: {}]   ;;  %s5254_s6 = inlined_call_operand.vmem [shape: f32[1,128], index: 6, kind: input, shape index: {}]   ;;  %s5255_s7 = inlined_call_operand.vmem [shape: f32[128,128], index: 7, kind: input, shape index: {}]   ;;  %s5256_s8 = inlined_call_operand.vmem [shape: f32[1,128], index: 8, kind: input, shape index: {}]   ;;  %s5257_s9 = inlined_call_operand.vmem [shape: f32[128,128], index: 9, kind: input, shape index: {}]   ;;  %s5258_s10 = inlined_call_operand.vmem [shape: f32[1,128], index: 10, kind: input, shape index: {}]   ;;  %s5259_s11 = inlined_call_operand.vmem [shape: f32[128,128], index: 11, kind: input, shape index: {}]   ;;  %s5260_s12 = inlined_call_operand.vmem [shape: f32[16,128], index: 12, kind: input, shape index: {}]   ;;  %s5261_s13 = inlined_call_operand.vmem [shape: f32[1,128], index: 13, kind: input, shape index: {}]   ;;  %s5262_s14 = inlined_call_operand.vmem [shape: f32[128,128], index: 14, kind: input, shape index: {}]   ;;  %s5263_s15 = inlined_call_operand.vmem [shape: f32[1,128], index: 15, kind: input, shape index: {}]   ;;  %s5264_s16 = inlined_call_operand.vmem [shape: f32[128,128], index: 16, kind: input, shape index: {}]   ;;  %s5265_s17 = inlined_call_operand.vmem [shape: f32[1,128], index: 17, kind: input, shape index: {}]   ;;  %s5266_s18 = inlined_call_operand.vmem [shape: f32[128,128], index: 18, kind: input, shape index: {}]   ;;  %s5267_s19 = inlined_call_operand.vmem [shape: f32[1,128], index: 19, kind: input, shape index: {}]   ;;  %s5268_s20 = inlined_call_operand.hbm [shape: f32[1000,128], index: 20, kind: output, shape index: {}]  }
   0x1   :  { %5278 = sst [smem:[#allocation11_spill]] %s5248_s0 }
   0x2   :  { %5279 = sst [smem:[#allocation12_spill]] %s5249_s1 }
   0x3   :  { %5280 = sst [smem:[#allocation13_spill]] %s5250_s2 }
   0x4   :  { %5281 = sst [smem:[#allocation14_spill]] %s5251_s3 }
   0x5   :  { %5282 = sst [smem:[#allocation15_spill]] %s5252_s4 }
   0x6   :  { %25 = vsyncpa [#allocation3], 0 }
   0x7   :  { %27 = vsyncpa [#allocation3 + $0x1], 0  ;;  %s4024_s1 = smov 0   ;;  %s4026_s22 = smov 0  }
   0x8   :  { %s4028_s23 = smov 0   ;;  %s4030_s24 = smov 0  }
   0x9 LB: > { %5283 = sst [smem:[#allocation5_spill]] %s3899_s1  ;;  %s4045_s2 = sadd.s32 4294967295, %s3911_s24   ;;  %s3911_s24 = sphi %s4030_s24, %s5299_s24   ;;  %s3907_s23 = sphi %s4028_s23, %s5301_s23   ;;  %s3903_s22 = sphi %s4026_s22, %s5303_s22   ;;  %s3899_s1 = sphi %s4024_s1, %s5302_s1  }
   0xa   : > { %5284 = sst [smem:[#allocation6_spill]] %s3907_s23  ;;  %s2543_s25 = sadd.s32 4294967294, %s3911_s24  }
   0xb   : > { %5285 = sst [smem:[#allocation7_spill]] %s3911_s24  ;;  %s4049_s3 = sadd.s32 1, %s3911_s24  }
   0xc   : > { %5286 = sst [smem:[#allocation8_spill]] %s4049_s3  ;;  %s465_s26 = sadd.s32 1, %s3907_s23 }
   0xd   : > { %s462_s27 = ssub.s32 %s3911_s24, %s4049_s3  ;;  %p475_p0 = scmp.ne.s32.totalorder %s3907_s23, %s3903_s22 }
   0xe   : > { %p463_p1 = scmp.eq.s32.totalorder %s462_s27, 0  ;;  %p476_p2 = scmp.eq.s32.totalorder %s4045_s2, 8 }
   0xf   : > { %p481_p3 = scmp.ne.s32.totalorder %s3903_s22, %s3899_s1  ;;  %p482_p4 = scmp.eq.s32.totalorder %s2543_s25, 8 }
  0x10   : > { %s4060_s28 = scalar_select %p463_p1, %s3907_s23, %s465_s26  }
  0x11   : > { %p4062_p5 = por %p476_p2, %p475_p0  ;;  %p4066_p6 = por %p482_p4, %p481_p3 }
  0x12   : > { %5287 = sst [smem:[#allocation9_spill]] %s4060_s28  ;;  %p2546_p7 = scmp.ge.s32.totalorder %s3911_s24, 1 }
  0x13   : > { %s5289_s29 = scalar_select %p4066_p6, 1, 0 }
  0x14   : > { %p574_p8 = scmp.lt.s32.totalorder %s3911_s24, 10 }
  0x15   : > { %5290 = sst [smem:[#allocation10_spill]] %s5289_s29 }
  0x16   : > { %p575_p9 = pnand %p2546_p7, %p574_p8 }
  0x17   : > { %s5291_s21 = sld [smem:[#allocation12_spill]] (!%p575_p9)  ;;  %s4079_s27 = smul.u32 (!%p575_p9), 15, %s4045_s2  ;;  %v3913_v2 = vmov (!%p575_p9), 0.0|0.0   ;;  %vm3914_vm0 = vmmov (!%p575_p9), 0   ;;  %v3915_v4 = vmov (!%p575_p9), 0.0   ;;  %vm679_vm1 = vcmask (!%p575_p9), 130048  }
  0x18   : > { %578 = sbr.rel (%p575_p9) target bundleno = 2065 (0x811), region = 100  ;;  %3591 = vmatprep.subr.bf16.mxu0 (!%p575_p9), %v3913_v2  ;;  %2881 = vmatprep.mubr.msk.f32.mxu0 (!%p575_p9), %vm3914_vm0, %v3915_v4  ;;  %s5292_s28 = sld [smem:[#allocation14_spill]] (!%p575_p9)  ;;  %v1058_v44 = vld [vmem:[%s5253_s5] sm:$0xff] (!%p575_p9)  ;;  %v1059_v45 = vld [vmem:[%s5253_s5 + $0x8] sm:$0xff] (!%p575_p9)  ;;  %v1060_v46 = vld [vmem:[%s5253_s5 + $0x10] sm:$0xff] (!%p575_p9) }
  0x19   : > { %p641_p10 = scmp.lt.s32.totalorder (!%p575_p9), %s4079_s27, 124  ;;  %3594 = vmatprep.subr.bf16.mxu1 (!%p575_p9), %v3913_v2  ;;  %2958 = vmatprep.mubr.msk.f32.mxu1 (!%p575_p9), %vm3914_vm0, %v3915_v4  ;;  %s5293_s1 = sld [smem:[#allocation11_spill]] (!%p575_p9)  ;;  %v3619_v47 = vpack.c.bf16 (!%p575_p9), %v1059_v45, %v1058_v44  ;;  %v1061_v48 = vld [vmem:[%s5253_s5 + $0x18] sm:$0xff] (!%p575_p9)  ;;  %v1062_v50 = vld [vmem:[%s5253_s5 + $0x20] sm:$0xff] (!%p575_p9)  ;;  %v1063_v51 = vld [vmem:[%s5253_s5 + $0x28] sm:$0xff] (!%p575_p9) }
  0x1a   : > { %v3622_v49 = vpack.c.bf16 (!%p575_p9), %v1061_v48, %v1060_v46  ;;  %v3625_v52 = vpack.c.bf16 (!%p575_p9), %v1063_v51, %v1062_v50  ;;  %v1064_v53 = vld [vmem:[%s5253_s5 + $0x30] sm:$0xff] (!%p575_p9)  ;;  %v1065_v54 = vld [vmem:[%s5253_s5 + $0x38] sm:$0xff] (!%p575_p9)  ;;  %v1066_v56 = vld [vmem:[%s5253_s5 + $0x40] sm:$0xff] (!%p575_p9)  ;;  %s5294_s25 = sld [smem:[#allocation13_spill]] (!%p575_p9)  ;;  %s633_s29 = sand.u32 (!%p575_p9), 1, %s3903_s22  }
  0x1b   : > { %v3628_v55 = vpack.c.bf16 (!%p575_p9), %v1065_v54, %v1064_v53  ;;  %v1067_v57 = vld [vmem:[%s5253_s5 + $0x48] sm:$0xff] (!%p575_p9)  ;;  %v1068_v59 = vld [vmem:[%s5253_s5 + $0x50] sm:$0xff] (!%p575_p9)  ;;  %v1069_v60 = vld [vmem:[%s5253_s5 + $0x58] sm:$0xff] (!%p575_p9)  ;;  %s3805_s26 = smul.u32 (!%p575_p9), 120, %s633_s29 }
  0x1c   : > { %v3631_v58 = vpack.c.bf16 (!%p575_p9), %v1067_v57, %v1066_v56  ;;  %v3634_v61 = vpack.c.bf16 (!%p575_p9), %v1069_v60, %v1068_v59  ;;  %v1070_v62 = vld [vmem:[%s5253_s5 + $0x60] sm:$0xff] (!%p575_p9)  ;;  %v1071_v63 = vld [vmem:[%s5253_s5 + $0x68] sm:$0xff] (!%p575_p9) }
  0x1d   : > { %v670_v0 = vld [vmem:[%s5291_s21] sm:$0xff] (!%p575_p9)  ;;  %v671_v1 = vld [vmem:[%s5291_s21 + $0x8] sm:$0xff] (!%p575_p9)  ;;  %s5187_s21 = scalar_lea.sflag (!%p575_p9), [#allocation3], %s633_s29 }
  0x1e   : > { %v3592_v3 = vpack.c.bf16 (!%p575_p9), %v671_v1, %v670_v0  ;;  %v880_v5 = vld [vmem:[%s5292_s28] sm:$0xff] (!%p575_p9)  ;;  %v881_v6 = vld [vmem:[%s5292_s28 + $0x8] sm:$0xff] (!%p575_p9)  ;;  %v882_v7 = vld [vmem:[%s5292_s28 + $0x10] sm:$0xff] (!%p575_p9)  ;;  %v3637_v0 = vpack.c.bf16 (!%p575_p9), %v1071_v63, %v1070_v62 }
  0x1f   : > { %v3595_v8 = vpack.c.bf16 %v881_v6, %v880_v5  ;;  %v883_v9 = vld [vmem:[%s5292_s28 + $0x18] sm:$0xff]  ;;  %s642_s30 = scalar_select %p641_p10, %s4079_s27, 124  ;;  %v884_v11 = vld [vmem:[%s5292_s28 + $0x20] sm:$0xff]  ;;  %v885_v12 = vld [vmem:[%s5292_s28 + $0x28] sm:$0xff] }
  0x20   : > { %3593 = vmatpush3.bf16.msra.mxu0 %v3592_v3  ;;  %v3598_v10 = vpack.c.bf16 %v883_v9, %v882_v7  ;;  %v3601_v14 = vpack.c.bf16 %v885_v12, %v884_v11  ;;  %v886_v15 = vld [vmem:[%s5292_s28 + $0x30] sm:$0xff]  ;;  %v887_v16 = vld [vmem:[%s5292_s28 + $0x38] sm:$0xff]  ;;  %v888_v19 = vld [vmem:[%s5292_s28 + $0x40] sm:$0xff]  ;;  %s2470_s0 = ssub.s32 (%p4062_p5), 125, %s4079_s27 }
  0x21   : > { %3596 = vmatpush3.bf16.msra.mxu1 %v3595_v8  ;;  %3618 = vmatprep.subr.bf16.mxu0 %v3913_v2  ;;  %s2547_s3 = sshll.u32 %s642_s30, 3  ;;  %v3604_v18 = vpack.c.bf16 %v887_v16, %v886_v15  ;;  %v889_v20 = vld [vmem:[%s5292_s28 + $0x48] sm:$0xff]  ;;  %v890_v23 = vld [vmem:[%s5292_s28 + $0x50] sm:$0xff]  ;;  %v891_v24 = vld [vmem:[%s5292_s28 + $0x58] sm:$0xff]  ;;  %s5295_s30 = sld [smem:[#allocation15_spill]] }
  0x22   : > { %3597 = vmatprep.subr.bf16.mxu1 %v3913_v2  ;;  %s4112_s24 = scalar_lea.vmem %s5293_s1, %s2547_s3  ;;  %v3607_v22 = vpack.c.bf16 %v889_v20, %v888_v19  ;;  %v3610_v26 = vpack.c.bf16 %v891_v24, %v890_v23  ;;  %v892_v27 = vld [vmem:[%s5292_s28 + $0x60] sm:$0xff]  ;;  %v893_v28 = vld [vmem:[%s5292_s28 + $0x68] sm:$0xff]  ;;  %v894_v41 = vld [vmem:[%s5292_s28 + $0x70] sm:$0xff]  ;;  %p2471_p11 = scmp.lt.s32.totalorder (%p4062_p5), %s2470_s0, 15 }
  0x23   : > { %v4115_v13 = vld [vmem:[%s4112_s24] sm:$0xff]  ;;  %v4129_v17 = vld [vmem:[%s4112_s24 + $0x8] sm:$0xff]  ;;  %v4143_v21 = vld [vmem:[%s4112_s24 + $0x10] sm:$0xff]  ;;  %v3613_v30 = vpack.c.bf16 %v893_v28, %v892_v27 }
  0x24   : > { %2882 = vmatmul.mubr.msk.f32.vlgmr.msra.gmra.mrb[0].mxu0 %vm679_vm1, %v4115_v13  ;;  %v4157_v25 = vld [vmem:[%s4112_s24 + $0x18] sm:$0xff]  ;;  %v4171_v29 = vld [vmem:[%s4112_s24 + $0x20] sm:$0xff]  ;;  %v4179_v31 = vld [vmem:[%s4112_s24 + $0x28] sm:$0xff] }
  0x25   : > { %3599 = vmatpush3.bf16.msra.mxu1 %v3598_v10  ;;  %2884 = vmatprep.mubr.msk.f32.mxu0 %vm3914_vm0, %v3915_v4  ;;  %v4187_v32 = vld [vmem:[%s4112_s24 + $0x30] sm:$0xff]  ;;  %v4194_v33 = vld [vmem:[%s4112_s24 + $0x38] sm:$0xff]  ;;  %v4201_v34 = vld [vmem:[%s4112_s24 + $0x40] sm:$0xff] }
  0x26   : > { %3600 = vmatprep.subr.bf16.mxu1 %v3913_v2  ;;  %v4208_v35 = vld [vmem:[%s4112_s24 + $0x48] sm:$0xff]  ;;  %v4215_v36 = vld [vmem:[%s4112_s24 + $0x50] sm:$0xff]  ;;  %v4222_v37 = vld [vmem:[%s4112_s24 + $0x58] sm:$0xff]  ;;  %3620 = vmatpush3.bf16.msra.mxu0 %v3619_v47 }
  0x27   : > { %v4229_v38 = vld [vmem:[%s4112_s24 + $0x60] sm:$0xff]  ;;  %v4236_v39 = vld [vmem:[%s4112_s24 + $0x68] sm:$0xff]  ;;  %v4243_v40 = vld [vmem:[%s4112_s24 + $0x70] sm:$0xff]  ;;  %3621 = vmatprep.subr.bf16.mxu0 %v3913_v2  ;;  %s5168_s24 = scalar_lea.vmem [#allocation2], %s3805_s26 }
  0x28   : > { %2885 = vmatmul.mubr.msk.f32.gmra.mrb[2].mxu0 %vm679_vm1, %v4129_v17  ;;  %v895_v42 = vld [vmem:[%s5292_s28 + $0x78] sm:$0xff]  ;;  %v1072_v1 = vld [vmem:[%s5253_s5 + $0x70] sm:$0xff]  ;;  %v4315_v6 = vld [vmem:[%s5294_s25] ss:$0 sm:$0xff] }
  0x29   : > { %3602 = vmatpush3.bf16.msra.mxu1 %v3601_v14  ;;  %2887 = vmatprep.mubr.msk.f32.mxu0 %vm3914_vm0, %v3915_v4  ;;  %v3616_v43 = vpack.c.bf16 %v895_v42, %v894_v41  ;;  %v1073_v3 = vld [vmem:[%s5253_s5 + $0x78] sm:$0xff] }
  0x2a   : > { %3603 = vmatprep.subr.bf16.mxu1 %v3913_v2  ;;  %3623 = vmatpush3.bf16.msra.mxu0 %v3622_v49  ;;  %v3640_v5 = vpack.c.bf16 %v1073_v3, %v1072_v1 }
  0x2b   : > { %3624 = vmatprep.subr.bf16.mxu0 %v3913_v2 }
  0x2c   : > { %2888 = vmatmul.mubr.msk.f32.gmra.mrb[4].mxu0 %vm679_vm1, %v4143_v21 }
  0x2d   : > { %3605 = vmatpush3.bf16.msra.mxu1 %v3604_v18  ;;  %2890 = vmatprep.mubr.msk.f32.mxu0 %vm3914_vm0, %v3915_v4 }
  0x2e   : > { %3606 = vmatprep.subr.bf16.mxu1 %v3913_v2  ;;  %3626 = vmatpush3.bf16.msra.mxu0 %v3625_v52 }
  0x2f   : > { %3627 = vmatprep.subr.bf16.mxu0 %v3913_v2 }
  0x30   : > { %2891 = vmatmul.mubr.msk.f32.gmra.mrb[6].mxu0 %vm679_vm1, %v4157_v25 }
  0x31   : > { %3608 = vmatpush3.bf16.msra.mxu1 %v3607_v22  ;;  %2893 = vmatprep.mubr.msk.f32.mxu0 %vm3914_vm0, %v3915_v4 }
  0x32   : > { %3609 = vmatprep.subr.bf16.mxu1 %v3913_v2  ;;  %3629 = vmatpush3.bf16.msra.mxu0 %v3628_v55 }
  0x33   : > { %3630 = vmatprep.subr.bf16.mxu0 %v3913_v2 }
  0x34   : > { %2894 = vmatmul.mubr.msk.f32.gmra.mrb[8].mxu0 %vm679_vm1, %v4171_v29 }
  0x35   : > { %3611 = vmatpush3.bf16.msra.mxu1 %v3610_v26  ;;  %2896 = vmatprep.mubr.msk.f32.mxu0 %vm3914_vm0, %v3915_v4 }
  0x36   : > { %3612 = vmatprep.subr.bf16.mxu1 %v3913_v2  ;;  %3632 = vmatpush3.bf16.msra.mxu0 %v3631_v58 }
  0x37   : > { %3633 = vmatprep.subr.bf16.mxu0 %v3913_v2 }
  0x38   : > { %2897 = vmatmul.mubr.msk.f32.gmra.mrb[10].mxu0 %vm679_vm1, %v4179_v31 }
  0x39   : > { %3614 = vmatpush3.bf16.msra.mxu1 %v3613_v30  ;;  %2899 = vmatprep.mubr.msk.f32.mxu0 %vm3914_vm0, %v3915_v4 }
  0x3a   : > { %3615 = vmatprep.subr.bf16.mxu1 %v3913_v2  ;;  %3635 = vmatpush3.bf16.msra.mxu0 %v3634_v61 }
  0x3b   : > { %3636 = vmatprep.subr.bf16.mxu0 %v3913_v2 }
  0x3c   : > { %2900 = vmatmul.mubr.msk.f32.gmra.mrb[12].mxu0 %vm679_vm1, %v4187_v32 }
  0x3d   : > { %2902 = vmatprep.mubr.msk.f32.mxu0 %vm3914_vm0, %v3915_v4  ;;  %3617 = vmatpush3.bf16.msra.mxu1 %v3616_v43 }
  0x3e   : > { %3642 = vmatprep.subr.bf16.mxu1 %v3913_v2  ;;  %3638 = vmatpush3.bf16.msra.mxu0 %v3637_v0 }
  0x3f   : > { %3639 = vmatprep.subr.bf16.mxu0 %v3913_v2 }
  0x40   : > { %2903 = vmatmul.mubr.msk.f32.gmra.mrb[14].mxu0 %vm679_vm1, %v4194_v33 }
  0x41   : > { %2905 = vmatprep.mubr.msk.f32.mxu0 %vm3914_vm0, %v3915_v4 }
  0x42   : > { %3641 = vmatpush3.bf16.msra.mxu0 %v3640_v5 }
  0x43   : > { %3666 = vmatprep.subr.bf16.mxu0 %v3913_v2 }
  0x44   : > { %2906 = vmatmul.mubr.msk.f32.gmra.mrb[16].mxu0 %vm679_vm1, %v4201_v34 }
  0x45   : > { %2908 = vmatprep.mubr.msk.f32.mxu0 %vm3914_vm0, %v3915_v4 }
  0x48   : > { %2909 = vmatmul.mubr.msk.f32.gmra.mrb[18].mxu0 %vm679_vm1, %v4208_v35 }
  0x49   : > { %2911 = vmatprep.mubr.msk.f32.mxu0 %vm3914_vm0, %v3915_v4 }
  0x4c   : > { %2912 = vmatmul.mubr.msk.f32.gmra.mrb[20].mxu0 %vm679_vm1, %v4215_v36 }
  0x4d   : > { %2914 = vmatprep.mubr.msk.f32.mxu0 %vm3914_vm0, %v3915_v4 }
  0x50   : > { %2915 = vmatmul.mubr.msk.f32.gmra.mrb[22].mxu0 %vm679_vm1, %v4222_v37 }
  0x51   : > { %2917 = vmatprep.mubr.msk.f32.mxu0 %vm3914_vm0, %v3915_v4 }
  0x54   : > { %2918 = vmatmul.mubr.msk.f32.gmra.mrb[24].mxu0 %vm679_vm1, %v4229_v38 }
  0x55   : > { %2920 = vmatprep.mubr.msk.f32.mxu0 %vm3914_vm0, %v3915_v4 }
  0x58   : > { %2921 = vmatmul.mubr.msk.f32.gmra.mrb[26].mxu0 %vm679_vm1, %v4236_v39 }
  0x59   : > { %2923 = vmatprep.mubr.msk.f32.mxu0 %vm3914_vm0, %v3915_v4 }
  0x5c   : > { %2924 = vmatmul.mubr.msk.f32.gmra.mrb[28].mxu0 %vm679_vm1, %v4243_v40 }
  0x5d   : > { %3035 = vmatprep.mubr.msk.f32.mxu0 %vm3914_vm0, %v3915_v4 }
  0xf7   : > { %v791_v7 = vpop.f32.mrb[0].mxu0 }
  0xf8   : > { %v792_v8 = vadd.f32 %v4315_v6, %v791_v7  ;;  %v2883_v9 = vpop.f32.mrb[1].mxu0 }
  0xfa   : > { %v865_v10 = vmax.f32 %v792_v8, 0.0 }
  0xfb   : > { %v796_v11 = vpop.f32.mrb[2].mxu0 }
  0xfc   : > { %v797_v12 = vadd.f32 %v4315_v6, %v796_v11  ;;  %v2886_v14 = vpop.f32.mrb[3].mxu0  ;;  %2959 = vmatmul.mubr.f32.vlgmr.msra.gmra.mrb[0].mxu1 %v865_v10 }
  0xfd   : > { %2961 = vmatprep.mubr.msk.f32.mxu1 %vm3914_vm0, %v3915_v4 }
  0xfe   : > { %v866_v15 = vmax.f32 %v797_v12, 0.0 }
  0xff   : > { %v801_v16 = vpop.f32.mrb[4].mxu0 }
 0x100   : > { %v802_v18 = vadd.f32 %v4315_v6, %v801_v16  ;;  %v2889_v19 = vpop.f32.mrb[5].mxu0  ;;  %2962 = vmatmul.mubr.f32.gmra.mrb[2].mxu1 %v866_v15 }
 0x101   : > { %2964 = vmatprep.mubr.msk.f32.mxu1 %vm3914_vm0, %v3915_v4 }
 0x102   : > { %v867_v20 = vmax.f32 %v802_v18, 0.0 }
 0x103   : > { %v806_v22 = vpop.f32.mrb[6].mxu0 }
 0x104   : > { %v807_v23 = vadd.f32 %v4315_v6, %v806_v22  ;;  %v2892_v24 = vpop.f32.mrb[7].mxu0  ;;  %2965 = vmatmul.mubr.f32.gmra.mrb[4].mxu1 %v867_v20 }
 0x105   : > { %2967 = vmatprep.mubr.msk.f32.mxu1 %vm3914_vm0, %v3915_v4  ;;  %v1236_v24 = vld [vmem:[%s5255_s7] sm:$0xff] }
 0x106   : > { %v868_v26 = vmax.f32 %v807_v23, 0.0 }
 0x107   : > { %v811_v27 = vpop.f32.mrb[8].mxu0 }
 0x108   : > { %v812_v28 = vadd.f32 %v4315_v6, %v811_v27  ;;  %v2895_v30 = vpop.f32.mrb[9].mxu0  ;;  %2968 = vmatmul.mubr.f32.gmra.mrb[6].mxu1 %v868_v26  ;;  %v1237_v26 = vld [vmem:[%s5255_s7 + $0x8] sm:$0xff] }
 0x109   : > { %2970 = vmatprep.mubr.msk.f32.mxu1 %vm3914_vm0, %v3915_v4  ;;  %v3643_v27 = vpack.c.bf16 %v1237_v26, %v1236_v24 }
 0x10a   : > { %v869_v41 = vmax.f32 %v812_v28, 0.0  ;;  %v1239_v28 = vld [vmem:[%s5255_s7 + $0x18] sm:$0xff] }
 0x10b   : > { %v816_v42 = vpop.f32.mrb[10].mxu0  ;;  %3644 = vmatpush3.bf16.msra.mxu1 %v3643_v27 }
 0x10c   : > { %v817_v43 = vadd.f32 %v4315_v6, %v816_v42  ;;  %v2898_v44 = vpop.f32.mrb[11].mxu0  ;;  %2971 = vmatmul.mubr.f32.gmra.mrb[8].mxu1 %v869_v41  ;;  %3645 = vmatprep.subr.bf16.mxu1 %v3913_v2  ;;  %v1240_v41 = vld [vmem:[%s5255_s7 + $0x20] sm:$0xff]  ;;  %v1241_v42 = vld [vmem:[%s5255_s7 + $0x28] sm:$0xff] }
 0x10d   : > { %2973 = vmatprep.mubr.msk.f32.mxu1 %vm3914_vm0, %v3915_v4  ;;  %v1242_v44 = vld [vmem:[%s5255_s7 + $0x30] sm:$0xff] }
 0x10e   : > { %v870_v45 = vmax.f32 %v817_v43, 0.0  ;;  %v3649_v43 = vpack.c.bf16 %v1241_v42, %v1240_v41 }
 0x10f   : > { %v821_v46 = vpop.f32.mrb[12].mxu0 }
 0x110   : > { %v822_v47 = vadd.f32 %v4315_v6, %v821_v46  ;;  %v2901_v48 = vpop.f32.mrb[13].mxu0  ;;  %2974 = vmatmul.mubr.f32.gmra.mrb[10].mxu1 %v870_v45  ;;  %v1243_v45 = vld [vmem:[%s5255_s7 + $0x38] sm:$0xff] }
 0x111   : > { %2976 = vmatprep.mubr.msk.f32.mxu1 %vm3914_vm0, %v3915_v4  ;;  %v3652_v46 = vpack.c.bf16 %v1243_v45, %v1242_v44  ;;  %v1245_v48 = vld [vmem:[%s5255_s7 + $0x48] sm:$0xff] }
 0x112   : > { %v871_v49 = vmax.f32 %v822_v47, 0.0  ;;  %v1244_v47 = vld [vmem:[%s5255_s7 + $0x40] sm:$0xff] }
 0x113   : > { %v826_v50 = vpop.f32.mrb[14].mxu0 }
 0x114   : > { %v827_v51 = vadd.f32 %v4315_v6, %v826_v50  ;;  %v2904_v52 = vpop.f32.mrb[15].mxu0  ;;  %2977 = vmatmul.mubr.f32.gmra.mrb[12].mxu1 %v871_v49  ;;  %v3655_v49 = vpack.c.bf16 %v1245_v48, %v1244_v47  ;;  %v1246_v50 = vld [vmem:[%s5255_s7 + $0x50] sm:$0xff] }
 0x115   : > { %2979 = vmatprep.mubr.msk.f32.mxu1 %vm3914_vm0, %v3915_v4 }
 0x116   : > { %v872_v53 = vmax.f32 %v827_v51, 0.0  ;;  %v1247_v51 = vld [vmem:[%s5255_s7 + $0x58] sm:$0xff] }
 0x117   : > { %v831_v54 = vpop.f32.mrb[16].mxu0  ;;  %v3658_v52 = vpack.c.bf16 %v1247_v51, %v1246_v50 }
 0x118   : > { %v832_v55 = vadd.f32 %v4315_v6, %v831_v54  ;;  %v2907_v56 = vpop.f32.mrb[17].mxu0  ;;  %2980 = vmatmul.mubr.f32.gmra.mrb[14].mxu1 %v872_v53  ;;  %v1248_v53 = vld [vmem:[%s5255_s7 + $0x60] sm:$0xff]  ;;  %v1249_v54 = vld [vmem:[%s5255_s7 + $0x68] sm:$0xff] }
 0x119   : > { %2982 = vmatprep.mubr.msk.f32.mxu1 %vm3914_vm0, %v3915_v4  ;;  %v1250_v56 = vld [vmem:[%s5255_s7 + $0x70] sm:$0xff] }
 0x11a   : > { %v873_v57 = vmax.f32 %v832_v55, 0.0  ;;  %v3661_v55 = vpack.c.bf16 %v1249_v54, %v1248_v53 }
 0x11b   : > { %v836_v58 = vpop.f32.mrb[18].mxu0 }
 0x11c   : > { %v837_v59 = vadd.f32 %v4315_v6, %v836_v58  ;;  %v2910_v60 = vpop.f32.mrb[19].mxu0  ;;  %2983 = vmatmul.mubr.f32.gmra.mrb[16].mxu1 %v873_v57  ;;  %v1251_v57 = vld [vmem:[%s5255_s7 + $0x78] sm:$0xff] }
 0x11d   : > { %2985 = vmatprep.mubr.msk.f32.mxu1 %vm3914_vm0, %v3915_v4  ;;  %v3664_v58 = vpack.c.bf16 %v1251_v57, %v1250_v56 }
 0x11e   : > { %v874_v61 = vmax.f32 %v837_v59, 0.0  ;;  %v4421_v59 = vld [vmem:[%s5295_s30] ss:$0 sm:$0xff] }
 0x11f   : > { %v841_v62 = vpop.f32.mrb[20].mxu0 }
 0x120   : > { %v842_v63 = vadd.f32 %v4315_v6, %v841_v62  ;;  %v2913_v0 = vpop.f32.mrb[21].mxu0  ;;  %2986 = vmatmul.mubr.f32.gmra.mrb[18].mxu1 %v874_v61 }
 0x121   : > { %2988 = vmatprep.mubr.msk.f32.mxu1 %vm3914_vm0, %v3915_v4 }
 0x122   : > { %v875_v1 = vmax.f32 %v842_v63, 0.0 }
 0x123   : > { %v846_v3 = vpop.f32.mrb[22].mxu0 }
 0x124   : > { %v847_v5 = vadd.f32 %v4315_v6, %v846_v3  ;;  %v2916_v7 = vpop.f32.mrb[23].mxu0  ;;  %2989 = vmatmul.mubr.f32.gmra.mrb[20].mxu1 %v875_v1 }
 0x125   : > { %2991 = vmatprep.mubr.msk.f32.mxu1 %vm3914_vm0, %v3915_v4 }
 0x126   : > { %v876_v8 = vmax.f32 %v847_v5, 0.0 }
 0x127   : > { %v851_v9 = vpop.f32.mrb[24].mxu0 }
 0x128   : > { %v852_v10 = vadd.f32 %v4315_v6, %v851_v9  ;;  %v2919_v11 = vpop.f32.mrb[25].mxu0  ;;  %2992 = vmatmul.mubr.f32.gmra.mrb[22].mxu1 %v876_v8 }
 0x129   : > { %2994 = vmatprep.mubr.msk.f32.mxu1 %vm3914_vm0, %v3915_v4 }
 0x12a   : > { %v877_v12 = vmax.f32 %v852_v10, 0.0 }
 0x12b   : > { %v856_v14 = vpop.f32.mrb[26].mxu0 }
 0x12c   : > { %v857_v15 = vadd.f32 %v4315_v6, %v856_v14  ;;  %v2922_v16 = vpop.f32.mrb[27].mxu0  ;;  %2995 = vmatmul.mubr.f32.gmra.mrb[24].mxu1 %v877_v12 }
 0x12d   : > { %2997 = vmatprep.mubr.msk.f32.mxu1 %vm3914_vm0, %v3915_v4 }
 0x12e   : > { %v878_v18 = vmax.f32 %v857_v15, 0.0 }
 0x12f   : > { %v861_v19 = vpop.f32.mrb[28].mxu0 }
 0x130   : > { %v862_v20 = vadd.f32 %v4315_v6, %v861_v19  ;;  %v2925_v22 = vpop.f32.mrb[29].mxu0  ;;  %2998 = vmatmul.mubr.f32.gmra.mrb[26].mxu1 %v878_v18  ;;  %v1238_v6 = vld [vmem:[%s5255_s7 + $0x10] sm:$0xff] }
 0x131   : > { %3000 = vmatprep.mubr.msk.f32.mxu1 %vm3914_vm0, %v3915_v4  ;;  %v3646_v30 = vpack.c.bf16 %v1239_v28, %v1238_v6 }
 0x132   : > { %v879_v23 = vmax.f32 %v862_v20, 0.0 }
 0x133   : > { %3647 = vmatpush3.bf16.msra.mxu1 %v3646_v30 }
 0x134   : > { %3001 = vmatmul.mubr.f32.gmra.mrb[28].mxu1 %v879_v23  ;;  %3648 = vmatprep.subr.bf16.mxu1 %v3913_v2 }
 0x135   : > { %3112 = vmatprep.mubr.msk.f32.mxu1 %vm3914_vm0, %v3915_v4 }
 0x137   : > { %3650 = vmatpush3.bf16.msra.mxu1 %v3649_v43 }
 0x138   : > { %3651 = vmatprep.subr.bf16.mxu1 %v3913_v2 }
 0x13b   : > { %3653 = vmatpush3.bf16.msra.mxu1 %v3652_v46 }
 0x13c   : > { %3654 = vmatprep.subr.bf16.mxu1 %v3913_v2 }
 0x13f   : > { %3656 = vmatpush3.bf16.msra.mxu1 %v3655_v49 }
 0x140   : > { %3657 = vmatprep.subr.bf16.mxu1 %v3913_v2 }
 0x143   : > { %3659 = vmatpush3.bf16.msra.mxu1 %v3658_v52 }
 0x144   : > { %3660 = vmatprep.subr.bf16.mxu1 %v3913_v2 }
 0x147   : > { %3662 = vmatpush3.bf16.msra.mxu1 %v3661_v55 }
 0x148   : > { %3663 = vmatprep.subr.bf16.mxu1 %v3913_v2 }
 0x14b   : > { %3665 = vmatpush3.bf16.msra.mxu1 %v3664_v58 }
 0x14c   : > { %3690 = vmatprep.subr.bf16.mxu1 %v3913_v2 }
 0x1cf   : > { %v969_v60 = vpop.f32.mrb[0].mxu1 }
 0x1d0   : > { %v970_v61 = vadd.f32 %v4421_v59, %v969_v60  ;;  %v2960_v62 = vpop.f32.mrb[1].mxu1 }
 0x1d2   : > { %v1043_v63 = vmax.f32 %v970_v61, 0.0 }
 0x1d3   : > { %v974_v0 = vpop.f32.mrb[2].mxu1 }
 0x1d4   : > { %v975_v1 = vadd.f32 %v4421_v59, %v974_v0  ;;  %v2963_v3 = vpop.f32.mrb[3].mxu1  ;;  %3036 = vmatmul.mubr.f32.vlgmr.msra.gmra.mrb[30].mxu0 %v1043_v63 }
 0x1d5   : > { %3038 = vmatprep.mubr.msk.f32.mxu0 %vm3914_vm0, %v3915_v4 }
 0x1d6   : > { %v1044_v5 = vmax.f32 %v975_v1, 0.0 }
 0x1d7   : > { %v979_v7 = vpop.f32.mrb[4].mxu1 }
 0x1d8   : > { %v980_v8 = vadd.f32 %v4421_v59, %v979_v7  ;;  %v2966_v9 = vpop.f32.mrb[5].mxu1  ;;  %3039 = vmatmul.mubr.f32.gmra.mrb[32].mxu0 %v1044_v5 }
 0x1d9   : > { %3041 = vmatprep.mubr.msk.f32.mxu0 %vm3914_vm0, %v3915_v4 }
 0x1da   : > { %v1045_v10 = vmax.f32 %v980_v8, 0.0 }
 0x1db   : > { %v984_v11 = vpop.f32.mrb[6].mxu1 }
 0x1dc   : > { %v985_v12 = vadd.f32 %v4421_v59, %v984_v11  ;;  %v2969_v14 = vpop.f32.mrb[7].mxu1  ;;  %3042 = vmatmul.mubr.f32.gmra.mrb[34].mxu0 %v1045_v10 }
 0x1dd   : > { %3044 = vmatprep.mubr.msk.f32.mxu0 %vm3914_vm0, %v3915_v4  ;;  %v1414_v14 = vld [vmem:[%s5257_s9] sm:$0xff] }
 0x1de   : > { %v1046_v15 = vmax.f32 %v985_v12, 0.0 }
 0x1df   : > { %v989_v16 = vpop.f32.mrb[8].mxu1 }
 0x1e0   : > { %v990_v18 = vadd.f32 %v4421_v59, %v989_v16  ;;  %v2972_v19 = vpop.f32.mrb[9].mxu1  ;;  %3045 = vmatmul.mubr.f32.gmra.mrb[36].mxu0 %v1046_v15  ;;  %v1415_v15 = vld [vmem:[%s5257_s9 + $0x8] sm:$0xff] }
 0x1e1   : > { %3047 = vmatprep.mubr.msk.f32.mxu0 %vm3914_vm0, %v3915_v4  ;;  %v3667_v16 = vpack.c.bf16 %v1415_v15, %v1414_v14 }
 0x1e2   : > { %v1047_v20 = vmax.f32 %v990_v18, 0.0  ;;  %v1417_v18 = vld [vmem:[%s5257_s9 + $0x18] sm:$0xff] }
 0x1e3   : > { %v994_v22 = vpop.f32.mrb[10].mxu1  ;;  %3668 = vmatpush3.bf16.msra.mxu0 %v3667_v16 }
 0x1e4   : > { %v995_v23 = vadd.f32 %v4421_v59, %v994_v22  ;;  %v2975_v24 = vpop.f32.mrb[11].mxu1  ;;  %3048 = vmatmul.mubr.f32.gmra.mrb[38].mxu0 %v1047_v20  ;;  %3669 = vmatprep.subr.bf16.mxu0 %v3913_v2  ;;  %v1418_v20 = vld [vmem:[%s5257_s9 + $0x20] sm:$0xff]  ;;  %v1419_v22 = vld [vmem:[%s5257_s9 + $0x28] sm:$0xff] }
 0x1e5   : > { %3050 = vmatprep.mubr.msk.f32.mxu0 %vm3914_vm0, %v3915_v4  ;;  %v1420_v24 = vld [vmem:[%s5257_s9 + $0x30] sm:$0xff] }
 0x1e6   : > { %v1048_v26 = vmax.f32 %v995_v23, 0.0  ;;  %v3673_v23 = vpack.c.bf16 %v1419_v22, %v1418_v20 }
 0x1e7   : > { %v999_v6 = vpop.f32.mrb[12].mxu1 }
 0x1e8   : > { %v1000_v27 = vadd.f32 %v4421_v59, %v999_v6  ;;  %v2978_v28 = vpop.f32.mrb[13].mxu1  ;;  %3051 = vmatmul.mubr.f32.gmra.mrb[40].mxu0 %v1048_v26  ;;  %v1421_v26 = vld [vmem:[%s5257_s9 + $0x38] sm:$0xff] }
 0x1e9   : > { %3053 = vmatprep.mubr.msk.f32.mxu0 %vm3914_vm0, %v3915_v4  ;;  %v3676_v6 = vpack.c.bf16 %v1421_v26, %v1420_v24  ;;  %v1423_v28 = vld [vmem:[%s5257_s9 + $0x48] sm:$0xff] }
 0x1ea   : > { %v1049_v30 = vmax.f32 %v1000_v27, 0.0  ;;  %v1422_v27 = vld [vmem:[%s5257_s9 + $0x40] sm:$0xff] }
 0x1eb   : > { %v1004_v41 = vpop.f32.mrb[14].mxu1 }
 0x1ec   : > { %v1005_v42 = vadd.f32 %v4421_v59, %v1004_v41  ;;  %v2981_v43 = vpop.f32.mrb[15].mxu1  ;;  %3054 = vmatmul.mubr.f32.gmra.mrb[42].mxu0 %v1049_v30  ;;  %v3679_v30 = vpack.c.bf16 %v1423_v28, %v1422_v27  ;;  %v1424_v41 = vld [vmem:[%s5257_s9 + $0x50] sm:$0xff] }
 0x1ed   : > { %3056 = vmatprep.mubr.msk.f32.mxu0 %vm3914_vm0, %v3915_v4 }
 0x1ee   : > { %v1050_v44 = vmax.f32 %v1005_v42, 0.0  ;;  %v1425_v42 = vld [vmem:[%s5257_s9 + $0x58] sm:$0xff] }
 0x1ef   : > { %v1009_v45 = vpop.f32.mrb[16].mxu1  ;;  %v3682_v43 = vpack.c.bf16 %v1425_v42, %v1424_v41 }
 0x1f0   : > { %v1010_v46 = vadd.f32 %v4421_v59, %v1009_v45  ;;  %v2984_v47 = vpop.f32.mrb[17].mxu1  ;;  %3057 = vmatmul.mubr.f32.gmra.mrb[44].mxu0 %v1050_v44  ;;  %v1426_v44 = vld [vmem:[%s5257_s9 + $0x60] sm:$0xff]  ;;  %v1427_v45 = vld [vmem:[%s5257_s9 + $0x68] sm:$0xff] }
 0x1f1   : > { %3059 = vmatprep.mubr.msk.f32.mxu0 %vm3914_vm0, %v3915_v4  ;;  %v1428_v47 = vld [vmem:[%s5257_s9 + $0x70] sm:$0xff] }
 0x1f2   : > { %v1051_v48 = vmax.f32 %v1010_v46, 0.0  ;;  %v3685_v46 = vpack.c.bf16 %v1427_v45, %v1426_v44 }
 0x1f3   : > { %v1014_v49 = vpop.f32.mrb[18].mxu1 }
 0x1f4   : > { %v1015_v50 = vadd.f32 %v4421_v59, %v1014_v49  ;;  %v2987_v51 = vpop.f32.mrb[19].mxu1  ;;  %3060 = vmatmul.mubr.f32.gmra.mrb[46].mxu0 %v1051_v48  ;;  %v1429_v48 = vld [vmem:[%s5257_s9 + $0x78] sm:$0xff] }
 0x1f5   : > { %3062 = vmatprep.mubr.msk.f32.mxu0 %vm3914_vm0, %v3915_v4  ;;  %v3688_v49 = vpack.c.bf16 %v1429_v48, %v1428_v47 }
 0x1f6   : > { %v1052_v52 = vmax.f32 %v1015_v50, 0.0  ;;  %v4527_v50 = vld [vmem:[%s5254_s6] ss:$0 sm:$0xff] }
 0x1f7   : > { %v1019_v53 = vpop.f32.mrb[20].mxu1 }
 0x1f8   : > { %v1020_v54 = vadd.f32 %v4421_v59, %v1019_v53  ;;  %v2990_v55 = vpop.f32.mrb[21].mxu1  ;;  %3063 = vmatmul.mubr.f32.gmra.mrb[48].mxu0 %v1052_v52 }
 0x1f9   : > { %3065 = vmatprep.mubr.msk.f32.mxu0 %vm3914_vm0, %v3915_v4 }
 0x1fa   : > { %v1053_v56 = vmax.f32 %v1020_v54, 0.0 }
 0x1fb   : > { %v1024_v57 = vpop.f32.mrb[22].mxu1 }
 0x1fc   : > { %v1025_v58 = vadd.f32 %v4421_v59, %v1024_v57  ;;  %v2993_v60 = vpop.f32.mrb[23].mxu1  ;;  %3066 = vmatmul.mubr.f32.gmra.mrb[50].mxu0 %v1053_v56 }
 0x1fd   : > { %3068 = vmatprep.mubr.msk.f32.mxu0 %vm3914_vm0, %v3915_v4 }
 0x1fe   : > { %v1054_v61 = vmax.f32 %v1025_v58, 0.0 }
 0x1ff   : > { %v1029_v62 = vpop.f32.mrb[24].mxu1 }
 0x200   : > { %v1030_v63 = vadd.f32 %v4421_v59, %v1029_v62  ;;  %v2996_v0 = vpop.f32.mrb[25].mxu1  ;;  %3069 = vmatmul.mubr.f32.gmra.mrb[52].mxu0 %v1054_v61 }
 0x201   : > { %3071 = vmatprep.mubr.msk.f32.mxu0 %vm3914_vm0, %v3915_v4 }
 0x202   : > { %v1055_v1 = vmax.f32 %v1030_v63, 0.0 }
 0x203   : > { %v1034_v3 = vpop.f32.mrb[26].mxu1 }
 0x204   : > { %v1035_v5 = vadd.f32 %v4421_v59, %v1034_v3  ;;  %v2999_v7 = vpop.f32.mrb[27].mxu1  ;;  %3072 = vmatmul.mubr.f32.gmra.mrb[54].mxu0 %v1055_v1 }
 0x205   : > { %3074 = vmatprep.mubr.msk.f32.mxu0 %vm3914_vm0, %v3915_v4 }
 0x206   : > { %v1056_v8 = vmax.f32 %v1035_v5, 0.0 }
 0x207   : > { %v1039_v9 = vpop.f32.mrb[28].mxu1 }
 0x208   : > { %v1040_v10 = vadd.f32 %v4421_v59, %v1039_v9  ;;  %v3002_v11 = vpop.f32.mrb[29].mxu1  ;;  %3075 = vmatmul.mubr.f32.gmra.mrb[56].mxu0 %v1056_v8  ;;  %v1416_v59 = vld [vmem:[%s5257_s9 + $0x10] sm:$0xff] }
 0x209   : > { %3077 = vmatprep.mubr.msk.f32.mxu0 %vm3914_vm0, %v3915_v4  ;;  %v3670_v19 = vpack.c.bf16 %v1417_v18, %v1416_v59 }
 0x20a   : > { %v1057_v12 = vmax.f32 %v1040_v10, 0.0 }
 0x20b   : > { %3671 = vmatpush3.bf16.msra.mxu0 %v3670_v19 }
 0x20c   : > { %3078 = vmatmul.mubr.f32.gmra.mrb[58].mxu0 %v1057_v12  ;;  %3672 = vmatprep.subr.bf16.mxu0 %v3913_v2 }
 0x20d   : > { %3189 = vmatprep.mubr.msk.f32.mxu0 %vm3914_vm0, %v3915_v4 }
 0x20f   : > { %3674 = vmatpush3.bf16.msra.mxu0 %v3673_v23 }
 0x210   : > { %3675 = vmatprep.subr.bf16.mxu0 %v3913_v2 }
 0x213   : > { %3677 = vmatpush3.bf16.msra.mxu0 %v3676_v6 }
 0x214   : > { %3678 = vmatprep.subr.bf16.mxu0 %v3913_v2 }
 0x217   : > { %3680 = vmatpush3.bf16.msra.mxu0 %v3679_v30 }
 0x218   : > { %3681 = vmatprep.subr.bf16.mxu0 %v3913_v2 }
 0x21b   : > { %3683 = vmatpush3.bf16.msra.mxu0 %v3682_v43 }
 0x21c   : > { %3684 = vmatprep.subr.bf16.mxu0 %v3913_v2 }
 0x21f   : > { %3686 = vmatpush3.bf16.msra.mxu0 %v3685_v46 }
 0x220   : > { %3687 = vmatprep.subr.bf16.mxu0 %v3913_v2 }
 0x223   : > { %3689 = vmatpush3.bf16.msra.mxu0 %v3688_v49 }
 0x224   : > { %3693 = vmatprep.subr.bf16.mxu0 %v3913_v2 }
 0x2a7   : > { %v1147_v51 = vpop.f32.mrb[30].mxu0 }
 0x2a8   : > { %v1148_v52 = vadd.f32 %v4527_v50, %v1147_v51  ;;  %v3037_v53 = vpop.f32.mrb[31].mxu0 }
 0x2aa   : > { %v1221_v54 = vmax.f32 %v1148_v52, 0.0 }
 0x2ab   : > { %v1152_v55 = vpop.f32.mrb[32].mxu0 }
 0x2ac   : > { %v1153_v56 = vadd.f32 %v4527_v50, %v1152_v55  ;;  %v3040_v57 = vpop.f32.mrb[33].mxu0  ;;  %3113 = vmatmul.mubr.f32.vlgmr.msra.gmra.mrb[30].mxu1 %v1221_v54 }
 0x2ad   : > { %3115 = vmatprep.mubr.msk.f32.mxu1 %vm3914_vm0, %v3915_v4 }
 0x2ae   : > { %v1222_v58 = vmax.f32 %v1153_v56, 0.0 }
 0x2af   : > { %v1157_v60 = vpop.f32.mrb[34].mxu0 }
 0x2b0   : > { %v1158_v61 = vadd.f32 %v4527_v50, %v1157_v60  ;;  %v3043_v62 = vpop.f32.mrb[35].mxu0  ;;  %3116 = vmatmul.mubr.f32.gmra.mrb[32].mxu1 %v1222_v58 }
 0x2b1   : > { %3118 = vmatprep.mubr.msk.f32.mxu1 %vm3914_vm0, %v3915_v4 }
 0x2b2   : > { %v1223_v63 = vmax.f32 %v1158_v61, 0.0 }
 0x2b3   : > { %v1162_v0 = vpop.f32.mrb[36].mxu0 }
 0x2b4   : > { %v1163_v1 = vadd.f32 %v4527_v50, %v1162_v0  ;;  %v3046_v3 = vpop.f32.mrb[37].mxu0  ;;  %3119 = vmatmul.mubr.f32.gmra.mrb[34].mxu1 %v1223_v63 }
 0x2b5   : > { %3121 = vmatprep.mubr.msk.f32.mxu1 %vm3914_vm0, %v3915_v4  ;;  %v1608_v3 = vld [vmem:[%s5260_s12] sm:$0xff] }
 0x2b6   : > { %v1224_v5 = vmax.f32 %v1163_v1, 0.0 }
 0x2b7   : > { %v1167_v7 = vpop.f32.mrb[38].mxu0 }
 0x2b8   : > { %v1168_v8 = vadd.f32 %v4527_v50, %v1167_v7  ;;  %v3049_v9 = vpop.f32.mrb[39].mxu0  ;;  %3122 = vmatmul.mubr.f32.gmra.mrb[36].mxu1 %v1224_v5  ;;  %v1609_v5 = vld [vmem:[%s5260_s12 + $0x8] sm:$0xff] }
 0x2b9   : > { %3124 = vmatprep.mubr.msk.f32.mxu1 %vm3914_vm0, %v3915_v4  ;;  %v3691_v7 = vpack.c.bf16 %v1609_v5, %v1608_v3 }
 0x2ba   : > { %v1225_v10 = vmax.f32 %v1168_v8, 0.0  ;;  %v1597_v8 = vld [vmem:[%s5259_s11 + $0x28] sm:$0xff] }
 0x2bb   : > { %v1172_v11 = vpop.f32.mrb[40].mxu0  ;;  %3692 = vmatpush3.bf16.msra.mxu1 %v3691_v7 }
 0x2bc   : > { %v1173_v12 = vadd.f32 %v4527_v50, %v1172_v11  ;;  %v3052_v14 = vpop.f32.mrb[41].mxu0  ;;  %3125 = vmatmul.mubr.f32.gmra.mrb[38].mxu1 %v1225_v10  ;;  %3717 = vmatprep.subr.bf16.mxu1 %v3913_v2 }
 0x2bd   : > { %3127 = vmatprep.mubr.msk.f32.mxu1 %vm3914_vm0, %v3915_v4 }
 0x2be   : > { %v1226_v15 = vmax.f32 %v1173_v12, 0.0 }
 0x2bf   : > { %v1177_v59 = vpop.f32.mrb[42].mxu0 }
 0x2c0   : > { %v1178_v16 = vadd.f32 %v4527_v50, %v1177_v59  ;;  %v3055_v18 = vpop.f32.mrb[43].mxu0  ;;  %3128 = vmatmul.mubr.f32.gmra.mrb[40].mxu1 %v1226_v15  ;;  %v1598_v15 = vld [vmem:[%s5259_s11 + $0x30] sm:$0xff]  ;;  %v1599_v59 = vld [vmem:[%s5259_s11 + $0x38] sm:$0xff] }
 0x2c1   : > { %3130 = vmatprep.mubr.msk.f32.mxu1 %vm3914_vm0, %v3915_v4 }
 0x2c2   : > { %v1227_v19 = vmax.f32 %v1178_v16, 0.0 }
 0x2c3   : > { %v1182_v20 = vpop.f32.mrb[44].mxu0 }
 0x2c4   : > { %v1183_v22 = vadd.f32 %v4527_v50, %v1182_v20  ;;  %v3058_v23 = vpop.f32.mrb[45].mxu0  ;;  %3131 = vmatmul.mubr.f32.gmra.mrb[42].mxu1 %v1227_v19  ;;  %v3703_v20 = vpack.c.bf16 %v1599_v59, %v1598_v15 }
 0x2c5   : > { %3133 = vmatprep.mubr.msk.f32.mxu1 %vm3914_vm0, %v3915_v4  ;;  %v1600_v23 = vld [vmem:[%s5259_s11 + $0x40] sm:$0xff] }
 0x2c6   : > { %v1228_v24 = vmax.f32 %v1183_v22, 0.0 }
 0x2c7   : > { %v1187_v26 = vpop.f32.mrb[46].mxu0 }
 0x2c8   : > { %v1188_v6 = vadd.f32 %v4527_v50, %v1187_v26  ;;  %v3061_v27 = vpop.f32.mrb[47].mxu0  ;;  %3134 = vmatmul.mubr.f32.gmra.mrb[44].mxu1 %v1228_v24  ;;  %v1601_v24 = vld [vmem:[%s5259_s11 + $0x48] sm:$0xff] }
 0x2c9   : > { %3136 = vmatprep.mubr.msk.f32.mxu1 %vm3914_vm0, %v3915_v4 }
 0x2ca   : > { %v1229_v28 = vmax.f32 %v1188_v6, 0.0 }
 0x2cb   : > { %v1192_v30 = vpop.f32.mrb[48].mxu0 }
 0x2cc   : > { %v1193_v41 = vadd.f32 %v4527_v50, %v1192_v30  ;;  %v3064_v42 = vpop.f32.mrb[49].mxu0  ;;  %3137 = vmatmul.mubr.f32.gmra.mrb[46].mxu1 %v1229_v28  ;;  %v3706_v28 = vpack.c.bf16 %v1601_v24, %v1600_v23 }
 0x2cd   : > { %3139 = vmatprep.mubr.msk.f32.mxu1 %vm3914_vm0, %v3915_v4  ;;  %v1603_v42 = vld [vmem:[%s5259_s11 + $0x58] sm:$0xff] }
 0x2ce   : > { %v1230_v43 = vmax.f32 %v1193_v41, 0.0  ;;  %v1602_v41 = vld [vmem:[%s5259_s11 + $0x50] sm:$0xff] }
 0x2cf   : > { %v1197_v44 = vpop.f32.mrb[50].mxu0 }
 0x2d0   : > { %v1198_v45 = vadd.f32 %v4527_v50, %v1197_v44  ;;  %v3067_v46 = vpop.f32.mrb[51].mxu0  ;;  %3140 = vmatmul.mubr.f32.gmra.mrb[48].mxu1 %v1230_v43 }
 0x2d1   : > { %3142 = vmatprep.mubr.msk.f32.mxu1 %vm3914_vm0, %v3915_v4  ;;  %v3709_v46 = vpack.c.bf16 %v1603_v42, %v1602_v41  ;;  %v1935_v42 = vld [vmem:[%s5262_s14 + $0x40] sm:$0xff] }
 0x2d2   : > { %v1231_v47 = vmax.f32 %v1198_v45, 0.0 }
 0x2d3   : > { %v1202_v48 = vpop.f32.mrb[52].mxu0 }
 0x2d4   : > { %v1203_v49 = vadd.f32 %v4527_v50, %v1202_v48  ;;  %v3070_v51 = vpop.f32.mrb[53].mxu0  ;;  %3143 = vmatmul.mubr.f32.gmra.mrb[50].mxu1 %v1231_v47  ;;  %v1604_v48 = vld [vmem:[%s5259_s11 + $0x60] sm:$0xff] }
 0x2d5   : > { %3145 = vmatprep.mubr.msk.f32.mxu1 %vm3914_vm0, %v3915_v4 }
 0x2d6   : > { %v1232_v52 = vmax.f32 %v1203_v49, 0.0  ;;  %v1605_v49 = vld [vmem:[%s5259_s11 + $0x68] sm:$0xff] }
 0x2d7   : > { %v1207_v53 = vpop.f32.mrb[54].mxu0 }
 0x2d8   : > { %v1208_v54 = vadd.f32 %v4527_v50, %v1207_v53  ;;  %v3073_v55 = vpop.f32.mrb[55].mxu0  ;;  %3146 = vmatmul.mubr.f32.gmra.mrb[52].mxu1 %v1232_v52 }
 0x2d9   : > { %3148 = vmatprep.mubr.msk.f32.mxu1 %vm3914_vm0, %v3915_v4 }
 0x2da   : > { %v1233_v56 = vmax.f32 %v1208_v54, 0.0  ;;  %v3712_v54 = vpack.c.bf16 %v1605_v49, %v1604_v48  ;;  %v1939_v48 = vld [vmem:[%s5262_s14 + $0x60] sm:$0xff]  ;;  %v1940_v49 = vld [vmem:[%s5262_s14 + $0x68] sm:$0xff] }
 0x2db   : > { %v1212_v57 = vpop.f32.mrb[56].mxu0 }
 0x2dc   : > { %v1213_v58 = vadd.f32 %v4527_v50, %v1212_v57  ;;  %v3076_v60 = vpop.f32.mrb[57].mxu0  ;;  %3149 = vmatmul.mubr.f32.gmra.mrb[54].mxu1 %v1233_v56  ;;  %v1606_v56 = vld [vmem:[%s5259_s11 + $0x70] sm:$0xff]  ;;  %v1607_v57 = vld [vmem:[%s5259_s11 + $0x78] sm:$0xff] }
 0x2dd   : > { %3151 = vmatprep.mubr.msk.f32.mxu1 %vm3914_vm0, %v3915_v4 }
 0x2de   : > { %v1234_v61 = vmax.f32 %v1213_v58, 0.0 }
 0x2df   : > { %v1217_v62 = vpop.f32.mrb[58].mxu0 }
 0x2e0   : > { %v1218_v63 = vadd.f32 %v4527_v50, %v1217_v62  ;;  %v3079_v0 = vpop.f32.mrb[59].mxu0  ;;  %3152 = vmatmul.mubr.f32.gmra.mrb[56].mxu1 %v1234_v61  ;;  %v1596_v50 = vld [vmem:[%s5259_s11 + $0x20] sm:$0xff]  ;;  %v3715_v62 = vpack.c.bf16 %v1607_v57, %v1606_v56 }
 0x2e1   : > { %3154 = vmatprep.mubr.msk.f32.mxu1 %vm3914_vm0, %v3915_v4  ;;  %v3700_v12 = vpack.c.bf16 %v1597_v8, %v1596_v50 }
 0x2e2   : > { %v1235_v1 = vmax.f32 %v1218_v63, 0.0 }
 0x2e4   : > { %3155 = vmatmul.mubr.f32.gmra.mrb[58].mxu1 %v1235_v1 }
 0x2e5   : > { %3238 = vmatprep.mubr.msk.f32.mxu1 %vm3914_vm0, %v3915_v4 }
 0x2e8   : > { %3239 = vmatmul.mubr.msk.f32.vlgmr.msra.gmra.mrb[60].mxu1 %vm679_vm1, %v4115_v13  ;;  %v4644_v13 = vld [vmem:[%s5256_s8] ss:$0 sm:$0xff] }
 0x2e9   : > { %3241 = vmatprep.mubr.msk.f32.mxu1 %vm3914_vm0, %v3915_v4 }
 0x2ec   : > { %3242 = vmatmul.mubr.msk.f32.gmra.mrb[62].mxu1 %vm679_vm1, %v4129_v17  ;;  %v1592_v17 = vld [vmem:[%s5259_s11] sm:$0xff] }
 0x2ed   : > { %3244 = vmatprep.mubr.msk.f32.mxu1 %vm3914_vm0, %v3915_v4 }
 0x2f0   : > { %3245 = vmatmul.mubr.msk.f32.gmra.mrb[64].mxu1 %vm679_vm1, %v4143_v21  ;;  %v1593_v21 = vld [vmem:[%s5259_s11 + $0x8] sm:$0xff] }
 0x2f1   : > { %3247 = vmatprep.mubr.msk.f32.mxu1 %vm3914_vm0, %v3915_v4 }
 0x2f4   : > { %3248 = vmatmul.mubr.msk.f32.gmra.mrb[66].mxu1 %vm679_vm1, %v4157_v25 }
 0x2f5   : > { %3250 = vmatprep.mubr.msk.f32.mxu1 %vm3914_vm0, %v3915_v4 }
 0x2f8   : > { %3251 = vmatmul.mubr.msk.f32.gmra.mrb[68].mxu1 %vm679_vm1, %v4171_v29 }
 0x2f9   : > { %3253 = vmatprep.mubr.msk.f32.mxu1 %vm3914_vm0, %v3915_v4 }
 0x2fc   : > { %3254 = vmatmul.mubr.msk.f32.gmra.mrb[70].mxu1 %vm679_vm1, %v4179_v31 }
 0x2fd   : > { %3256 = vmatprep.mubr.msk.f32.mxu1 %vm3914_vm0, %v3915_v4 }
 0x300   : > { %3257 = vmatmul.mubr.msk.f32.gmra.mrb[72].mxu1 %vm679_vm1, %v4187_v32  ;;  %v3694_v32 = vpack.c.bf16 %v1593_v21, %v1592_v17 }
 0x301   : > { %3259 = vmatprep.mubr.msk.f32.mxu1 %vm3914_vm0, %v3915_v4 }
 0x304   : > { %3260 = vmatmul.mubr.msk.f32.gmra.mrb[74].mxu1 %vm679_vm1, %v4194_v33 }
 0x305   : > { %3262 = vmatprep.mubr.msk.f32.mxu1 %vm3914_vm0, %v3915_v4 }
 0x308   : > { %3263 = vmatmul.mubr.msk.f32.gmra.mrb[76].mxu1 %vm679_vm1, %v4201_v34  ;;  %v1594_v34 = vld [vmem:[%s5259_s11 + $0x10] sm:$0xff] }
 0x309   : > { %3265 = vmatprep.mubr.msk.f32.mxu1 %vm3914_vm0, %v3915_v4 }
 0x30c   : > { %3266 = vmatmul.mubr.msk.f32.gmra.mrb[78].mxu1 %vm679_vm1, %v4208_v35  ;;  %v1595_v35 = vld [vmem:[%s5259_s11 + $0x18] sm:$0xff] }
 0x30d   : > { %3268 = vmatprep.mubr.msk.f32.mxu1 %vm3914_vm0, %v3915_v4 }
 0x310   : > { %3269 = vmatmul.mubr.msk.f32.gmra.mrb[80].mxu1 %vm679_vm1, %v4215_v36 }
 0x311   : > { %3271 = vmatprep.mubr.msk.f32.mxu1 %vm3914_vm0, %v3915_v4 }
 0x314   : > { %3272 = vmatmul.mubr.msk.f32.gmra.mrb[82].mxu1 %vm679_vm1, %v4222_v37 }
 0x315   : > { %3274 = vmatprep.mubr.msk.f32.mxu1 %vm3914_vm0, %v3915_v4 }
 0x318   : > { %3275 = vmatmul.mubr.msk.f32.gmra.mrb[84].mxu1 %vm679_vm1, %v4229_v38 }
 0x319   : > { %3277 = vmatprep.mubr.msk.f32.mxu1 %vm3914_vm0, %v3915_v4 }
 0x31c   : > { %3278 = vmatmul.mubr.msk.f32.gmra.mrb[86].mxu1 %vm679_vm1, %v4236_v39  ;;  %v3697_v39 = vpack.c.bf16 %v1595_v35, %v1594_v34 }
 0x31d   : > { %3280 = vmatprep.mubr.msk.f32.mxu1 %vm3914_vm0, %v3915_v4 }
 0x320   : > { %3281 = vmatmul.mubr.msk.f32.gmra.mrb[88].mxu1 %vm679_vm1, %v4243_v40 }
 0x321   : > { %3392 = vmatprep.mubr.msk.f32.mxu1 %vm3914_vm0, %v3915_v4 }
 0x37f   : > { %v1325_v25 = vpop.f32.mrb[30].mxu1 }
 0x380   : > { %v1326_v29 = vadd.f32 %v4644_v13, %v1325_v25  ;;  %v3114_v31 = vpop.f32.mrb[31].mxu1 }
 0x382   : > { %v1399_v33 = vmax.f32 %v1326_v29, 0.0 }
 0x383   : > { %v1330_v36 = vpop.f32.mrb[32].mxu1 }
 0x384   : > { %v1331_v37 = vadd.f32 %v4644_v13, %v1330_v36  ;;  %v3117_v38 = vpop.f32.mrb[33].mxu1  ;;  %3190 = vmatmul.mubr.f32.vlgmr.msra.gmra.mrb[60].mxu0 %v1399_v33 }
 0x385   : > { %3192 = vmatprep.mubr.msk.f32.mxu0 %vm3914_vm0, %v3915_v4  ;;  %3695 = vmatpush3.bf16.msra.mxu0 %v3694_v32 }
 0x386   : > { %v1400_v40 = vmax.f32 %v1331_v37, 0.0  ;;  %3696 = vmatprep.subr.bf16.mxu0 %v3913_v2 }
 0x387   : > { %v1335_v9 = vpop.f32.mrb[34].mxu1 }
 0x388   : > { %v1336_v10 = vadd.f32 %v4644_v13, %v1335_v9  ;;  %v3120_v11 = vpop.f32.mrb[35].mxu1  ;;  %3193 = vmatmul.mubr.f32.gmra.mrb[62].mxu0 %v1400_v40 }
 0x389   : > { %3195 = vmatprep.mubr.msk.f32.mxu0 %vm3914_vm0, %v3915_v4  ;;  %3698 = vmatpush3.bf16.msra.mxu0 %v3697_v39 }
 0x38a   : > { %v1401_v14 = vmax.f32 %v1336_v10, 0.0  ;;  %3699 = vmatprep.subr.bf16.mxu0 %v3913_v2 }
 0x38b   : > { %v1340_v16 = vpop.f32.mrb[36].mxu1 }
 0x38c   : > { %v1341_v18 = vadd.f32 %v4644_v13, %v1340_v16  ;;  %v3123_v19 = vpop.f32.mrb[37].mxu1  ;;  %3196 = vmatmul.mubr.f32.gmra.mrb[64].mxu0 %v1401_v14  ;;  %v1927_v16 = vld [vmem:[%s5262_s14] sm:$0xff] }
 0x38d   : > { %3198 = vmatprep.mubr.msk.f32.mxu0 %vm3914_vm0, %v3915_v4  ;;  %3701 = vmatpush3.bf16.msra.mxu0 %v3700_v12 }
 0x38e   : > { %v1402_v22 = vmax.f32 %v1341_v18, 0.0  ;;  %3702 = vmatprep.subr.bf16.mxu0 %v3913_v2  ;;  %v1928_v18 = vld [vmem:[%s5262_s14 + $0x8] sm:$0xff] }
 0x38f   : > { %v1345_v26 = vpop.f32.mrb[38].mxu1  ;;  %v3718_v19 = vpack.c.bf16 %v1928_v18, %v1927_v16 }
 0x390   : > { %v1346_v6 = vadd.f32 %v4644_v13, %v1345_v26  ;;  %v3126_v27 = vpop.f32.mrb[39].mxu1  ;;  %3199 = vmatmul.mubr.f32.gmra.mrb[66].mxu0 %v1402_v22  ;;  %v1931_v26 = vld [vmem:[%s5262_s14 + $0x20] sm:$0xff] }
 0x391   : > { %3201 = vmatprep.mubr.msk.f32.mxu0 %vm3914_vm0, %v3915_v4  ;;  %3704 = vmatpush3.bf16.msra.mxu0 %v3703_v20  ;;  %v1930_v20 = vld [vmem:[%s5262_s14 + $0x18] sm:$0xff] }
 0x392   : > { %v1403_v30 = vmax.f32 %v1346_v6, 0.0  ;;  %3705 = vmatprep.subr.bf16.mxu0 %v3913_v2  ;;  %3719 = vmatpush3.bf16.msra.mxu1 %v3718_v19  ;;  %v1932_v6 = vld [vmem:[%s5262_s14 + $0x28] sm:$0xff] }
 0x393   : > { %v1350_v43 = vpop.f32.mrb[40].mxu1  ;;  %3720 = vmatprep.subr.bf16.mxu1 %v3913_v2  ;;  %v3724_v27 = vpack.c.bf16 %v1932_v6, %v1931_v26 }
 0x394   : > { %v1351_v44 = vadd.f32 %v4644_v13, %v1350_v43  ;;  %v3129_v45 = vpop.f32.mrb[41].mxu1  ;;  %3202 = vmatmul.mubr.f32.gmra.mrb[68].mxu0 %v1403_v30  ;;  %v1934_v30 = vld [vmem:[%s5262_s14 + $0x38] sm:$0xff]  ;;  %v1936_v43 = vld [vmem:[%s5262_s14 + $0x48] sm:$0xff] }
 0x395   : > { %3204 = vmatprep.mubr.msk.f32.mxu0 %vm3914_vm0, %v3915_v4  ;;  %3707 = vmatpush3.bf16.msra.mxu0 %v3706_v28  ;;  %v1933_v28 = vld [vmem:[%s5262_s14 + $0x30] sm:$0xff] }
 0x396   : > { %v1404_v47 = vmax.f32 %v1351_v44, 0.0  ;;  %3708 = vmatprep.subr.bf16.mxu0 %v3913_v2  ;;  %v3727_v41 = vpack.c.bf16 %v1934_v30, %v1933_v28  ;;  %v3730_v44 = vpack.c.bf16 %v1936_v43, %v1935_v42  ;;  %v1937_v45 = vld [vmem:[%s5262_s14 + $0x50] sm:$0xff] }
 0x397   : > { %v1355_v51 = vpop.f32.mrb[42].mxu1 }
 0x398   : > { %v1356_v52 = vadd.f32 %v4644_v13, %v1355_v51  ;;  %v3132_v53 = vpop.f32.mrb[43].mxu1  ;;  %3205 = vmatmul.mubr.f32.gmra.mrb[70].mxu0 %v1404_v47  ;;  %v3736_v51 = vpack.c.bf16 %v1940_v49, %v1939_v48 }
 0x399   : > { %3207 = vmatprep.mubr.msk.f32.mxu0 %vm3914_vm0, %v3915_v4  ;;  %3710 = vmatpush3.bf16.msra.mxu0 %v3709_v46  ;;  %v1938_v46 = vld [vmem:[%s5262_s14 + $0x58] sm:$0xff] }
 0x39a   : > { %v1405_v55 = vmax.f32 %v1356_v52, 0.0  ;;  %3711 = vmatprep.subr.bf16.mxu0 %v3913_v2  ;;  %v3733_v47 = vpack.c.bf16 %v1938_v46, %v1937_v45  ;;  %v4801_v52 = vld [vmem:[%s5258_s10] ss:$0 sm:$0xff] }
 0x39b   : > { %v1360_v58 = vpop.f32.mrb[44].mxu1 }
 0x39c   : > { %v1361_v60 = vadd.f32 %v4644_v13, %v1360_v58  ;;  %v3135_v61 = vpop.f32.mrb[45].mxu1  ;;  %3208 = vmatmul.mubr.f32.gmra.mrb[72].mxu0 %v1405_v55 }
 0x39d   : > { %3210 = vmatprep.mubr.msk.f32.mxu0 %vm3914_vm0, %v3915_v4  ;;  %3713 = vmatpush3.bf16.msra.mxu0 %v3712_v54 }
 0x39e   : > { %v1406_v63 = vmax.f32 %v1361_v60, 0.0  ;;  %3714 = vmatprep.subr.bf16.mxu0 %v3913_v2 }
 0x39f   : > { %v1365_v0 = vpop.f32.mrb[46].mxu1 }
 0x3a0   : > { %v1366_v1 = vadd.f32 %v4644_v13, %v1365_v0  ;;  %v3138_v3 = vpop.f32.mrb[47].mxu1  ;;  %3211 = vmatmul.mubr.f32.gmra.mrb[74].mxu0 %v1406_v63 }
 0x3a1   : > { %3213 = vmatprep.mubr.msk.f32.mxu0 %vm3914_vm0, %v3915_v4  ;;  %3716 = vmatpush3.bf16.msra.mxu0 %v3715_v62 }
 0x3a2   : > { %v1407_v5 = vmax.f32 %v1366_v1, 0.0  ;;  %3741 = vmatprep.subr.bf16.mxu0 %v3913_v2 }
 0x3a3   : > { %v1370_v7 = vpop.f32.mrb[48].mxu1 }
 0x3a4   : > { %v1371_v17 = vadd.f32 %v4644_v13, %v1370_v7  ;;  %v3141_v21 = vpop.f32.mrb[49].mxu1  ;;  %3214 = vmatmul.mubr.f32.gmra.mrb[76].mxu0 %v1407_v5 }
 0x3a5   : > { %3216 = vmatprep.mubr.msk.f32.mxu0 %vm3914_vm0, %v3915_v4 }
 0x3a6   : > { %v1408_v25 = vmax.f32 %v1371_v17, 0.0 }
 0x3a7   : > { %v1375_v29 = vpop.f32.mrb[50].mxu1 }
 0x3a8   : > { %v1376_v31 = vadd.f32 %v4644_v13, %v1375_v29  ;;  %v3144_v32 = vpop.f32.mrb[51].mxu1  ;;  %3217 = vmatmul.mubr.f32.gmra.mrb[78].mxu0 %v1408_v25 }
 0x3a9   : > { %3219 = vmatprep.mubr.msk.f32.mxu0 %vm3914_vm0, %v3915_v4 }
 0x3aa   : > { %v1409_v33 = vmax.f32 %v1376_v31, 0.0 }
 0x3ab   : > { %v1380_v34 = vpop.f32.mrb[52].mxu1 }
 0x3ac   : > { %v1381_v35 = vadd.f32 %v4644_v13, %v1380_v34  ;;  %v3147_v36 = vpop.f32.mrb[53].mxu1  ;;  %3220 = vmatmul.mubr.f32.gmra.mrb[80].mxu0 %v1409_v33 }
 0x3ad   : > { %3222 = vmatprep.mubr.msk.f32.mxu0 %vm3914_vm0, %v3915_v4 }
 0x3ae   : > { %v1410_v37 = vmax.f32 %v1381_v35, 0.0 }
 0x3af   : > { %v1385_v38 = vpop.f32.mrb[54].mxu1 }
 0x3b0   : > { %v1386_v39 = vadd.f32 %v4644_v13, %v1385_v38  ;;  %v3150_v40 = vpop.f32.mrb[55].mxu1  ;;  %3223 = vmatmul.mubr.f32.gmra.mrb[82].mxu0 %v1410_v37 }
 0x3b1   : > { %3225 = vmatprep.mubr.msk.f32.mxu0 %vm3914_vm0, %v3915_v4 }
 0x3b2   : > { %v1411_v50 = vmax.f32 %v1386_v39, 0.0 }
 0x3b3   : > { %v1390_v8 = vpop.f32.mrb[56].mxu1 }
 0x3b4   : > { %v1391_v9 = vadd.f32 %v4644_v13, %v1390_v8  ;;  %v3153_v10 = vpop.f32.mrb[57].mxu1  ;;  %3226 = vmatmul.mubr.f32.gmra.mrb[84].mxu0 %v1411_v50 }
 0x3b5   : > { %3228 = vmatprep.mubr.msk.f32.mxu0 %vm3914_vm0, %v3915_v4 }
 0x3b6   : > { %v1412_v11 = vmax.f32 %v1391_v9, 0.0 }
 0x3b7   : > { %v1395_v12 = vpop.f32.mrb[58].mxu1 }
 0x3b8   : > { %v1396_v14 = vadd.f32 %v4644_v13, %v1395_v12  ;;  %v3156_v15 = vpop.f32.mrb[59].mxu1  ;;  %3229 = vmatmul.mubr.f32.gmra.mrb[86].mxu0 %v1412_v11  ;;  %v1929_v13 = vld [vmem:[%s5262_s14 + $0x10] sm:$0xff] }
 0x3b9   : > { %3231 = vmatprep.mubr.msk.f32.mxu0 %vm3914_vm0, %v3915_v4  ;;  %v3721_v24 = vpack.c.bf16 %v1930_v20, %v1929_v13 }
 0x3ba   : > { %v1413_v59 = vmax.f32 %v1396_v14, 0.0 }
 0x3bb   : > { %v4759_v22 = vpop.f32.mrb[60].mxu1  ;;  %3722 = vmatpush3.bf16.msra.mxu1 %v3721_v24 }
 0x3bc   : > { %3232 = vmatmul.mubr.f32.gmra.mrb[88].mxu0 %v1413_v59  ;;  %v3240_v23 = vpop.f32.mrb[61].mxu1  ;;  %3723 = vmatprep.subr.bf16.mxu1 %v3913_v2 }
 0x3bd   : > { %3315 = vmatprep.mubr.msk.f32.mxu0 %vm3914_vm0, %v3915_v4 }
 0x3bf   : > { %3725 = vmatpush3.bf16.msra.mxu1 %v3724_v27 }
 0x3c0   : > { %3726 = vmatprep.subr.bf16.mxu1 %v3913_v2 }
 0x3c3   : > { %3728 = vmatpush3.bf16.msra.mxu1 %v3727_v41 }
 0x3c4   : > { %3729 = vmatprep.subr.bf16.mxu1 %v3913_v2 }
 0x3c7   : > { %3731 = vmatpush3.bf16.msra.mxu1 %v3730_v44 }
 0x3c8   : > { %3732 = vmatprep.subr.bf16.mxu1 %v3913_v2 }
 0x3cb   : > { %3734 = vmatpush3.bf16.msra.mxu1 %v3733_v47 }
 0x3cc   : > { %3735 = vmatprep.subr.bf16.mxu1 %v3913_v2 }
 0x3cf   : > { %3737 = vmatpush3.bf16.msra.mxu1 %v3736_v51 }
 0x3d0   : > { %3738 = vmatprep.subr.bf16.mxu1 %v3913_v2 }
 0x457   : > { %v1503_v53 = vpop.f32.mrb[60].mxu0 }
 0x458   : > { %v1504_v54 = vadd.f32 %v4801_v52, %v1503_v53  ;;  %v3191_v55 = vpop.f32.mrb[61].mxu0  ;;  %v1941_v53 = vld [vmem:[%s5262_s14 + $0x70] sm:$0xff] }
 0x45a   : > { %v1577_v56 = vmax.f32 %v1504_v54, 0.0  ;;  %v1942_v54 = vld [vmem:[%s5262_s14 + $0x78] sm:$0xff] }
 0x45b   : > { %v1508_v57 = vpop.f32.mrb[62].mxu0  ;;  %v3739_v55 = vpack.c.bf16 %v1942_v54, %v1941_v53 }
 0x45c   : > { %v1509_v58 = vadd.f32 %v4801_v52, %v1508_v57  ;;  %v3194_v60 = vpop.f32.mrb[63].mxu0  ;;  %3316 = vmatmul.mubr.f32.vlgmr.msra.gmra.mrb[90].mxu0 %v1577_v56 }
 0x45d   : > { %3318 = vmatprep.mubr.msk.f32.mxu0 %vm3914_vm0, %v3915_v4  ;;  %3740 = vmatpush3.bf16.msra.mxu1 %v3739_v55 }
 0x45e   : > { %v1578_v61 = vmax.f32 %v1509_v58, 0.0  ;;  %3789 = vmatprep.subr.bf16.mxu1 %v3913_v2 }
 0x45f   : > { %v1513_v62 = vpop.f32.mrb[64].mxu0 }
 0x460   : > { %v1514_v63 = vadd.f32 %v4801_v52, %v1513_v62  ;;  %v3197_v0 = vpop.f32.mrb[65].mxu0  ;;  %3319 = vmatmul.mubr.f32.gmra.mrb[92].mxu0 %v1578_v61 }
 0x461   : > { %3321 = vmatprep.mubr.msk.f32.mxu0 %vm3914_vm0, %v3915_v4 }
 0x462   : > { %v1579_v1 = vmax.f32 %v1514_v63, 0.0 }
 0x463   : > { %v1518_v3 = vpop.f32.mrb[66].mxu0 }
 0x464   : > { %v1519_v5 = vadd.f32 %v4801_v52, %v1518_v3  ;;  %v3200_v7 = vpop.f32.mrb[67].mxu0  ;;  %3322 = vmatmul.mubr.f32.gmra.mrb[94].mxu0 %v1579_v1 }
 0x465   : > { %3324 = vmatprep.mubr.msk.f32.mxu0 %vm3914_vm0, %v3915_v4 }
 0x466   : > { %v1580_v17 = vmax.f32 %v1519_v5, 0.0 }
 0x467   : > { %v1523_v21 = vpop.f32.mrb[68].mxu0 }
 0x468   : > { %v1524_v25 = vadd.f32 %v4801_v52, %v1523_v21  ;;  %v3203_v29 = vpop.f32.mrb[69].mxu0  ;;  %3325 = vmatmul.mubr.f32.gmra.mrb[96].mxu0 %v1580_v17 }
 0x469   : > { %3327 = vmatprep.mubr.msk.f32.mxu0 %vm3914_vm0, %v3915_v4 }
 0x46a   : > { %v1581_v31 = vmax.f32 %v1524_v25, 0.0 }
 0x46b   : > { %v1528_v32 = vpop.f32.mrb[70].mxu0 }
 0x46c   : > { %v1529_v33 = vadd.f32 %v4801_v52, %v1528_v32  ;;  %v3206_v34 = vpop.f32.mrb[71].mxu0  ;;  %3328 = vmatmul.mubr.f32.gmra.mrb[98].mxu0 %v1581_v31 }
 0x46d   : > { %3330 = vmatprep.mubr.msk.f32.mxu0 %vm3914_vm0, %v3915_v4 }
 0x46e   : > { %v1582_v35 = vmax.f32 %v1529_v33, 0.0 }
 0x46f   : > { %v1533_v36 = vpop.f32.mrb[72].mxu0 }
 0x470   : > { %v1534_v37 = vadd.f32 %v4801_v52, %v1533_v36  ;;  %v3209_v38 = vpop.f32.mrb[73].mxu0  ;;  %3331 = vmatmul.mubr.f32.gmra.mrb[100].mxu0 %v1582_v35 }
 0x471   : > { %3333 = vmatprep.mubr.msk.f32.mxu0 %vm3914_vm0, %v3915_v4 }
 0x472   : > { %v1583_v39 = vmax.f32 %v1534_v37, 0.0 }
 0x473   : > { %v1538_v40 = vpop.f32.mrb[74].mxu0 }
 0x474   : > { %v1539_v50 = vadd.f32 %v4801_v52, %v1538_v40  ;;  %v3212_v8 = vpop.f32.mrb[75].mxu0  ;;  %3334 = vmatmul.mubr.f32.gmra.mrb[102].mxu0 %v1583_v39 }
 0x475   : > { %3336 = vmatprep.mubr.msk.f32.mxu0 %vm3914_vm0, %v3915_v4  ;;  %v2105_v8 = vld [vmem:[%s5264_s16] sm:$0xff] }
 0x476   : > { %v1584_v9 = vmax.f32 %v1539_v50, 0.0 }
 0x477   : > { %v1543_v10 = vpop.f32.mrb[76].mxu0 }
 0x478   : > { %v1544_v11 = vadd.f32 %v4801_v52, %v1543_v10  ;;  %v3215_v12 = vpop.f32.mrb[77].mxu0  ;;  %3337 = vmatmul.mubr.f32.gmra.mrb[104].mxu0 %v1584_v9  ;;  %v2106_v9 = vld [vmem:[%s5264_s16 + $0x8] sm:$0xff]  ;;  %v2107_v10 = vld [vmem:[%s5264_s16 + $0x10] sm:$0xff] }
 0x479   : > { %3339 = vmatprep.mubr.msk.f32.mxu0 %vm3914_vm0, %v3915_v4  ;;  %v2108_v12 = vld [vmem:[%s5264_s16 + $0x18] sm:$0xff] }
 0x47a   : > { %v1585_v14 = vmax.f32 %v1544_v11, 0.0  ;;  %v3742_v11 = vpack.c.bf16 %v2106_v9, %v2105_v8 }
 0x47b   : > { %v1548_v15 = vpop.f32.mrb[78].mxu0 }
 0x47c   : > { %v1549_v59 = vadd.f32 %v4801_v52, %v1548_v15  ;;  %v3218_v16 = vpop.f32.mrb[79].mxu0  ;;  %3340 = vmatmul.mubr.f32.gmra.mrb[106].mxu0 %v1585_v14  ;;  %v3745_v14 = vpack.c.bf16 %v2108_v12, %v2107_v10  ;;  %v2109_v15 = vld [vmem:[%s5264_s16 + $0x20] sm:$0xff] }
 0x47d   : > { %3342 = vmatprep.mubr.msk.f32.mxu0 %vm3914_vm0, %v3915_v4  ;;  %3743 = vmatpush3.bf16.msra.mxu0 %v3742_v11 }
 0x47e   : > { %v1586_v18 = vmax.f32 %v1549_v59, 0.0  ;;  %3744 = vmatprep.subr.bf16.mxu0 %v3913_v2  ;;  %v2110_v59 = vld [vmem:[%s5264_s16 + $0x28] sm:$0xff] }
 0x47f   : > { %v1553_v13 = vpop.f32.mrb[80].mxu0  ;;  %v3748_v16 = vpack.c.bf16 %v2110_v59, %v2109_v15 }
 0x480   : > { %v1554_v19 = vadd.f32 %v4801_v52, %v1553_v13  ;;  %v3221_v20 = vpop.f32.mrb[81].mxu0  ;;  %3343 = vmatmul.mubr.f32.gmra.mrb[108].mxu0 %v1586_v18  ;;  %v2111_v18 = vld [vmem:[%s5264_s16 + $0x30] sm:$0xff]  ;;  %v2112_v13 = vld [vmem:[%s5264_s16 + $0x38] sm:$0xff] }
 0x481   : > { %3345 = vmatprep.mubr.msk.f32.mxu0 %vm3914_vm0, %v3915_v4  ;;  %3746 = vmatpush3.bf16.msra.mxu0 %v3745_v14  ;;  %v2113_v20 = vld [vmem:[%s5264_s16 + $0x40] sm:$0xff] }
 0x482   : > { %v1587_v23 = vmax.f32 %v1554_v19, 0.0  ;;  %3747 = vmatprep.subr.bf16.mxu0 %v3913_v2  ;;  %v3751_v19 = vpack.c.bf16 %v2112_v13, %v2111_v18 }
 0x483   : > { %v1558_v24 = vpop.f32.mrb[82].mxu0 }
 0x484   : > { %v1559_v26 = vadd.f32 %v4801_v52, %v1558_v24  ;;  %v3224_v6 = vpop.f32.mrb[83].mxu0  ;;  %3346 = vmatmul.mubr.f32.gmra.mrb[110].mxu0 %v1587_v23  ;;  %v2114_v23 = vld [vmem:[%s5264_s16 + $0x48] sm:$0xff] }
 0x485   : > { %3348 = vmatprep.mubr.msk.f32.mxu0 %vm3914_vm0, %v3915_v4  ;;  %3749 = vmatpush3.bf16.msra.mxu0 %v3748_v16  ;;  %v3754_v24 = vpack.c.bf16 %v2114_v23, %v2113_v20  ;;  %v2116_v6 = vld [vmem:[%s5264_s16 + $0x58] sm:$0xff] }
 0x486   : > { %v1588_v27 = vmax.f32 %v1559_v26, 0.0  ;;  %3750 = vmatprep.subr.bf16.mxu0 %v3913_v2  ;;  %v2115_v26 = vld [vmem:[%s5264_s16 + $0x50] sm:$0xff] }
 0x487   : > { %v1563_v28 = vpop.f32.mrb[84].mxu0 }
 0x488   : > { %v1564_v30 = vadd.f32 %v4801_v52, %v1563_v28  ;;  %v3227_v41 = vpop.f32.mrb[85].mxu0  ;;  %3349 = vmatmul.mubr.f32.gmra.mrb[112].mxu0 %v1588_v27  ;;  %v3757_v27 = vpack.c.bf16 %v2116_v6, %v2115_v26  ;;  %v2117_v28 = vld [vmem:[%s5264_s16 + $0x60] sm:$0xff] }
 0x489   : > { %3351 = vmatprep.mubr.msk.f32.mxu0 %vm3914_vm0, %v3915_v4  ;;  %3752 = vmatpush3.bf16.msra.mxu0 %v3751_v19 }
 0x48a   : > { %v1589_v42 = vmax.f32 %v1564_v30, 0.0  ;;  %3753 = vmatprep.subr.bf16.mxu0 %v3913_v2  ;;  %v2118_v30 = vld [vmem:[%s5264_s16 + $0x68] sm:$0xff] }
 0x48b   : > { %v1568_v43 = vpop.f32.mrb[86].mxu0  ;;  %v3760_v41 = vpack.c.bf16 %v2118_v30, %v2117_v28 }
 0x48c   : > { %v1569_v44 = vadd.f32 %v4801_v52, %v1568_v43  ;;  %v3230_v45 = vpop.f32.mrb[87].mxu0  ;;  %3352 = vmatmul.mubr.f32.gmra.mrb[114].mxu0 %v1589_v42  ;;  %v2119_v42 = vld [vmem:[%s5264_s16 + $0x70] sm:$0xff]  ;;  %v2120_v43 = vld [vmem:[%s5264_s16 + $0x78] sm:$0xff] }
 0x48d   : > { %3354 = vmatprep.mubr.msk.f32.mxu0 %vm3914_vm0, %v3915_v4  ;;  %3755 = vmatpush3.bf16.msra.mxu0 %v3754_v24  ;;  %v4942_v45 = vld [vmem:[%s5261_s13] ss:$0 sm:$0xff] }
 0x48e   : > { %v1590_v46 = vmax.f32 %v1569_v44, 0.0  ;;  %3756 = vmatprep.subr.bf16.mxu0 %v3913_v2  ;;  %v3763_v44 = vpack.c.bf16 %v2120_v43, %v2119_v42 }
 0x48f   : > { %v1573_v47 = vpop.f32.mrb[88].mxu0 }
 0x490   : > { %v1574_v48 = vadd.f32 %v4801_v52, %v1573_v47  ;;  %v3233_v49 = vpop.f32.mrb[89].mxu0  ;;  %3355 = vmatmul.mubr.f32.gmra.mrb[116].mxu0 %v1590_v46  ;;  %v4854_v52 = vpop.f32.mrb[62].mxu1 }
 0x491   : > { %3357 = vmatprep.mubr.msk.f32.mxu0 %vm3914_vm0, %v3915_v4  ;;  %v3243_v56 = vpop.f32.mrb[63].mxu1  ;;  %3758 = vmatpush3.bf16.msra.mxu0 %v3757_v27 }
 0x492   : > { %v1591_v51 = vmax.f32 %v1574_v48, 0.0  ;;  %v4857_v57 = vpop.f32.mrb[64].mxu1  ;;  %3759 = vmatprep.subr.bf16.mxu0 %v3913_v2 }
 0x493   : > { %v3246_v58 = vpop.f32.mrb[65].mxu1 }
 0x494   : > { %3358 = vmatmul.mubr.f32.gmra.mrb[118].mxu0 %v1591_v51  ;;  %v4859_v60 = vpop.f32.mrb[66].mxu1 }
 0x495   : > { %3469 = vmatprep.mubr.msk.f32.mxu0 %vm3914_vm0, %v3915_v4  ;;  %v3249_v61 = vpop.f32.mrb[67].mxu1  ;;  %3761 = vmatpush3.bf16.msra.mxu0 %v3760_v41 }
 0x496   : > { %v4861_v62 = vpop.f32.mrb[68].mxu1  ;;  %3762 = vmatprep.subr.bf16.mxu0 %v3913_v2 }
 0x497   : > { %v3252_v63 = vpop.f32.mrb[69].mxu1 }
 0x498   : > { %v4863_v0 = vpop.f32.mrb[70].mxu1 }
 0x499   : > { %v3255_v1 = vpop.f32.mrb[71].mxu1  ;;  %3764 = vmatpush3.bf16.msra.mxu0 %v3763_v44 }
 0x49a   : > { %v4865_v3 = vpop.f32.mrb[72].mxu1  ;;  %3765 = vmatprep.subr.bf16.mxu0 %v3913_v2 }
 0x49b   : > { %v3258_v5 = vpop.f32.mrb[73].mxu1 }
 0x49c   : > { %v4867_v7 = vpop.f32.mrb[74].mxu1 }
 0x49d   : > { %v3261_v17 = vpop.f32.mrb[75].mxu1 }
 0x49e   : > { %v4869_v21 = vpop.f32.mrb[76].mxu1 }
 0x49f   : > { %v3264_v25 = vpop.f32.mrb[77].mxu1 }
 0x4a0   : > { %v4871_v29 = vpop.f32.mrb[78].mxu1 }
 0x4a1   : > { %v3267_v31 = vpop.f32.mrb[79].mxu1 }
 0x4a2   : > { %v4873_v32 = vpop.f32.mrb[80].mxu1 }
 0x4a3   : > { %v3270_v33 = vpop.f32.mrb[81].mxu1 }
 0x4a4   : > { %v4875_v34 = vpop.f32.mrb[82].mxu1 }
 0x4a5   : > { %v3273_v35 = vpop.f32.mrb[83].mxu1 }
 0x4a6   : > { %v4877_v36 = vpop.f32.mrb[84].mxu1 }
 0x4a7   : > { %v3276_v37 = vpop.f32.mrb[85].mxu1 }
 0x4a8   : > { %v4879_v38 = vpop.f32.mrb[86].mxu1 }
 0x4a9   : > { %v3279_v39 = vpop.f32.mrb[87].mxu1 }
 0x4aa   : > { %v4881_v40 = vpop.f32.mrb[88].mxu1 }
 0x4ab   : > { %v3282_v50 = vpop.f32.mrb[89].mxu1 }
 0x52f   : > { %v1817_v46 = vpop.f32.mrb[90].mxu0 }
 0x530   : > { %v1818_v47 = vadd.f32 %v1817_v46, %v4759_v22  ;;  %v3317_v48 = vpop.f32.mrb[91].mxu0 }
 0x532   : > { %v1897_v49 = vadd.f32 %v4942_v45, %v1818_v47 }
 0x533   : > { %v1822_v51 = vpop.f32.mrb[92].mxu0 }
 0x534   : > { %v1912_v53 = vmax.f32 %v1897_v49, 0.0  ;;  %v1823_v54 = vadd.f32 %v1822_v51, %v4854_v52  ;;  %v3320_v55 = vpop.f32.mrb[93].mxu0 }
 0x536   : > { %v1898_v56 = vadd.f32 %v4942_v45, %v1823_v54  ;;  %3393 = vmatmul.mubr.f32.vlgmr.msra.gmra.mrb[90].mxu1 %v1912_v53 }
 0x537   : > { %v1827_v58 = vpop.f32.mrb[94].mxu0  ;;  %3395 = vmatprep.mubr.msk.f32.mxu1 %vm3914_vm0, %v3915_v4 }
 0x538   : > { %v1913_v61 = vmax.f32 %v1898_v56, 0.0  ;;  %v1828_v63 = vadd.f32 %v1827_v58, %v4857_v57  ;;  %v3323_v1 = vpop.f32.mrb[95].mxu0 }
 0x53a   : > { %v1899_v22 = vadd.f32 %v4942_v45, %v1828_v63  ;;  %3396 = vmatmul.mubr.f32.gmra.mrb[92].mxu1 %v1913_v61 }
 0x53b   : > { %v1832_v5 = vpop.f32.mrb[96].mxu0  ;;  %3398 = vmatprep.mubr.msk.f32.mxu1 %vm3914_vm0, %v3915_v4 }
 0x53c   : > { %v1914_v52 = vmax.f32 %v1899_v22, 0.0  ;;  %v1833_v17 = vadd.f32 %v1832_v5, %v4859_v60  ;;  %v3326_v25 = vpop.f32.mrb[97].mxu0 }
 0x53d   : > { %v2286_v25 = vld [vmem:[%s5266_s18 + $0x18] sm:$0xff] }
 0x53e   : > { %v1900_v31 = vadd.f32 %v4942_v45, %v1833_v17  ;;  %3399 = vmatmul.mubr.f32.gmra.mrb[94].mxu1 %v1914_v52 }
 0x53f   : > { %v1837_v33 = vpop.f32.mrb[98].mxu0  ;;  %3401 = vmatprep.mubr.msk.f32.mxu1 %vm3914_vm0, %v3915_v4 }
 0x540   : > { %v1915_v57 = vmax.f32 %v1900_v31, 0.0  ;;  %v1838_v35 = vadd.f32 %v1837_v33, %v4861_v62  ;;  %v3329_v37 = vpop.f32.mrb[99].mxu0  ;;  %v2287_v33 = vld [vmem:[%s5266_s18 + $0x20] sm:$0xff] }
 0x541   : > { %v2289_v37 = vld [vmem:[%s5266_s18 + $0x30] sm:$0xff] }
 0x542   : > { %v1901_v39 = vadd.f32 %v4942_v45, %v1838_v35  ;;  %3402 = vmatmul.mubr.f32.gmra.mrb[96].mxu1 %v1915_v57  ;;  %v2288_v57 = vld [vmem:[%s5266_s18 + $0x28] sm:$0xff] }
 0x543   : > { %v1842_v50 = vpop.f32.mrb[100].mxu0  ;;  %3404 = vmatprep.mubr.msk.f32.mxu1 %vm3914_vm0, %v3915_v4  ;;  %v3772_v35 = vpack.c.bf16 %v2288_v57, %v2287_v33 }
 0x544   : > { %v1916_v60 = vmax.f32 %v1901_v39, 0.0  ;;  %v1843_v8 = vadd.f32 %v1842_v50, %v4863_v0  ;;  %v3332_v9 = vpop.f32.mrb[101].mxu0  ;;  %v2290_v39 = vld [vmem:[%s5266_s18 + $0x38] sm:$0xff] }
 0x545   : > { %v3775_v50 = vpack.c.bf16 %v2290_v39, %v2289_v37 }
 0x546   : > { %v1902_v10 = vadd.f32 %v4942_v45, %v1843_v8  ;;  %3405 = vmatmul.mubr.f32.gmra.mrb[98].mxu1 %v1916_v60  ;;  %v2291_v60 = vld [vmem:[%s5266_s18 + $0x40] sm:$0xff]  ;;  %v2292_v8 = vld [vmem:[%s5266_s18 + $0x48] sm:$0xff] }
 0x547   : > { %v1847_v11 = vpop.f32.mrb[102].mxu0  ;;  %3407 = vmatprep.mubr.msk.f32.mxu1 %vm3914_vm0, %v3915_v4  ;;  %v3778_v9 = vpack.c.bf16 %v2292_v8, %v2291_v60 }
 0x548   : > { %v1917_v62 = vmax.f32 %v1902_v10, 0.0  ;;  %v1848_v12 = vadd.f32 %v1847_v11, %v4865_v3  ;;  %v3335_v14 = vpop.f32.mrb[103].mxu0  ;;  %v2293_v10 = vld [vmem:[%s5266_s18 + $0x50] sm:$0xff]  ;;  %v2294_v11 = vld [vmem:[%s5266_s18 + $0x58] sm:$0xff] }
 0x549   : > { %v2296_v14 = vld [vmem:[%s5266_s18 + $0x68] sm:$0xff] }
 0x54a   : > { %v1903_v15 = vadd.f32 %v4942_v45, %v1848_v12  ;;  %3408 = vmatmul.mubr.f32.gmra.mrb[100].mxu1 %v1917_v62  ;;  %v3781_v62 = vpack.c.bf16 %v2294_v11, %v2293_v10  ;;  %v2295_v12 = vld [vmem:[%s5266_s18 + $0x60] sm:$0xff] }
 0x54b   : > { %v1852_v59 = vpop.f32.mrb[104].mxu0  ;;  %3410 = vmatprep.mubr.msk.f32.mxu1 %vm3914_vm0, %v3915_v4 }
 0x54c   : > { %v1918_v0 = vmax.f32 %v1903_v15, 0.0  ;;  %v1853_v16 = vadd.f32 %v1852_v59, %v4867_v7  ;;  %v3338_v18 = vpop.f32.mrb[105].mxu0  ;;  %v3784_v15 = vpack.c.bf16 %v2296_v14, %v2295_v12  ;;  %v5056_v59 = vld [vmem:[%s5263_s15] ss:$0 sm:$0xff]  ;;  %v2297_v14 = vld [vmem:[%s5266_s18 + $0x70] sm:$0xff] }
 0x54e   : > { %v1904_v13 = vadd.f32 %v4942_v45, %v1853_v16  ;;  %3411 = vmatmul.mubr.f32.gmra.mrb[102].mxu1 %v1918_v0 }
 0x54f   : > { %v1857_v19 = vpop.f32.mrb[106].mxu0  ;;  %3413 = vmatprep.mubr.msk.f32.mxu1 %vm3914_vm0, %v3915_v4 }
 0x550   : > { %v1919_v3 = vmax.f32 %v1904_v13, 0.0  ;;  %v1858_v20 = vadd.f32 %v1857_v19, %v4869_v21  ;;  %v3341_v23 = vpop.f32.mrb[107].mxu0 }
 0x552   : > { %v1905_v24 = vadd.f32 %v4942_v45, %v1858_v20  ;;  %3414 = vmatmul.mubr.f32.gmra.mrb[104].mxu1 %v1919_v3 }
 0x553   : > { %v1862_v26 = vpop.f32.mrb[108].mxu0  ;;  %3416 = vmatprep.mubr.msk.f32.mxu1 %vm3914_vm0, %v3915_v4 }
 0x554   : > { %v1920_v7 = vmax.f32 %v1905_v24, 0.0  ;;  %v1863_v6 = vadd.f32 %v1862_v26, %v4871_v29  ;;  %v3344_v27 = vpop.f32.mrb[109].mxu0 }
 0x556   : > { %v1906_v28 = vadd.f32 %v4942_v45, %v1863_v6  ;;  %3417 = vmatmul.mubr.f32.gmra.mrb[106].mxu1 %v1920_v7 }
 0x557   : > { %v1867_v30 = vpop.f32.mrb[110].mxu0  ;;  %3419 = vmatprep.mubr.msk.f32.mxu1 %vm3914_vm0, %v3915_v4 }
 0x558   : > { %v1921_v21 = vmax.f32 %v1906_v28, 0.0  ;;  %v1868_v41 = vadd.f32 %v1867_v30, %v4873_v32  ;;  %v3347_v42 = vpop.f32.mrb[111].mxu0 }
 0x55a   : > { %v1907_v43 = vadd.f32 %v4942_v45, %v1868_v41  ;;  %3420 = vmatmul.mubr.f32.gmra.mrb[108].mxu1 %v1921_v21 }
 0x55b   : > { %v1872_v44 = vpop.f32.mrb[112].mxu0  ;;  %3422 = vmatprep.mubr.msk.f32.mxu1 %vm3914_vm0, %v3915_v4 }
 0x55c   : > { %v1922_v29 = vmax.f32 %v1907_v43, 0.0  ;;  %v1873_v46 = vadd.f32 %v1872_v44, %v4875_v34  ;;  %v3350_v47 = vpop.f32.mrb[113].mxu0 }
 0x55e   : > { %v1908_v48 = vadd.f32 %v4942_v45, %v1873_v46  ;;  %3423 = vmatmul.mubr.f32.gmra.mrb[110].mxu1 %v1922_v29 }
 0x55f   : > { %v1877_v49 = vpop.f32.mrb[114].mxu0  ;;  %3425 = vmatprep.mubr.msk.f32.mxu1 %vm3914_vm0, %v3915_v4 }
 0x560   : > { %v1923_v32 = vmax.f32 %v1908_v48, 0.0  ;;  %v1878_v51 = vadd.f32 %v1877_v49, %v4877_v36  ;;  %v3353_v53 = vpop.f32.mrb[115].mxu0 }
 0x562   : > { %v1909_v54 = vadd.f32 %v4942_v45, %v1878_v51  ;;  %3426 = vmatmul.mubr.f32.gmra.mrb[112].mxu1 %v1923_v32 }
 0x563   : > { %v1882_v55 = vpop.f32.mrb[116].mxu0  ;;  %3428 = vmatprep.mubr.msk.f32.mxu1 %vm3914_vm0, %v3915_v4 }
 0x564   : > { %v1924_v34 = vmax.f32 %v1909_v54, 0.0  ;;  %v1883_v56 = vadd.f32 %v1882_v55, %v4879_v38  ;;  %v3356_v58 = vpop.f32.mrb[117].mxu0  ;;  %v2283_v38 = vld [vmem:[%s5266_s18] sm:$0xff] }
 0x566   : > { %v1910_v61 = vadd.f32 %v4942_v45, %v1883_v56  ;;  %3429 = vmatmul.mubr.f32.gmra.mrb[114].mxu1 %v1924_v34 }
 0x567   : > { %v1887_v63 = vpop.f32.mrb[118].mxu0  ;;  %3431 = vmatprep.mubr.msk.f32.mxu1 %vm3914_vm0, %v3915_v4 }
 0x568   : > { %v1925_v36 = vmax.f32 %v1910_v61, 0.0  ;;  %v1888_v1 = vadd.f32 %v1887_v63, %v4881_v40  ;;  %v3359_v22 = vpop.f32.mrb[119].mxu0  ;;  %v2284_v40 = vld [vmem:[%s5266_s18 + $0x8] sm:$0xff] }
 0x569   : > { %v3766_v17 = vpack.c.bf16 %v2284_v40, %v2283_v38 }
 0x56a   : > { %v1911_v5 = vadd.f32 %v4942_v45, %v1888_v1  ;;  %3432 = vmatmul.mubr.f32.gmra.mrb[116].mxu1 %v1925_v36  ;;  %v2285_v45 = vld [vmem:[%s5266_s18 + $0x10] sm:$0xff] }
 0x56b   : > { %3434 = vmatprep.mubr.msk.f32.mxu1 %vm3914_vm0, %v3915_v4  ;;  %3797 = vmatpush3.bf16.msra.mxu1 %v3766_v17  ;;  %v3769_v31 = vpack.c.bf16 %v2286_v25, %v2285_v45 }
 0x56c   : > { %v1926_v52 = vmax.f32 %v1911_v5, 0.0  ;;  %3790 = vmatprep.subr.bf16.mxu1 %v3913_v2 }
 0x56e   : > { %3435 = vmatmul.mubr.f32.gmra.mrb[118].mxu1 %v1926_v52 }
 0x56f   : > { %3555 = vmatprep.mubr.msk.f32.mxu1 %vm3914_vm0, %v3915_v4  ;;  %3798 = vmatpush3.bf16.msra.mxu1 %v3769_v31 }
 0x570   : > { %3791 = vmatprep.subr.bf16.mxu1 %v3913_v2 }
 0x573   : > { %3799 = vmatpush3.bf16.msra.mxu1 %v3772_v35 }
 0x574   : > { %3792 = vmatprep.subr.bf16.mxu1 %v3913_v2 }
 0x577   : > { %3800 = vmatpush3.bf16.msra.mxu1 %v3775_v50 }
 0x578   : > { %3793 = vmatprep.subr.bf16.mxu1 %v3913_v2 }
 0x57b   : > { %3801 = vmatpush3.bf16.msra.mxu1 %v3778_v9 }
 0x57c   : > { %3794 = vmatprep.subr.bf16.mxu1 %v3913_v2 }
 0x57f   : > { %3802 = vmatpush3.bf16.msra.mxu1 %v3781_v62 }
 0x580   : > { %3795 = vmatprep.subr.bf16.mxu1 %v3913_v2 }
 0x583   : > { %3803 = vmatpush3.bf16.msra.mxu1 %v3784_v15 }
 0x584   : > { %3796 = vmatprep.subr.bf16.mxu1 %v3913_v2 }
 0x609   : > { %v2016_v0 = vpop.f32.mrb[90].mxu1 }
 0x60a   : > { %v2017_v16 = vadd.f32 %v5056_v59, %v2016_v0  ;;  %v3394_v18 = vpop.f32.mrb[91].mxu1 }
 0x60c   : > { %v2090_v13 = vmax.f32 %v2017_v16, 0.0 }
 0x60d   : > { %v2021_v19 = vpop.f32.mrb[92].mxu1 }
 0x60e   : > { %v2022_v3 = vadd.f32 %v5056_v59, %v2021_v19  ;;  %v3397_v20 = vpop.f32.mrb[93].mxu1  ;;  %3470 = vmatmul.mubr.f32.vlgmr.msra.gmra.mrb[120].mxu0 %v2090_v13 }
 0x60f   : > { %3472 = vmatprep.mubr.msk.f32.mxu0 %vm3914_vm0, %v3915_v4  ;;  %3767 = vmatpush3.bf16.msra.mxu0 %v3766_v17 }
 0x610   : > { %v2091_v23 = vmax.f32 %v2022_v3, 0.0  ;;  %3768 = vmatprep.subr.bf16.mxu0 %v3913_v2 }
 0x611   : > { %v2026_v24 = vpop.f32.mrb[94].mxu1 }
 0x612   : > { %v2027_v26 = vadd.f32 %v5056_v59, %v2026_v24  ;;  %v3400_v7 = vpop.f32.mrb[95].mxu1  ;;  %3473 = vmatmul.mubr.f32.gmra.mrb[122].mxu0 %v2091_v23 }
 0x613   : > { %3475 = vmatprep.mubr.msk.f32.mxu0 %vm3914_vm0, %v3915_v4  ;;  %3770 = vmatpush3.bf16.msra.mxu0 %v3769_v31 }
 0x614   : > { %v2092_v6 = vmax.f32 %v2027_v26, 0.0  ;;  %3771 = vmatprep.subr.bf16.mxu0 %v3913_v2 }
 0x615   : > { %v2031_v27 = vpop.f32.mrb[96].mxu1 }
 0x616   : > { %v2032_v28 = vadd.f32 %v5056_v59, %v2031_v27  ;;  %v3403_v30 = vpop.f32.mrb[97].mxu1  ;;  %3476 = vmatmul.mubr.f32.gmra.mrb[124].mxu0 %v2092_v6 }
 0x617   : > { %3478 = vmatprep.mubr.msk.f32.mxu0 %vm3914_vm0, %v3915_v4  ;;  %3773 = vmatpush3.bf16.msra.mxu0 %v3772_v35 }
 0x618   : > { %v2093_v21 = vmax.f32 %v2032_v28, 0.0  ;;  %3774 = vmatprep.subr.bf16.mxu0 %v3913_v2 }
 0x619   : > { %v2036_v41 = vpop.f32.mrb[98].mxu1 }
 0x61a   : > { %v2037_v42 = vadd.f32 %v5056_v59, %v2036_v41  ;;  %v3406_v43 = vpop.f32.mrb[99].mxu1  ;;  %3479 = vmatmul.mubr.f32.gmra.mrb[126].mxu0 %v2093_v21 }
 0x61b   : > { %3481 = vmatprep.mubr.msk.f32.mxu0 %vm3914_vm0, %v3915_v4  ;;  %3776 = vmatpush3.bf16.msra.mxu0 %v3775_v50 }
 0x61c   : > { %v2094_v44 = vmax.f32 %v2037_v42, 0.0  ;;  %3777 = vmatprep.subr.bf16.mxu0 %v3913_v2 }
 0x61d   : > { %v2041_v29 = vpop.f32.mrb[100].mxu1 }
 0x61e   : > { %v2042_v46 = vadd.f32 %v5056_v59, %v2041_v29  ;;  %v3409_v47 = vpop.f32.mrb[101].mxu1  ;;  %3482 = vmatmul.mubr.f32.gmra.mrb[128].mxu0 %v2094_v44 }
 0x61f   : > { %3484 = vmatprep.mubr.msk.f32.mxu0 %vm3914_vm0, %v3915_v4  ;;  %3779 = vmatpush3.bf16.msra.mxu0 %v3778_v9 }
 0x620   : > { %v2095_v48 = vmax.f32 %v2042_v46, 0.0  ;;  %3780 = vmatprep.subr.bf16.mxu0 %v3913_v2 }
 0x621   : > { %v2046_v49 = vpop.f32.mrb[102].mxu1 }
 0x622   : > { %v2047_v32 = vadd.f32 %v5056_v59, %v2046_v49  ;;  %v3412_v51 = vpop.f32.mrb[103].mxu1  ;;  %3485 = vmatmul.mubr.f32.gmra.mrb[130].mxu0 %v2095_v48 }
 0x623   : > { %3487 = vmatprep.mubr.msk.f32.mxu0 %vm3914_vm0, %v3915_v4  ;;  %3782 = vmatpush3.bf16.msra.mxu0 %v3781_v62 }
 0x624   : > { %v2096_v53 = vmax.f32 %v2047_v32, 0.0  ;;  %3783 = vmatprep.subr.bf16.mxu0 %v3913_v2 }
 0x625   : > { %v2051_v54 = vpop.f32.mrb[104].mxu1 }
 0x626   : > { %v2052_v55 = vadd.f32 %v5056_v59, %v2051_v54  ;;  %v3415_v34 = vpop.f32.mrb[105].mxu1  ;;  %3488 = vmatmul.mubr.f32.gmra.mrb[132].mxu0 %v2096_v53 }
 0x627   : > { %3490 = vmatprep.mubr.msk.f32.mxu0 %vm3914_vm0, %v3915_v4  ;;  %3785 = vmatpush3.bf16.msra.mxu0 %v3784_v15  ;;  %v2298_v15 = vld [vmem:[%s5266_s18 + $0x78] sm:$0xff] }
 0x628   : > { %v2097_v56 = vmax.f32 %v2052_v55, 0.0  ;;  %3786 = vmatprep.subr.bf16.mxu0 %v3913_v2  ;;  %v3787_v0 = vpack.c.bf16 %v2298_v15, %v2297_v14  ;;  %v2586_v15 = vld [vmem:[%s5267_s19] ss:$0 sm:$0xff] }
 0x629   : > { %v2056_v58 = vpop.f32.mrb[106].mxu1 }
 0x62a   : > { %v2057_v61 = vadd.f32 %v5056_v59, %v2056_v58  ;;  %v3418_v63 = vpop.f32.mrb[107].mxu1  ;;  %3491 = vmatmul.mubr.f32.gmra.mrb[134].mxu0 %v2097_v56  ;;  %3804 = vmatpush3.bf16.msra.mxu1 %v3787_v0 }
 0x62b   : > { %3493 = vmatprep.mubr.msk.f32.mxu0 %vm3914_vm0, %v3915_v4  ;;  %3788 = vmatpush3.bf16.msra.mxu0 %v3787_v0 }
 0x62c   : > { %v2098_v36 = vmax.f32 %v2057_v61, 0.0 }
 0x62d   : > { %v2061_v1 = vpop.f32.mrb[108].mxu1 }
 0x62e   : > { %v2062_v22 = vadd.f32 %v5056_v59, %v2061_v1  ;;  %v3421_v5 = vpop.f32.mrb[109].mxu1  ;;  %3494 = vmatmul.mubr.f32.gmra.mrb[136].mxu0 %v2098_v36 }
 0x62f   : > { %3496 = vmatprep.mubr.msk.f32.mxu0 %vm3914_vm0, %v3915_v4 }
 0x630   : > { %v2099_v52 = vmax.f32 %v2062_v22, 0.0 }
 0x631   : > { %v2066_v38 = vpop.f32.mrb[110].mxu1 }
 0x632   : > { %v2067_v2 = vadd.f32 %v5056_v59, %v2066_v38  ;;  %v3424_v40 = vpop.f32.mrb[111].mxu1  ;;  %3497 = vmatmul.mubr.f32.gmra.mrb[138].mxu0 %v2099_v52 }
 0x633   : > { %3499 = vmatprep.mubr.msk.f32.mxu0 %vm3914_vm0, %v3915_v4 }
 0x634   : > { %v2100_v17 = vmax.f32 %v2067_v2, 0.0 }
 0x635   : > { %v2071_v45 = vpop.f32.mrb[112].mxu1 }
 0x636   : > { %v2072_v25 = vadd.f32 %v5056_v59, %v2071_v45  ;;  %v3427_v31 = vpop.f32.mrb[113].mxu1  ;;  %3500 = vmatmul.mubr.f32.gmra.mrb[140].mxu0 %v2100_v17 }
 0x637   : > { %3502 = vmatprep.mubr.msk.f32.mxu0 %vm3914_vm0, %v3915_v4 }
 0x638   : > { %v2101_v33 = vmax.f32 %v2072_v25, 0.0 }
 0x639   : > { %v2076_v57 = vpop.f32.mrb[114].mxu1 }
 0x63a   : > { %v2077_v35 = vadd.f32 %v5056_v59, %v2076_v57  ;;  %v3430_v37 = vpop.f32.mrb[115].mxu1  ;;  %3503 = vmatmul.mubr.f32.gmra.mrb[142].mxu0 %v2101_v33 }
 0x63b   : > { %3505 = vmatprep.mubr.msk.f32.mxu0 %vm3914_vm0, %v3915_v4 }
 0x63c   : > { %v2102_v39 = vmax.f32 %v2077_v35, 0.0 }
 0x63d   : > { %v2081_v50 = vpop.f32.mrb[116].mxu1 }
 0x63e   : > { %v2082_v60 = vadd.f32 %v5056_v59, %v2081_v50  ;;  %v3433_v8 = vpop.f32.mrb[117].mxu1  ;;  %3506 = vmatmul.mubr.f32.gmra.mrb[144].mxu0 %v2102_v39 }
 0x63f   : > { %3508 = vmatprep.mubr.msk.f32.mxu0 %vm3914_vm0, %v3915_v4 }
 0x640   : > { %v2103_v9 = vmax.f32 %v2082_v60, 0.0 }
 0x641   : > { %v2086_v10 = vpop.f32.mrb[118].mxu1 }
 0x642   : > { %v2087_v11 = vadd.f32 %v5056_v59, %v2086_v10  ;;  %v3436_v62 = vpop.f32.mrb[119].mxu1  ;;  %3509 = vmatmul.mubr.f32.gmra.mrb[146].mxu0 %v2103_v9  ;;  %v5119_v59 = vld [vmem:[%s5265_s17] ss:$0 sm:$0xff] }
 0x643   : > { %3511 = vmatprep.mubr.msk.f32.mxu0 %vm3914_vm0, %v3915_v4 }
 0x644   : > { %v2104_v12 = vmax.f32 %v2087_v11, 0.0 }
 0x646   : > { %3512 = vmatmul.mubr.f32.gmra.mrb[148].mxu0 %v2104_v12 }
 0x647   : > { %3546 = vmatprep.mubr.msk.f32.mxu0 %vm3914_vm0, %v3915_v4 }
 0x6e1   : > { %v2194_v16 = vpop.f32.mrb[120].mxu0 }
 0x6e2   : > { %v2195_v18 = vadd.f32 %v5119_v59, %v2194_v16  ;;  %v3471_v13 = vpop.f32.mrb[121].mxu0 }
 0x6e4   : > { %v2268_v19 = vmax.f32 %v2195_v18, 0.0 }
 0x6e5   : > { %v2199_v3 = vpop.f32.mrb[122].mxu0 }
 0x6e6   : > { %v2200_v20 = vadd.f32 %v5119_v59, %v2199_v3  ;;  %v3474_v23 = vpop.f32.mrb[123].mxu0  ;;  %3547 = vmatmul.mubr.f32.vlgmr.msra.gmra.mrb[150].mxu0 %v2268_v19 }
 0x6e7   : > { %3549 = vmatprep.mubr.msk.f32.mxu0 %vm3914_vm0, %v3915_v4 }
 0x6e8   : > { %v2269_v24 = vmax.f32 %v2200_v20, 0.0 }
 0x6e9   : > { %v2204_v26 = vpop.f32.mrb[124].mxu0 }
 0x6ea   : > { %v2205_v7 = vadd.f32 %v5119_v59, %v2204_v26  ;;  %v3477_v6 = vpop.f32.mrb[125].mxu0  ;;  %3550 = vmatmul.mubr.f32.gmra.mrb[152].mxu0 %v2269_v24 }
 0x6eb   : > { %3552 = vmatprep.mubr.msk.f32.mxu0 %vm3914_vm0, %v3915_v4 }
 0x6ec   : > { %v2270_v27 = vmax.f32 %v2205_v7, 0.0 }
 0x6ed   : > { %v2209_v28 = vpop.f32.mrb[126].mxu0 }
 0x6ee   : > { %v2210_v30 = vadd.f32 %v5119_v59, %v2209_v28  ;;  %v3480_v21 = vpop.f32.mrb[127].mxu0  ;;  %3553 = vmatmul.mubr.f32.gmra.mrb[154].mxu0 %v2270_v27 }
 0x6f0   : > { %v2271_v41 = vmax.f32 %v2210_v30, 0.0 }
 0x6f1   : > { %v2214_v42 = vpop.f32.mrb[128].mxu0 }
 0x6f2   : > { %v2215_v43 = vadd.f32 %v5119_v59, %v2214_v42  ;;  %v3483_v44 = vpop.f32.mrb[129].mxu0  ;;  %3556 = vmatmul.mubr.f32.vlgmr.msra.gmra.mrb[120].mxu1 %v2271_v41 }
 0x6f3   : > { %3558 = vmatprep.mubr.msk.f32.mxu1 %vm3914_vm0, %v3915_v4 }
 0x6f4   : > { %v2272_v29 = vmax.f32 %v2215_v43, 0.0 }
 0x6f5   : > { %v2219_v46 = vpop.f32.mrb[130].mxu0 }
 0x6f6   : > { %v2220_v47 = vadd.f32 %v5119_v59, %v2219_v46  ;;  %v3486_v48 = vpop.f32.mrb[131].mxu0  ;;  %3559 = vmatmul.mubr.f32.gmra.mrb[122].mxu1 %v2272_v29 }
 0x6f7   : > { %3561 = vmatprep.mubr.msk.f32.mxu1 %vm3914_vm0, %v3915_v4 }
 0x6f8   : > { %v2273_v49 = vmax.f32 %v2220_v47, 0.0 }
 0x6f9   : > { %v2224_v32 = vpop.f32.mrb[132].mxu0 }
 0x6fa   : > { %v2225_v51 = vadd.f32 %v5119_v59, %v2224_v32  ;;  %v3489_v53 = vpop.f32.mrb[133].mxu0  ;;  %3562 = vmatmul.mubr.f32.gmra.mrb[124].mxu1 %v2273_v49 }
 0x6fb   : > { %3564 = vmatprep.mubr.msk.f32.mxu1 %vm3914_vm0, %v3915_v4 }
 0x6fc   : > { %v2274_v54 = vmax.f32 %v2225_v51, 0.0 }
 0x6fd   : > { %v2229_v55 = vpop.f32.mrb[134].mxu0 }
 0x6fe   : > { %v2230_v34 = vadd.f32 %v5119_v59, %v2229_v55  ;;  %v3492_v56 = vpop.f32.mrb[135].mxu0  ;;  %3565 = vmatmul.mubr.f32.gmra.mrb[126].mxu1 %v2274_v54 }
 0x6ff   : > { %3567 = vmatprep.mubr.msk.f32.mxu1 %vm3914_vm0, %v3915_v4 }
 0x700   : > { %v2275_v58 = vmax.f32 %v2230_v34, 0.0 }
 0x701   : > { %v2234_v61 = vpop.f32.mrb[136].mxu0 }
 0x702   : > { %v2235_v63 = vadd.f32 %v5119_v59, %v2234_v61  ;;  %v3495_v36 = vpop.f32.mrb[137].mxu0  ;;  %3568 = vmatmul.mubr.f32.gmra.mrb[128].mxu1 %v2275_v58 }
 0x703   : > { %3570 = vmatprep.mubr.msk.f32.mxu1 %vm3914_vm0, %v3915_v4 }
 0x704   : > { %v2276_v1 = vmax.f32 %v2235_v63, 0.0 }
 0x705   : > { %v2239_v22 = vpop.f32.mrb[138].mxu0 }
 0x706   : > { %v2240_v5 = vadd.f32 %v5119_v59, %v2239_v22  ;;  %v3498_v52 = vpop.f32.mrb[139].mxu0  ;;  %3571 = vmatmul.mubr.f32.gmra.mrb[130].mxu1 %v2276_v1 }
 0x707   : > { %3573 = vmatprep.mubr.msk.f32.mxu1 %vm3914_vm0, %v3915_v4 }
 0x708   : > { %v2277_v38 = vmax.f32 %v2240_v5, 0.0 }
 0x709   : > { %v2244_v2 = vpop.f32.mrb[140].mxu0 }
 0x70a   : > { %v2245_v40 = vadd.f32 %v5119_v59, %v2244_v2  ;;  %v3501_v17 = vpop.f32.mrb[141].mxu0  ;;  %3574 = vmatmul.mubr.f32.gmra.mrb[132].mxu1 %v2277_v38 }
 0x70b   : > { %3576 = vmatprep.mubr.msk.f32.mxu1 %vm3914_vm0, %v3915_v4 }
 0x70c   : > { %v2278_v45 = vmax.f32 %v2245_v40, 0.0 }
 0x70d   : > { %v2249_v25 = vpop.f32.mrb[142].mxu0 }
 0x70e   : > { %v2250_v31 = vadd.f32 %v5119_v59, %v2249_v25  ;;  %v3504_v33 = vpop.f32.mrb[143].mxu0  ;;  %3577 = vmatmul.mubr.f32.gmra.mrb[134].mxu1 %v2278_v45 }
 0x70f   : > { %3579 = vmatprep.mubr.msk.f32.mxu1 %vm3914_vm0, %v3915_v4 }
 0x710   : > { %v2279_v57 = vmax.f32 %v2250_v31, 0.0 }
 0x711   : > { %v2254_v35 = vpop.f32.mrb[144].mxu0 }
 0x712   : > { %v2255_v37 = vadd.f32 %v5119_v59, %v2254_v35  ;;  %v3507_v39 = vpop.f32.mrb[145].mxu0  ;;  %3580 = vmatmul.mubr.f32.gmra.mrb[136].mxu1 %v2279_v57 }
 0x713   : > { %3582 = vmatprep.mubr.msk.f32.mxu1 %vm3914_vm0, %v3915_v4 }
 0x714   : > { %v2280_v50 = vmax.f32 %v2255_v37, 0.0 }
 0x715   : > { %v2259_v60 = vpop.f32.mrb[146].mxu0 }
 0x716   : > { %v2260_v8 = vadd.f32 %v5119_v59, %v2259_v60  ;;  %v3510_v9 = vpop.f32.mrb[147].mxu0  ;;  %3583 = vmatmul.mubr.f32.gmra.mrb[138].mxu1 %v2280_v50 }
 0x717   : > { %3585 = vmatprep.mubr.msk.f32.mxu1 %vm3914_vm0, %v3915_v4 }
 0x718   : > { %v2281_v10 = vmax.f32 %v2260_v8, 0.0 }
 0x719   : > { %v2264_v11 = vpop.f32.mrb[148].mxu0 }
 0x71a   : > { %v2265_v62 = vadd.f32 %v5119_v59, %v2264_v11  ;;  %v3513_v12 = vpop.f32.mrb[149].mxu0  ;;  %3586 = vmatmul.mubr.f32.gmra.mrb[140].mxu1 %v2281_v10 }
 0x71b   : > { %3588 = vmatprep.mubr.msk.f32.mxu1 %vm3914_vm0, %v3915_v4 }
 0x71c   : > { %v2282_v14 = vmax.f32 %v2265_v62, 0.0 }
 0x71e   : > { %3589 = vmatmul.mubr.f32.gmra.mrb[142].mxu1 %v2282_v14 }
 0x7b9   : > { %v2372_v0 = vpop.f32.mrb[150].mxu0 }
 0x7ba   : > { %v2373_v16 = vadd.f32 %v2586_v15, %v2372_v0  ;;  %v3548_v18 = vpop.f32.mrb[151].mxu0 }
 0x7bc   : > { %2446 = vst [vmem:[%s5168_s24] sm:$0xff] %v2373_v16 }
 0x7bd   : > { %v2377_v4 = vpop.f32.mrb[152].mxu0 }
 0x7be   : > { %v2378_v59 = vadd.f32 %v2586_v15, %v2377_v4  ;;  %v3551_v13 = vpop.f32.mrb[153].mxu0 }
 0x7c0   : > { %2447 = vst [vmem:[%s5168_s24 + $0x8] sm:$0xff] %v2378_v59 }
 0x7c1   : > { %v2382_v19 = vpop.f32.mrb[154].mxu0 }
 0x7c2   : > { %v2383_v3 = vadd.f32 %v2586_v15, %v2382_v19  ;;  %v3554_v20 = vpop.f32.mrb[155].mxu0 }
 0x7c4   : > { %2448 = vst [vmem:[%s5168_s24 + $0x10] sm:$0xff] %v2383_v3 }
 0x7c5   : > { %v2387_v23 = vpop.f32.mrb[120].mxu1 }
 0x7c6   : > { %v2388_v24 = vadd.f32 %v2586_v15, %v2387_v23  ;;  %v3557_v26 = vpop.f32.mrb[121].mxu1 }
 0x7c8   : > { %2449 = vst [vmem:[%s5168_s24 + $0x18] sm:$0xff] %v2388_v24 }
 0x7c9   : > { %v2392_v7 = vpop.f32.mrb[122].mxu1 }
 0x7ca   : > { %v2393_v6 = vadd.f32 %v2586_v15, %v2392_v7  ;;  %v3560_v27 = vpop.f32.mrb[123].mxu1 }
 0x7cc   : > { %2450 = vst [vmem:[%s5168_s24 + $0x20] sm:$0xff] %v2393_v6 }
 0x7cd   : > { %v2397_v28 = vpop.f32.mrb[124].mxu1 }
 0x7ce   : > { %v2398_v30 = vadd.f32 %v2586_v15, %v2397_v28  ;;  %v3563_v21 = vpop.f32.mrb[125].mxu1 }
 0x7d0   : > { %2451 = vst [vmem:[%s5168_s24 + $0x28] sm:$0xff] %v2398_v30 }
 0x7d1   : > { %v2402_v41 = vpop.f32.mrb[126].mxu1 }
 0x7d2   : > { %v2403_v42 = vadd.f32 %v2586_v15, %v2402_v41  ;;  %v3566_v43 = vpop.f32.mrb[127].mxu1 }
 0x7d4   : > { %2452 = vst [vmem:[%s5168_s24 + $0x30] sm:$0xff] %v2403_v42 }
 0x7d5   : > { %v2407_v44 = vpop.f32.mrb[128].mxu1 }
 0x7d6   : > { %v2408_v29 = vadd.f32 %v2586_v15, %v2407_v44  ;;  %v3569_v46 = vpop.f32.mrb[129].mxu1 }
 0x7d8   : > { %2453 = vst [vmem:[%s5168_s24 + $0x38] sm:$0xff] %v2408_v29 }
 0x7d9   : > { %v2412_v47 = vpop.f32.mrb[130].mxu1 }
 0x7da   : > { %v2413_v48 = vadd.f32 %v2586_v15, %v2412_v47  ;;  %v3572_v49 = vpop.f32.mrb[131].mxu1 }
 0x7dc   : > { %2454 = vst [vmem:[%s5168_s24 + $0x40] sm:$0xff] %v2413_v48 }
 0x7dd   : > { %v2417_v32 = vpop.f32.mrb[132].mxu1 }
 0x7de   : > { %v2418_v51 = vadd.f32 %v2586_v15, %v2417_v32  ;;  %v3575_v53 = vpop.f32.mrb[133].mxu1 }
 0x7e0   : > { %2455 = vst [vmem:[%s5168_s24 + $0x48] sm:$0xff] %v2418_v51 }
 0x7e1   : > { %v2422_v54 = vpop.f32.mrb[134].mxu1 }
 0x7e2   : > { %v2423_v55 = vadd.f32 %v2586_v15, %v2422_v54  ;;  %v3578_v34 = vpop.f32.mrb[135].mxu1 }
 0x7e4   : > { %2456 = vst [vmem:[%s5168_s24 + $0x50] sm:$0xff] %v2423_v55 }
 0x7e5   : > { %v2427_v56 = vpop.f32.mrb[136].mxu1 }
 0x7e6   : > { %v2428_v58 = vadd.f32 %v2586_v15, %v2427_v56  ;;  %v3581_v61 = vpop.f32.mrb[137].mxu1 }
 0x7e8   : > { %2457 = vst [vmem:[%s5168_s24 + $0x58] sm:$0xff] %v2428_v58 }
 0x7e9   : > { %v2432_v63 = vpop.f32.mrb[138].mxu1 }
 0x7ea   : > { %v2433_v36 = vadd.f32 %v2586_v15, %v2432_v63  ;;  %v3584_v1 = vpop.f32.mrb[139].mxu1 }
 0x7ec   : > { %2458 = vst [vmem:[%s5168_s24 + $0x60] sm:$0xff] %v2433_v36 }
 0x7ed   : > { %v2437_v22 = vpop.f32.mrb[140].mxu1 }
 0x7ee   : > { %v2438_v5 = vadd.f32 %v2586_v15, %v2437_v22  ;;  %v3587_v52 = vpop.f32.mrb[141].mxu1  ;;  %2468 = sbr.rel (!%p4062_p5) target bundleno = 2065 (0x811), region = 104 }
 0x7f0   : > { %2459 = vst [vmem:[%s5168_s24 + $0x68] sm:$0xff] %v2438_v5 }
 0x7f1   : > { %v2442_v38 = vpop.f32.mrb[142].mxu1 }
 0x7f2   : > { %v2443_v2 = vadd.f32 %v2586_v15, %v2442_v38  ;;  %v3590_v40 = vpop.f32.mrb[143].mxu1 }
 0x7f4   : > { %2460 = vst [vmem:[%s5168_s24 + $0x70] sm:$0xff] %v2443_v2 }
 0x7f5   : > { %s5305_s0 = smov (!%p2471_p11, %s2470_s0), 15 }
 0x7f6   : > { %s5192_s1 = sshll.u32 %s5305_s0, 7 }
 0x7f7   : > { %s2475_s25 = ssub.s32 1920, %s5192_s1 }
 0x7f8   : > { %2476 = vsyncadd %s5187_s21, %s2475_s25  ;;  %p2588_p12 = scmp.ne.s32.totalorder %s5192_s1, 0  ;;  %s2594_s3 = smul.u32 1920, %s4045_s2 }
 0x7f9   : > { %s2481_s29 = sshll.u32 %s5168_s24, 4  ;;  %s3916_s30 = smov [#allocation2]   ;;  %s5204_s29 = int_to_ptr.vmem [resolvable:$true] %s2481_s29 }
 0x7fa   : > { %s5202_s23 = scalar_lea.hbm %s5268_s20, %s2594_s3  ;;  %s3849_s27 = scalar_lea.vmem %s5204_s29, %s5192_s1 }
 0x7fb   : > { %p3850_p13 = scmp.ne.s32.totalorder %s5204_s29, %s3849_s27  ;;  %s3853_s0 = sshll.u32 %s3916_s30, 4  ;;  %s3854_s0 = int_to_ptr.vmem [resolvable:$false] %s3853_s0 }
 0x7fc   : > { %s3855_s2 = scalar_lea.vmem %s3854_s0, 3840  ;;  %p3856_p2 = scmp.lt.s32.totalorder %s5204_s29, %s3854_s0 }
 0x7fd   : > { %p3851_p0 = pnand %p3850_p13, %p2588_p12  ;;  %p3857_p3 = scmp.lt.s32.totalorder %s3855_s2, %s3849_s27 }
 0x7ff   : > { %p3852_p1 = pneg %p3851_p0  ;;  %p3858_p4 = por %p3857_p3, %p3856_p2 }
 0x801   : > { %p3859_p5 = pnand %p3858_p4, %p3852_p1 }
 0x803   : > { %3862 = shalt.err (!%p3859_p5)
}
 0x804   : > { %s3863_s24 = scalar_lea.hbm %s5202_s23, %s5192_s1  ;;  %s3867_s4 = scalar_lea.hbm %s5268_s20, 16000 }
 0x805   : > { %p3864_p7 = scmp.ne.s32.totalorder %s5202_s23, %s3863_s24  ;;  %p3868_p10 = scmp.lt.u32.totalorder %s5202_s23, %s5268_s20 }
 0x806   : > { %p3869_p11 = scmp.lt.u32.totalorder %s3867_s4, %s3863_s24  ;;  %p3871_p0 = scmp.lt.u32.totalorder %s3863_s24, %s5202_s23 }
 0x807   : > { %p3865_p8 = pnand %p3864_p7, %p2588_p12 }
 0x808   : > { %p3870_p13 = por %p3869_p11, %p3868_p10 }
 0x809   : > { %p3866_p9 = pneg %p3865_p8 }
 0x80a   : > { %p3872_p1 = por %p3871_p0, %p3870_p13 }
 0x80c   : > { %p3873_p2 = pnand %p3872_p1, %p3866_p9 }
 0x80e   : > { %3876 = shalt.err (!%p3873_p2)
}
 0x80f   : > { %s3917_s30 = smov 128   ;;  %s3918_s0 = smov 8  }
 0x810   : > { %2487 = dma.vmem_to_hbm [thread:$0]  (%p2588_p12), %s5204_s29, %s5192_s1, %s5202_s23, %s5187_s21, %s3917_s30, %s3917_s30, %s3918_s0  }
 0x811 PF: > { %s5296_s2 = sld [smem:[#allocation7_spill]]  ;;  %s5297_s25 = sld [smem:[#allocation5_spill]] }
 0x817   : > { %p3811_p3 = scmp.ge.s32.totalorder %s5296_s2, 2  ;;  %s2496_s4 = sand.u32 1, %s5297_s25  }
 0x818   : > { %s2497_s24 = scalar_lea.sflag [#allocation3], %s2496_s4 }
 0x819   : > { %p3808_p4 = pnand %p3811_p3, %p4066_p6 }
 0x81b   : > { %3894 = dma.done.wait (!%p3808_p4), %s2497_s24, 1920  }
 0x81c   : > { %3896 = vsyncadd (!%p3808_p4), %s2497_s24, 4294965376  ;;  %s5299_s24 = sld [smem:[#allocation8_spill]]  ;;  %s5300_s26 = sld [smem:[#allocation6_spill]] }
 0x81d   : > { %s5301_s23 = sld [smem:[#allocation9_spill]]  ;;  %s5302_s1 = smov %s3903_s22 }
 0x822   : > { %p30_p5 = scmp.ge.s32.totalorder %s5299_s24, 11   ;;  %s5303_s22 = smov %s5300_s26 }
 0x824   :  { %32 = sbr.rel (!%p30_p5) target bundleno = 9 (0x9), region = 135 }
 0x82b   :  { %2502 = vsyncpa [#allocation3], 1 }
 0x82c   :  { %2504 = vsyncpa [#allocation3 + $0x1], 1 }

// kernel: tpu_custom_call.1
= control target key start
LH: loop header
LB: loop body
LE: loop exit
PB: predicated region body
PF: predicated region fallthrough
CT: control target
= control target key end

     0   :  { %s5248_s0 = inlined_call_operand.vmem [shape: f32[1000,16], index: 0, kind: input, shape index: {}]   ;;  %s5249_s1 = inlined_call_operand.vmem [shape: f32[16,128], index: 1, kind: input, shape index: {}]   ;;  %s5250_s2 = inlined_call_operand.vmem [shape: f32[1,128], index: 2, kind: input, shape index: {}]   ;;  %s5251_s3 = inlined_call_operand.vmem [shape: f32[128,128], index: 3, kind: input, shape index: {}]   ;;  %s5252_s4 = inlined_call_operand.vmem [shape: f32[1,128], index: 4, kind: input, shape index: {}]   ;;  %s5253_s5 = inlined_call_operand.vmem [shape: f32[128,128], index: 5, kind: input, shape index: {}]   ;;  %s5254_s6 = inlined_call_operand.vmem [shape: f32[1,128], index: 6, kind: input, shape index: {}]   ;;  %s5255_s7 = inlined_call_operand.vmem [shape: f32[128,128], index: 7, kind: input, shape index: {}]   ;;  %s5256_s8 = inlined_call_operand.vmem [shape: f32[1,128], index: 8, kind: input, shape index: {}]   ;;  %s5257_s9 = inlined_call_operand.vmem [shape: f32[128,128], index: 9, kind: input, shape index: {}]   ;;  %s5258_s10 = inlined_call_operand.vmem [shape: f32[1,128], index: 10, kind: input, shape index: {}]   ;;  %s5259_s11 = inlined_call_operand.vmem [shape: f32[128,128], index: 11, kind: input, shape index: {}]   ;;  %s5260_s12 = inlined_call_operand.vmem [shape: f32[16,128], index: 12, kind: input, shape index: {}]   ;;  %s5261_s13 = inlined_call_operand.vmem [shape: f32[1,128], index: 13, kind: input, shape index: {}]   ;;  %s5262_s14 = inlined_call_operand.vmem [shape: f32[128,128], index: 14, kind: input, shape index: {}]   ;;  %s5263_s15 = inlined_call_operand.vmem [shape: f32[1,128], index: 15, kind: input, shape index: {}]   ;;  %s5264_s16 = inlined_call_operand.vmem [shape: f32[128,128], index: 16, kind: input, shape index: {}]   ;;  %s5265_s17 = inlined_call_operand.vmem [shape: f32[1,128], index: 17, kind: input, shape index: {}]   ;;  %s5266_s18 = inlined_call_operand.vmem [shape: f32[128,128], index: 18, kind: input, shape index: {}]   ;;  %s5267_s19 = inlined_call_operand.vmem [shape: f32[1,128], index: 19, kind: input, shape index: {}]   ;;  %s5268_s20 = inlined_call_operand.hbm [shape: f32[1000,128], index: 20, kind: output, shape index: {}]  }
   0x1   :  { %5278 = sst [smem:[#allocation11_spill]] %s5248_s0 }
   0x2   :  { %5279 = sst [smem:[#allocation12_spill]] %s5249_s1 }
   0x3   :  { %5280 = sst [smem:[#allocation13_spill]] %s5250_s2 }
   0x4   :  { %5281 = sst [smem:[#allocation14_spill]] %s5251_s3 }
   0x5   :  { %5282 = sst [smem:[#allocation15_spill]] %s5252_s4 }
   0x6   :  { %25 = vsyncpa [#allocation3], 0 }
   0x7   :  { %27 = vsyncpa [#allocation3 + $0x1], 0  ;;  %s4024_s1 = smov 0   ;;  %s4026_s22 = smov 0  }
   0x8   :  { %s4028_s23 = smov 0   ;;  %s4030_s24 = smov 0  }
   0x9 LB: > { %5283 = sst [smem:[#allocation5_spill]] %s3899_s1  ;;  %s4045_s2 = sadd.s32 4294967295, %s3911_s24   ;;  %s3911_s24 = sphi %s4030_s24, %s5299_s24   ;;  %s3907_s23 = sphi %s4028_s23, %s5301_s23   ;;  %s3903_s22 = sphi %s4026_s22, %s5303_s22   ;;  %s3899_s1 = sphi %s4024_s1, %s5302_s1  }
   0xa   : > { %5284 = sst [smem:[#allocation6_spill]] %s3907_s23  ;;  %s2543_s25 = sadd.s32 4294967294, %s3911_s24  }
   0xb   : > { %5285 = sst [smem:[#allocation7_spill]] %s3911_s24  ;;  %s4049_s3 = sadd.s32 1, %s3911_s24  }
   0xc   : > { %5286 = sst [smem:[#allocation8_spill]] %s4049_s3  ;;  %s465_s26 = sadd.s32 1, %s3907_s23 }
   0xd   : > { %s462_s27 = ssub.s32 %s3911_s24, %s4049_s3  ;;  %p475_p0 = scmp.ne.s32.totalorder %s3907_s23, %s3903_s22 }
   0xe   : > { %p463_p1 = scmp.eq.s32.totalorder %s462_s27, 0  ;;  %p476_p2 = scmp.eq.s32.totalorder %s4045_s2, 8 }
   0xf   : > { %p481_p3 = scmp.ne.s32.totalorder %s3903_s22, %s3899_s1  ;;  %p482_p4 = scmp.eq.s32.totalorder %s2543_s25, 8 }
  0x10   : > { %s4060_s28 = scalar_select %p463_p1, %s3907_s23, %s465_s26  }
  0x11   : > { %p4062_p5 = por %p476_p2, %p475_p0  ;;  %p4066_p6 = por %p482_p4, %p481_p3 }
  0x12   : > { %5287 = sst [smem:[#allocation9_spill]] %s4060_s28  ;;  %p2546_p7 = scmp.ge.s32.totalorder %s3911_s24, 1 }
  0x13   : > { %s5289_s29 = scalar_select %p4066_p6, 1, 0 }
  0x14   : > { %p574_p8 = scmp.lt.s32.totalorder %s3911_s24, 10 }
  0x15   : > { %5290 = sst [smem:[#allocation10_spill]] %s5289_s29 }
  0x16   : > { %p575_p9 = pnand %p2546_p7, %p574_p8 }
  0x17   : > { %s5291_s21 = sld [smem:[#allocation12_spill]] (!%p575_p9)  ;;  %s4079_s27 = smul.u32 (!%p575_p9), 15, %s4045_s2  ;;  %v3913_v2 = vmov (!%p575_p9), 0.0|0.0   ;;  %vm3914_vm0 = vmmov (!%p575_p9), 0   ;;  %v3915_v4 = vmov (!%p575_p9), 0.0   ;;  %vm679_vm1 = vcmask (!%p575_p9), 130048  }
  0x18   : > { %578 = sbr.rel (%p575_p9) target bundleno = 2065 (0x811), region = 100  ;;  %3591 = vmatprep.subr.bf16.mxu0 (!%p575_p9), %v3913_v2  ;;  %2881 = vmatprep.mubr.msk.f32.mxu0 (!%p575_p9), %vm3914_vm0, %v3915_v4  ;;  %s5292_s28 = sld [smem:[#allocation14_spill]] (!%p575_p9)  ;;  %v1058_v44 = vld [vmem:[%s5253_s5] sm:$0xff] (!%p575_p9)  ;;  %v1059_v45 = vld [vmem:[%s5253_s5 + $0x8] sm:$0xff] (!%p575_p9)  ;;  %v1060_v46 = vld [vmem:[%s5253_s5 + $0x10] sm:$0xff] (!%p575_p9) }
  0x19   : > { %p641_p10 = scmp.lt.s32.totalorder (!%p575_p9), %s4079_s27, 124  ;;  %3594 = vmatprep.subr.bf16.mxu1 (!%p575_p9), %v3913_v2  ;;  %2958 = vmatprep.mubr.msk.f32.mxu1 (!%p575_p9), %vm3914_vm0, %v3915_v4  ;;  %s5293_s1 = sld [smem:[#allocation11_spill]] (!%p575_p9)  ;;  %v3619_v47 = vpack.c.bf16 (!%p575_p9), %v1059_v45, %v1058_v44  ;;  %v1061_v48 = vld [vmem:[%s5253_s5 + $0x18] sm:$0xff] (!%p575_p9)  ;;  %v1062_v50 = vld [vmem:[%s5253_s5 + $0x20] sm:$0xff] (!%p575_p9)  ;;  %v1063_v51 = vld [vmem:[%s5253_s5 + $0x28] sm:$0xff] (!%p575_p9) }
  0x1a   : > { %v3622_v49 = vpack.c.bf16 (!%p575_p9), %v1061_v48, %v1060_v46  ;;  %v3625_v52 = vpack.c.bf16 (!%p575_p9), %v1063_v51, %v1062_v50  ;;  %v1064_v53 = vld [vmem:[%s5253_s5 + $0x30] sm:$0xff] (!%p575_p9)  ;;  %v1065_v54 = vld [vmem:[%s5253_s5 + $0x38] sm:$0xff] (!%p575_p9)  ;;  %v1066_v56 = vld [vmem:[%s5253_s5 + $0x40] sm:$0xff] (!%p575_p9)  ;;  %s5294_s25 = sld [smem:[#allocation13_spill]] (!%p575_p9)  ;;  %s633_s29 = sand.u32 (!%p575_p9), 1, %s3903_s22  }
  0x1b   : > { %v3628_v55 = vpack.c.bf16 (!%p575_p9), %v1065_v54, %v1064_v53  ;;  %v1067_v57 = vld [vmem:[%s5253_s5 + $0x48] sm:$0xff] (!%p575_p9)  ;;  %v1068_v59 = vld [vmem:[%s5253_s5 + $0x50] sm:$0xff] (!%p575_p9)  ;;  %v1069_v60 = vld [vmem:[%s5253_s5 + $0x58] sm:$0xff] (!%p575_p9)  ;;  %s3805_s26 = smul.u32 (!%p575_p9), 120, %s633_s29 }
  0x1c   : > { %v3631_v58 = vpack.c.bf16 (!%p575_p9), %v1067_v57, %v1066_v56  ;;  %v3634_v61 = vpack.c.bf16 (!%p575_p9), %v1069_v60, %v1068_v59  ;;  %v1070_v62 = vld [vmem:[%s5253_s5 + $0x60] sm:$0xff] (!%p575_p9)  ;;  %v1071_v63 = vld [vmem:[%s5253_s5 + $0x68] sm:$0xff] (!%p575_p9) }
  0x1d   : > { %v670_v0 = vld [vmem:[%s5291_s21] sm:$0xff] (!%p575_p9)  ;;  %v671_v1 = vld [vmem:[%s5291_s21 + $0x8] sm:$0xff] (!%p575_p9)  ;;  %s5187_s21 = scalar_lea.sflag (!%p575_p9), [#allocation3], %s633_s29 }
  0x1e   : > { %v3592_v3 = vpack.c.bf16 (!%p575_p9), %v671_v1, %v670_v0  ;;  %v880_v5 = vld [vmem:[%s5292_s28] sm:$0xff] (!%p575_p9)  ;;  %v881_v6 = vld [vmem:[%s5292_s28 + $0x8] sm:$0xff] (!%p575_p9)  ;;  %v882_v7 = vld [vmem:[%s5292_s28 + $0x10] sm:$0xff] (!%p575_p9)  ;;  %v3637_v0 = vpack.c.bf16 (!%p575_p9), %v1071_v63, %v1070_v62 }
  0x1f   : > { %v3595_v8 = vpack.c.bf16 %v881_v6, %v880_v5  ;;  %v883_v9 = vld [vmem:[%s5292_s28 + $0x18] sm:$0xff]  ;;  %s642_s30 = scalar_select %p641_p10, %s4079_s27, 124  ;;  %v884_v11 = vld [vmem:[%s5292_s28 + $0x20] sm:$0xff]  ;;  %v885_v12 = vld [vmem:[%s5292_s28 + $0x28] sm:$0xff] }
  0x20   : > { %3593 = vmatpush3.bf16.msra.mxu0 %v3592_v3  ;;  %v3598_v10 = vpack.c.bf16 %v883_v9, %v882_v7  ;;  %v3601_v14 = vpack.c.bf16 %v885_v12, %v884_v11  ;;  %v886_v15 = vld [vmem:[%s5292_s28 + $0x30] sm:$0xff]  ;;  %v887_v16 = vld [vmem:[%s5292_s28 + $0x38] sm:$0xff]  ;;  %v888_v19 = vld [vmem:[%s5292_s28 + $0x40] sm:$0xff]  ;;  %s2470_s0 = ssub.s32 (%p4062_p5), 125, %s4079_s27 }
  0x21   : > { %3596 = vmatpush3.bf16.msra.mxu1 %v3595_v8  ;;  %3618 = vmatprep.subr.bf16.mxu0 %v3913_v2  ;;  %s2547_s3 = sshll.u32 %s642_s30, 3  ;;  %v3604_v18 = vpack.c.bf16 %v887_v16, %v886_v15  ;;  %v889_v20 = vld [vmem:[%s5292_s28 + $0x48] sm:$0xff]  ;;  %v890_v23 = vld [vmem:[%s5292_s28 + $0x50] sm:$0xff]  ;;  %v891_v24 = vld [vmem:[%s5292_s28 + $0x58] sm:$0xff]  ;;  %s5295_s30 = sld [smem:[#allocation15_spill]] }
  0x22   : > { %3597 = vmatprep.subr.bf16.mxu1 %v3913_v2  ;;  %s4112_s24 = scalar_lea.vmem %s5293_s1, %s2547_s3  ;;  %v3607_v22 = vpack.c.bf16 %v889_v20, %v888_v19  ;;  %v3610_v26 = vpack.c.bf16 %v891_v24, %v890_v23  ;;  %v892_v27 = vld [vmem:[%s5292_s28 + $0x60] sm:$0xff]  ;;  %v893_v28 = vld [vmem:[%s5292_s28 + $0x68] sm:$0xff]  ;;  %v894_v41 = vld [vmem:[%s5292_s28 + $0x70] sm:$0xff]  ;;  %p2471_p11 = scmp.lt.s32.totalorder (%p4062_p5), %s2470_s0, 15 }
  0x23   : > { %v4115_v13 = vld [vmem:[%s4112_s24] sm:$0xff]  ;;  %v4129_v17 = vld [vmem:[%s4112_s24 + $0x8] sm:$0xff]  ;;  %v4143_v21 = vld [vmem:[%s4112_s24 + $0x10] sm:$0xff]  ;;  %v3613_v30 = vpack.c.bf16 %v893_v28, %v892_v27 }
  0x24   : > { %2882 = vmatmul.mubr.msk.f32.vlgmr.msra.gmra.mrb[0].mxu0 %vm679_vm1, %v4115_v13  ;;  %v4157_v25 = vld [vmem:[%s4112_s24 + $0x18] sm:$0xff]  ;;  %v4171_v29 = vld [vmem:[%s4112_s24 + $0x20] sm:$0xff]  ;;  %v4179_v31 = vld [vmem:[%s4112_s24 + $0x28] sm:$0xff] }
  0x25   : > { %3599 = vmatpush3.bf16.msra.mxu1 %v3598_v10  ;;  %2884 = vmatprep.mubr.msk.f32.mxu0 %vm3914_vm0, %v3915_v4  ;;  %v4187_v32 = vld [vmem:[%s4112_s24 + $0x30] sm:$0xff]  ;;  %v4194_v33 = vld [vmem:[%s4112_s24 + $0x38] sm:$0xff]  ;;  %v4201_v34 = vld [vmem:[%s4112_s24 + $0x40] sm:$0xff] }
  0x26   : > { %3600 = vmatprep.subr.bf16.mxu1 %v3913_v2  ;;  %v4208_v35 = vld [vmem:[%s4112_s24 + $0x48] sm:$0xff]  ;;  %v4215_v36 = vld [vmem:[%s4112_s24 + $0x50] sm:$0xff]  ;;  %v4222_v37 = vld [vmem:[%s4112_s24 + $0x58] sm:$0xff]  ;;  %3620 = vmatpush3.bf16.msra.mxu0 %v3619_v47 }
  0x27   : > { %v4229_v38 = vld [vmem:[%s4112_s24 + $0x60] sm:$0xff]  ;;  %v4236_v39 = vld [vmem:[%s4112_s24 + $0x68] sm:$0xff]  ;;  %v4243_v40 = vld [vmem:[%s4112_s24 + $0x70] sm:$0xff]  ;;  %3621 = vmatprep.subr.bf16.mxu0 %v3913_v2  ;;  %s5168_s24 = scalar_lea.vmem [#allocation2], %s3805_s26 }
  0x28   : > { %2885 = vmatmul.mubr.msk.f32.gmra.mrb[2].mxu0 %vm679_vm1, %v4129_v17  ;;  %v895_v42 = vld [vmem:[%s5292_s28 + $0x78] sm:$0xff]  ;;  %v1072_v1 = vld [vmem:[%s5253_s5 + $0x70] sm:$0xff]  ;;  %v4315_v6 = vld [vmem:[%s5294_s25] ss:$0 sm:$0xff] }
  0x29   : > { %3602 = vmatpush3.bf16.msra.mxu1 %v3601_v14  ;;  %2887 = vmatprep.mubr.msk.f32.mxu0 %vm3914_vm0, %v3915_v4  ;;  %v3616_v43 = vpack.c.bf16 %v895_v42, %v894_v41  ;;  %v1073_v3 = vld [vmem:[%s5253_s5 + $0x78] sm:$0xff] }
  0x2a   : > { %3603 = vmatprep.subr.bf16.mxu1 %v3913_v2  ;;  %3623 = vmatpush3.bf16.msra.mxu0 %v3622_v49  ;;  %v3640_v5 = vpack.c.bf16 %v1073_v3, %v1072_v1 }
  0x2b   : > { %3624 = vmatprep.subr.bf16.mxu0 %v3913_v2 }
  0x2c   : > { %2888 = vmatmul.mubr.msk.f32.gmra.mrb[4].mxu0 %vm679_vm1, %v4143_v21 }
  0x2d   : > { %3605 = vmatpush3.bf16.msra.mxu1 %v3604_v18  ;;  %2890 = vmatprep.mubr.msk.f32.mxu0 %vm3914_vm0, %v3915_v4 }
  0x2e   : > { %3606 = vmatprep.subr.bf16.mxu1 %v3913_v2  ;;  %3626 = vmatpush3.bf16.msra.mxu0 %v3625_v52 }
  0x2f   : > { %3627 = vmatprep.subr.bf16.mxu0 %v3913_v2 }
  0x30   : > { %2891 = vmatmul.mubr.msk.f32.gmra.mrb[6].mxu0 %vm679_vm1, %v4157_v25 }
  0x31   : > { %3608 = vmatpush3.bf16.msra.mxu1 %v3607_v22  ;;  %2893 = vmatprep.mubr.msk.f32.mxu0 %vm3914_vm0, %v3915_v4 }
  0x32   : > { %3609 = vmatprep.subr.bf16.mxu1 %v3913_v2  ;;  %3629 = vmatpush3.bf16.msra.mxu0 %v3628_v55 }
  0x33   : > { %3630 = vmatprep.subr.bf16.mxu0 %v3913_v2 }
  0x34   : > { %2894 = vmatmul.mubr.msk.f32.gmra.mrb[8].mxu0 %vm679_vm1, %v4171_v29 }
  0x35   : > { %3611 = vmatpush3.bf16.msra.mxu1 %v3610_v26  ;;  %2896 = vmatprep.mubr.msk.f32.mxu0 %vm3914_vm0, %v3915_v4 }
  0x36   : > { %3612 = vmatprep.subr.bf16.mxu1 %v3913_v2  ;;  %3632 = vmatpush3.bf16.msra.mxu0 %v3631_v58 }
  0x37   : > { %3633 = vmatprep.subr.bf16.mxu0 %v3913_v2 }
  0x38   : > { %2897 = vmatmul.mubr.msk.f32.gmra.mrb[10].mxu0 %vm679_vm1, %v4179_v31 }
  0x39   : > { %3614 = vmatpush3.bf16.msra.mxu1 %v3613_v30  ;;  %2899 = vmatprep.mubr.msk.f32.mxu0 %vm3914_vm0, %v3915_v4 }
  0x3a   : > { %3615 = vmatprep.subr.bf16.mxu1 %v3913_v2  ;;  %3635 = vmatpush3.bf16.msra.mxu0 %v3634_v61 }
  0x3b   : > { %3636 = vmatprep.subr.bf16.mxu0 %v3913_v2 }
  0x3c   : > { %2900 = vmatmul.mubr.msk.f32.gmra.mrb[12].mxu0 %vm679_vm1, %v4187_v32 }
  0x3d   : > { %2902 = vmatprep.mubr.msk.f32.mxu0 %vm3914_vm0, %v3915_v4  ;;  %3617 = vmatpush3.bf16.msra.mxu1 %v3616_v43 }
  0x3e   : > { %3642 = vmatprep.subr.bf16.mxu1 %v3913_v2  ;;  %3638 = vmatpush3.bf16.msra.mxu0 %v3637_v0 }
  0x3f   : > { %3639 = vmatprep.subr.bf16.mxu0 %v3913_v2 }
  0x40   : > { %2903 = vmatmul.mubr.msk.f32.gmra.mrb[14].mxu0 %vm679_vm1, %v4194_v33 }
  0x41   : > { %2905 = vmatprep.mubr.msk.f32.mxu0 %vm3914_vm0, %v3915_v4 }
  0x42   : > { %3641 = vmatpush3.bf16.msra.mxu0 %v3640_v5 }
  0x43   : > { %3666 = vmatprep.subr.bf16.mxu0 %v3913_v2 }
  0x44   : > { %2906 = vmatmul.mubr.msk.f32.gmra.mrb[16].mxu0 %vm679_vm1, %v4201_v34 }
  0x45   : > { %2908 = vmatprep.mubr.msk.f32.mxu0 %vm3914_vm0, %v3915_v4 }
  0x48   : > { %2909 = vmatmul.mubr.msk.f32.gmra.mrb[18].mxu0 %vm679_vm1, %v4208_v35 }
  0x49   : > { %2911 = vmatprep.mubr.msk.f32.mxu0 %vm3914_vm0, %v3915_v4 }
  0x4c   : > { %2912 = vmatmul.mubr.msk.f32.gmra.mrb[20].mxu0 %vm679_vm1, %v4215_v36 }
  0x4d   : > { %2914 = vmatprep.mubr.msk.f32.mxu0 %vm3914_vm0, %v3915_v4 }
  0x50   : > { %2915 = vmatmul.mubr.msk.f32.gmra.mrb[22].mxu0 %vm679_vm1, %v4222_v37 }
  0x51   : > { %2917 = vmatprep.mubr.msk.f32.mxu0 %vm3914_vm0, %v3915_v4 }
  0x54   : > { %2918 = vmatmul.mubr.msk.f32.gmra.mrb[24].mxu0 %vm679_vm1, %v4229_v38 }
  0x55   : > { %2920 = vmatprep.mubr.msk.f32.mxu0 %vm3914_vm0, %v3915_v4 }
  0x58   : > { %2921 = vmatmul.mubr.msk.f32.gmra.mrb[26].mxu0 %vm679_vm1, %v4236_v39 }
  0x59   : > { %2923 = vmatprep.mubr.msk.f32.mxu0 %vm3914_vm0, %v3915_v4 }
  0x5c   : > { %2924 = vmatmul.mubr.msk.f32.gmra.mrb[28].mxu0 %vm679_vm1, %v4243_v40 }
  0x5d   : > { %3035 = vmatprep.mubr.msk.f32.mxu0 %vm3914_vm0, %v3915_v4 }
  0xf7   : > { %v791_v7 = vpop.f32.mrb[0].mxu0 }
  0xf8   : > { %v792_v8 = vadd.f32 %v4315_v6, %v791_v7  ;;  %v2883_v9 = vpop.f32.mrb[1].mxu0 }
  0xfa   : > { %v865_v10 = vmax.f32 %v792_v8, 0.0 }
  0xfb   : > { %v796_v11 = vpop.f32.mrb[2].mxu0 }
  0xfc   : > { %v797_v12 = vadd.f32 %v4315_v6, %v796_v11  ;;  %v2886_v14 = vpop.f32.mrb[3].mxu0  ;;  %2959 = vmatmul.mubr.f32.vlgmr.msra.gmra.mrb[0].mxu1 %v865_v10 }
  0xfd   : > { %2961 = vmatprep.mubr.msk.f32.mxu1 %vm3914_vm0, %v3915_v4 }
  0xfe   : > { %v866_v15 = vmax.f32 %v797_v12, 0.0 }
  0xff   : > { %v801_v16 = vpop.f32.mrb[4].mxu0 }
 0x100   : > { %v802_v18 = vadd.f32 %v4315_v6, %v801_v16  ;;  %v2889_v19 = vpop.f32.mrb[5].mxu0  ;;  %2962 = vmatmul.mubr.f32.gmra.mrb[2].mxu1 %v866_v15 }
 0x101   : > { %2964 = vmatprep.mubr.msk.f32.mxu1 %vm3914_vm0, %v3915_v4 }
 0x102   : > { %v867_v20 = vmax.f32 %v802_v18, 0.0 }
 0x103   : > { %v806_v22 = vpop.f32.mrb[6].mxu0 }
 0x104   : > { %v807_v23 = vadd.f32 %v4315_v6, %v806_v22  ;;  %v2892_v24 = vpop.f32.mrb[7].mxu0  ;;  %2965 = vmatmul.mubr.f32.gmra.mrb[4].mxu1 %v867_v20 }
 0x105   : > { %2967 = vmatprep.mubr.msk.f32.mxu1 %vm3914_vm0, %v3915_v4  ;;  %v1236_v24 = vld [vmem:[%s5255_s7] sm:$0xff] }
 0x106   : > { %v868_v26 = vmax.f32 %v807_v23, 0.0 }
 0x107   : > { %v811_v27 = vpop.f32.mrb[8].mxu0 }
 0x108   : > { %v812_v28 = vadd.f32 %v4315_v6, %v811_v27  ;;  %v2895_v30 = vpop.f32.mrb[9].mxu0  ;;  %2968 = vmatmul.mubr.f32.gmra.mrb[6].mxu1 %v868_v26  ;;  %v1237_v26 = vld [vmem:[%s5255_s7 + $0x8] sm:$0xff] }
 0x109   : > { %2970 = vmatprep.mubr.msk.f32.mxu1 %vm3914_vm0, %v3915_v4  ;;  %v3643_v27 = vpack.c.bf16 %v1237_v26, %v1236_v24 }
 0x10a   : > { %v869_v41 = vmax.f32 %v812_v28, 0.0  ;;  %v1239_v28 = vld [vmem:[%s5255_s7 + $0x18] sm:$0xff] }
 0x10b   : > { %v816_v42 = vpop.f32.mrb[10].mxu0  ;;  %3644 = vmatpush3.bf16.msra.mxu1 %v3643_v27 }
 0x10c   : > { %v817_v43 = vadd.f32 %v4315_v6, %v816_v42  ;;  %v2898_v44 = vpop.f32.mrb[11].mxu0  ;;  %2971 = vmatmul.mubr.f32.gmra.mrb[8].mxu1 %v869_v41  ;;  %3645 = vmatprep.subr.bf16.mxu1 %v3913_v2  ;;  %v1240_v41 = vld [vmem:[%s5255_s7 + $0x20] sm:$0xff]  ;;  %v1241_v42 = vld [vmem:[%s5255_s7 + $0x28] sm:$0xff] }
 0x10d   : > { %2973 = vmatprep.mubr.msk.f32.mxu1 %vm3914_vm0, %v3915_v4  ;;  %v1242_v44 = vld [vmem:[%s5255_s7 + $0x30] sm:$0xff] }
 0x10e   : > { %v870_v45 = vmax.f32 %v817_v43, 0.0  ;;  %v3649_v43 = vpack.c.bf16 %v1241_v42, %v1240_v41 }
 0x10f   : > { %v821_v46 = vpop.f32.mrb[12].mxu0 }
 0x110   : > { %v822_v47 = vadd.f32 %v4315_v6, %v821_v46  ;;  %v2901_v48 = vpop.f32.mrb[13].mxu0  ;;  %2974 = vmatmul.mubr.f32.gmra.mrb[10].mxu1 %v870_v45  ;;  %v1243_v45 = vld [vmem:[%s5255_s7 + $0x38] sm:$0xff] }
 0x111   : > { %2976 = vmatprep.mubr.msk.f32.mxu1 %vm3914_vm0, %v3915_v4  ;;  %v3652_v46 = vpack.c.bf16 %v1243_v45, %v1242_v44  ;;  %v1245_v48 = vld [vmem:[%s5255_s7 + $0x48] sm:$0xff] }
 0x112   : > { %v871_v49 = vmax.f32 %v822_v47, 0.0  ;;  %v1244_v47 = vld [vmem:[%s5255_s7 + $0x40] sm:$0xff] }
 0x113   : > { %v826_v50 = vpop.f32.mrb[14].mxu0 }
 0x114   : > { %v827_v51 = vadd.f32 %v4315_v6, %v826_v50  ;;  %v2904_v52 = vpop.f32.mrb[15].mxu0  ;;  %2977 = vmatmul.mubr.f32.gmra.mrb[12].mxu1 %v871_v49  ;;  %v3655_v49 = vpack.c.bf16 %v1245_v48, %v1244_v47  ;;  %v1246_v50 = vld [vmem:[%s5255_s7 + $0x50] sm:$0xff] }
 0x115   : > { %2979 = vmatprep.mubr.msk.f32.mxu1 %vm3914_vm0, %v3915_v4 }
 0x116   : > { %v872_v53 = vmax.f32 %v827_v51, 0.0  ;;  %v1247_v51 = vld [vmem:[%s5255_s7 + $0x58] sm:$0xff] }
 0x117   : > { %v831_v54 = vpop.f32.mrb[16].mxu0  ;;  %v3658_v52 = vpack.c.bf16 %v1247_v51, %v1246_v50 }
 0x118   : > { %v832_v55 = vadd.f32 %v4315_v6, %v831_v54  ;;  %v2907_v56 = vpop.f32.mrb[17].mxu0  ;;  %2980 = vmatmul.mubr.f32.gmra.mrb[14].mxu1 %v872_v53  ;;  %v1248_v53 = vld [vmem:[%s5255_s7 + $0x60] sm:$0xff]  ;;  %v1249_v54 = vld [vmem:[%s5255_s7 + $0x68] sm:$0xff] }
 0x119   : > { %2982 = vmatprep.mubr.msk.f32.mxu1 %vm3914_vm0, %v3915_v4  ;;  %v1250_v56 = vld [vmem:[%s5255_s7 + $0x70] sm:$0xff] }
 0x11a   : > { %v873_v57 = vmax.f32 %v832_v55, 0.0  ;;  %v3661_v55 = vpack.c.bf16 %v1249_v54, %v1248_v53 }
 0x11b   : > { %v836_v58 = vpop.f32.mrb[18].mxu0 }
 0x11c   : > { %v837_v59 = vadd.f32 %v4315_v6, %v836_v58  ;;  %v2910_v60 = vpop.f32.mrb[19].mxu0  ;;  %2983 = vmatmul.mubr.f32.gmra.mrb[16].mxu1 %v873_v57  ;;  %v1251_v57 = vld [vmem:[%s5255_s7 + $0x78] sm:$0xff] }
 0x11d   : > { %2985 = vmatprep.mubr.msk.f32.mxu1 %vm3914_vm0, %v3915_v4  ;;  %v3664_v58 = vpack.c.bf16 %v1251_v57, %v1250_v56 }
 0x11e   : > { %v874_v61 = vmax.f32 %v837_v59, 0.0  ;;  %v4421_v59 = vld [vmem:[%s5295_s30] ss:$0 sm:$0xff] }
 0x11f   : > { %v841_v62 = vpop.f32.mrb[20].mxu0 }
 0x120   : > { %v842_v63 = vadd.f32 %v4315_v6, %v841_v62  ;;  %v2913_v0 = vpop.f32.mrb[21].mxu0  ;;  %2986 = vmatmul.mubr.f32.gmra.mrb[18].mxu1 %v874_v61 }
 0x121   : > { %2988 = vmatprep.mubr.msk.f32.mxu1 %vm3914_vm0, %v3915_v4 }
 0x122   : > { %v875_v1 = vmax.f32 %v842_v63, 0.0 }
 0x123   : > { %v846_v3 = vpop.f32.mrb[22].mxu0 }
 0x124   : > { %v847_v5 = vadd.f32 %v4315_v6, %v846_v3  ;;  %v2916_v7 = vpop.f32.mrb[23].mxu0  ;;  %2989 = vmatmul.mubr.f32.gmra.mrb[20].mxu1 %v875_v1 }
 0x125   : > { %2991 = vmatprep.mubr.msk.f32.mxu1 %vm3914_vm0, %v3915_v4 }
 0x126   : > { %v876_v8 = vmax.f32 %v847_v5, 0.0 }
 0x127   : > { %v851_v9 = vpop.f32.mrb[24].mxu0 }
 0x128   : > { %v852_v10 = vadd.f32 %v4315_v6, %v851_v9  ;;  %v2919_v11 = vpop.f32.mrb[25].mxu0  ;;  %2992 = vmatmul.mubr.f32.gmra.mrb[22].mxu1 %v876_v8 }
 0x129   : > { %2994 = vmatprep.mubr.msk.f32.mxu1 %vm3914_vm0, %v3915_v4 }
 0x12a   : > { %v877_v12 = vmax.f32 %v852_v10, 0.0 }
 0x12b   : > { %v856_v14 = vpop.f32.mrb[26].mxu0 }
 0x12c   : > { %v857_v15 = vadd.f32 %v4315_v6, %v856_v14  ;;  %v2922_v16 = vpop.f32.mrb[27].mxu0  ;;  %2995 = vmatmul.mubr.f32.gmra.mrb[24].mxu1 %v877_v12 }
 0x12d   : > { %2997 = vmatprep.mubr.msk.f32.mxu1 %vm3914_vm0, %v3915_v4 }
 0x12e   : > { %v878_v18 = vmax.f32 %v857_v15, 0.0 }
 0x12f   : > { %v861_v19 = vpop.f32.mrb[28].mxu0 }
 0x130   : > { %v862_v20 = vadd.f32 %v4315_v6, %v861_v19  ;;  %v2925_v22 = vpop.f32.mrb[29].mxu0  ;;  %2998 = vmatmul.mubr.f32.gmra.mrb[26].mxu1 %v878_v18  ;;  %v1238_v6 = vld [vmem:[%s5255_s7 + $0x10] sm:$0xff] }
 0x131   : > { %3000 = vmatprep.mubr.msk.f32.mxu1 %vm3914_vm0, %v3915_v4  ;;  %v3646_v30 = vpack.c.bf16 %v1239_v28, %v1238_v6 }
 0x132   : > { %v879_v23 = vmax.f32 %v862_v20, 0.0 }
 0x133   : > { %3647 = vmatpush3.bf16.msra.mxu1 %v3646_v30 }
 0x134   : > { %3001 = vmatmul.mubr.f32.gmra.mrb[28].mxu1 %v879_v23  ;;  %3648 = vmatprep.subr.bf16.mxu1 %v3913_v2 }
 0x135   : > { %3112 = vmatprep.mubr.msk.f32.mxu1 %vm3914_vm0, %v3915_v4 }
 0x137   : > { %3650 = vmatpush3.bf16.msra.mxu1 %v3649_v43 }
 0x138   : > { %3651 = vmatprep.subr.bf16.mxu1 %v3913_v2 }
 0x13b   : > { %3653 = vmatpush3.bf16.msra.mxu1 %v3652_v46 }
 0x13c   : > { %3654 = vmatprep.subr.bf16.mxu1 %v3913_v2 }
 0x13f   : > { %3656 = vmatpush3.bf16.msra.mxu1 %v3655_v49 }
 0x140   : > { %3657 = vmatprep.subr.bf16.mxu1 %v3913_v2 }
 0x143   : > { %3659 = vmatpush3.bf16.msra.mxu1 %v3658_v52 }
 0x144   : > { %3660 = vmatprep.subr.bf16.mxu1 %v3913_v2 }
 0x147   : > { %3662 = vmatpush3.bf16.msra.mxu1 %v3661_v55 }
 0x148   : > { %3663 = vmatprep.subr.bf16.mxu1 %v3913_v2 }
 0x14b   : > { %3665 = vmatpush3.bf16.msra.mxu1 %v3664_v58 }
 0x14c   : > { %3690 = vmatprep.subr.bf16.mxu1 %v3913_v2 }
 0x1cf   : > { %v969_v60 = vpop.f32.mrb[0].mxu1 }
 0x1d0   : > { %v970_v61 = vadd.f32 %v4421_v59, %v969_v60  ;;  %v2960_v62 = vpop.f32.mrb[1].mxu1 }
 0x1d2   : > { %v1043_v63 = vmax.f32 %v970_v61, 0.0 }
 0x1d3   : > { %v974_v0 = vpop.f32.mrb[2].mxu1 }
 0x1d4   : > { %v975_v1 = vadd.f32 %v4421_v59, %v974_v0  ;;  %v2963_v3 = vpop.f32.mrb[3].mxu1  ;;  %3036 = vmatmul.mubr.f32.vlgmr.msra.gmra.mrb[30].mxu0 %v1043_v63 }
 0x1d5   : > { %3038 = vmatprep.mubr.msk.f32.mxu0 %vm3914_vm0, %v3915_v4 }
 0x1d6   : > { %v1044_v5 = vmax.f32 %v975_v1, 0.0 }
 0x1d7   : > { %v979_v7 = vpop.f32.mrb[4].mxu1 }
 0x1d8   : > { %v980_v8 = vadd.f32 %v4421_v59, %v979_v7  ;;  %v2966_v9 = vpop.f32.mrb[5].mxu1  ;;  %3039 = vmatmul.mubr.f32.gmra.mrb[32].mxu0 %v1044_v5 }
 0x1d9   : > { %3041 = vmatprep.mubr.msk.f32.mxu0 %vm3914_vm0, %v3915_v4 }
 0x1da   : > { %v1045_v10 = vmax.f32 %v980_v8, 0.0 }
 0x1db   : > { %v984_v11 = vpop.f32.mrb[6].mxu1 }
 0x1dc   : > { %v985_v12 = vadd.f32 %v4421_v59, %v984_v11  ;;  %v2969_v14 = vpop.f32.mrb[7].mxu1  ;;  %3042 = vmatmul.mubr.f32.gmra.mrb[34].mxu0 %v1045_v10 }
 0x1dd   : > { %3044 = vmatprep.mubr.msk.f32.mxu0 %vm3914_vm0, %v3915_v4  ;;  %v1414_v14 = vld [vmem:[%s5257_s9] sm:$0xff] }
 0x1de   : > { %v1046_v15 = vmax.f32 %v985_v12, 0.0 }
 0x1df   : > { %v989_v16 = vpop.f32.mrb[8].mxu1 }
 0x1e0   : > { %v990_v18 = vadd.f32 %v4421_v59, %v989_v16  ;;  %v2972_v19 = vpop.f32.mrb[9].mxu1  ;;  %3045 = vmatmul.mubr.f32.gmra.mrb[36].mxu0 %v1046_v15  ;;  %v1415_v15 = vld [vmem:[%s5257_s9 + $0x8] sm:$0xff] }
 0x1e1   : > { %3047 = vmatprep.mubr.msk.f32.mxu0 %vm3914_vm0, %v3915_v4  ;;  %v3667_v16 = vpack.c.bf16 %v1415_v15, %v1414_v14 }
 0x1e2   : > { %v1047_v20 = vmax.f32 %v990_v18, 0.0  ;;  %v1417_v18 = vld [vmem:[%s5257_s9 + $0x18] sm:$0xff] }
 0x1e3   : > { %v994_v22 = vpop.f32.mrb[10].mxu1  ;;  %3668 = vmatpush3.bf16.msra.mxu0 %v3667_v16 }
 0x1e4   : > { %v995_v23 = vadd.f32 %v4421_v59, %v994_v22  ;;  %v2975_v24 = vpop.f32.mrb[11].mxu1  ;;  %3048 = vmatmul.mubr.f32.gmra.mrb[38].mxu0 %v1047_v20  ;;  %3669 = vmatprep.subr.bf16.mxu0 %v3913_v2  ;;  %v1418_v20 = vld [vmem:[%s5257_s9 + $0x20] sm:$0xff]  ;;  %v1419_v22 = vld [vmem:[%s5257_s9 + $0x28] sm:$0xff] }
 0x1e5   : > { %3050 = vmatprep.mubr.msk.f32.mxu0 %vm3914_vm0, %v3915_v4  ;;  %v1420_v24 = vld [vmem:[%s5257_s9 + $0x30] sm:$0xff] }
 0x1e6   : > { %v1048_v26 = vmax.f32 %v995_v23, 0.0  ;;  %v3673_v23 = vpack.c.bf16 %v1419_v22, %v1418_v20 }
 0x1e7   : > { %v999_v6 = vpop.f32.mrb[12].mxu1 }
 0x1e8   : > { %v1000_v27 = vadd.f32 %v4421_v59, %v999_v6  ;;  %v2978_v28 = vpop.f32.mrb[13].mxu1  ;;  %3051 = vmatmul.mubr.f32.gmra.mrb[40].mxu0 %v1048_v26  ;;  %v1421_v26 = vld [vmem:[%s5257_s9 + $0x38] sm:$0xff] }
 0x1e9   : > { %3053 = vmatprep.mubr.msk.f32.mxu0 %vm3914_vm0, %v3915_v4  ;;  %v3676_v6 = vpack.c.bf16 %v1421_v26, %v1420_v24  ;;  %v1423_v28 = vld [vmem:[%s5257_s9 + $0x48] sm:$0xff] }
 0x1ea   : > { %v1049_v30 = vmax.f32 %v1000_v27, 0.0  ;;  %v1422_v27 = vld [vmem:[%s5257_s9 + $0x40] sm:$0xff] }
 0x1eb   : > { %v1004_v41 = vpop.f32.mrb[14].mxu1 }
 0x1ec   : > { %v1005_v42 = vadd.f32 %v4421_v59, %v1004_v41  ;;  %v2981_v43 = vpop.f32.mrb[15].mxu1  ;;  %3054 = vmatmul.mubr.f32.gmra.mrb[42].mxu0 %v1049_v30  ;;  %v3679_v30 = vpack.c.bf16 %v1423_v28, %v1422_v27  ;;  %v1424_v41 = vld [vmem:[%s5257_s9 + $0x50] sm:$0xff] }
 0x1ed   : > { %3056 = vmatprep.mubr.msk.f32.mxu0 %vm3914_vm0, %v3915_v4 }
 0x1ee   : > { %v1050_v44 = vmax.f32 %v1005_v42, 0.0  ;;  %v1425_v42 = vld [vmem:[%s5257_s9 + $0x58] sm:$0xff] }
 0x1ef   : > { %v1009_v45 = vpop.f32.mrb[16].mxu1  ;;  %v3682_v43 = vpack.c.bf16 %v1425_v42, %v1424_v41 }
 0x1f0   : > { %v1010_v46 = vadd.f32 %v4421_v59, %v1009_v45  ;;  %v2984_v47 = vpop.f32.mrb[17].mxu1  ;;  %3057 = vmatmul.mubr.f32.gmra.mrb[44].mxu0 %v1050_v44  ;;  %v1426_v44 = vld [vmem:[%s5257_s9 + $0x60] sm:$0xff]  ;;  %v1427_v45 = vld [vmem:[%s5257_s9 + $0x68] sm:$0xff] }
 0x1f1   : > { %3059 = vmatprep.mubr.msk.f32.mxu0 %vm3914_vm0, %v3915_v4  ;;  %v1428_v47 = vld [vmem:[%s5257_s9 + $0x70] sm:$0xff] }
 0x1f2   : > { %v1051_v48 = vmax.f32 %v1010_v46, 0.0  ;;  %v3685_v46 = vpack.c.bf16 %v1427_v45, %v1426_v44 }
 0x1f3   : > { %v1014_v49 = vpop.f32.mrb[18].mxu1 }
 0x1f4   : > { %v1015_v50 = vadd.f32 %v4421_v59, %v1014_v49  ;;  %v2987_v51 = vpop.f32.mrb[19].mxu1  ;;  %3060 = vmatmul.mubr.f32.gmra.mrb[46].mxu0 %v1051_v48  ;;  %v1429_v48 = vld [vmem:[%s5257_s9 + $0x78] sm:$0xff] }
 0x1f5   : > { %3062 = vmatprep.mubr.msk.f32.mxu0 %vm3914_vm0, %v3915_v4  ;;  %v3688_v49 = vpack.c.bf16 %v1429_v48, %v1428_v47 }
 0x1f6   : > { %v1052_v52 = vmax.f32 %v1015_v50, 0.0  ;;  %v4527_v50 = vld [vmem:[%s5254_s6] ss:$0 sm:$0xff] }
 0x1f7   : > { %v1019_v53 = vpop.f32.mrb[20].mxu1 }
 0x1f8   : > { %v1020_v54 = vadd.f32 %v4421_v59, %v1019_v53  ;;  %v2990_v55 = vpop.f32.mrb[21].mxu1  ;;  %3063 = vmatmul.mubr.f32.gmra.mrb[48].mxu0 %v1052_v52 }
 0x1f9   : > { %3065 = vmatprep.mubr.msk.f32.mxu0 %vm3914_vm0, %v3915_v4 }
 0x1fa   : > { %v1053_v56 = vmax.f32 %v1020_v54, 0.0 }
 0x1fb   : > { %v1024_v57 = vpop.f32.mrb[22].mxu1 }
 0x1fc   : > { %v1025_v58 = vadd.f32 %v4421_v59, %v1024_v57  ;;  %v2993_v60 = vpop.f32.mrb[23].mxu1  ;;  %3066 = vmatmul.mubr.f32.gmra.mrb[50].mxu0 %v1053_v56 }
 0x1fd   : > { %3068 = vmatprep.mubr.msk.f32.mxu0 %vm3914_vm0, %v3915_v4 }
 0x1fe   : > { %v1054_v61 = vmax.f32 %v1025_v58, 0.0 }
 0x1ff   : > { %v1029_v62 = vpop.f32.mrb[24].mxu1 }
 0x200   : > { %v1030_v63 = vadd.f32 %v4421_v59, %v1029_v62  ;;  %v2996_v0 = vpop.f32.mrb[25].mxu1  ;;  %3069 = vmatmul.mubr.f32.gmra.mrb[52].mxu0 %v1054_v61 }
 0x201   : > { %3071 = vmatprep.mubr.msk.f32.mxu0 %vm3914_vm0, %v3915_v4 }
 0x202   : > { %v1055_v1 = vmax.f32 %v1030_v63, 0.0 }
 0x203   : > { %v1034_v3 = vpop.f32.mrb[26].mxu1 }
 0x204   : > { %v1035_v5 = vadd.f32 %v4421_v59, %v1034_v3  ;;  %v2999_v7 = vpop.f32.mrb[27].mxu1  ;;  %3072 = vmatmul.mubr.f32.gmra.mrb[54].mxu0 %v1055_v1 }
 0x205   : > { %3074 = vmatprep.mubr.msk.f32.mxu0 %vm3914_vm0, %v3915_v4 }
 0x206   : > { %v1056_v8 = vmax.f32 %v1035_v5, 0.0 }
 0x207   : > { %v1039_v9 = vpop.f32.mrb[28].mxu1 }
 0x208   : > { %v1040_v10 = vadd.f32 %v4421_v59, %v1039_v9  ;;  %v3002_v11 = vpop.f32.mrb[29].mxu1  ;;  %3075 = vmatmul.mubr.f32.gmra.mrb[56].mxu0 %v1056_v8  ;;  %v1416_v59 = vld [vmem:[%s5257_s9 + $0x10] sm:$0xff] }
 0x209   : > { %3077 = vmatprep.mubr.msk.f32.mxu0 %vm3914_vm0, %v3915_v4  ;;  %v3670_v19 = vpack.c.bf16 %v1417_v18, %v1416_v59 }
 0x20a   : > { %v1057_v12 = vmax.f32 %v1040_v10, 0.0 }
 0x20b   : > { %3671 = vmatpush3.bf16.msra.mxu0 %v3670_v19 }
 0x20c   : > { %3078 = vmatmul.mubr.f32.gmra.mrb[58].mxu0 %v1057_v12  ;;  %3672 = vmatprep.subr.bf16.mxu0 %v3913_v2 }
 0x20d   : > { %3189 = vmatprep.mubr.msk.f32.mxu0 %vm3914_vm0, %v3915_v4 }
 0x20f   : > { %3674 = vmatpush3.bf16.msra.mxu0 %v3673_v23 }
 0x210   : > { %3675 = vmatprep.subr.bf16.mxu0 %v3913_v2 }
 0x213   : > { %3677 = vmatpush3.bf16.msra.mxu0 %v3676_v6 }
 0x214   : > { %3678 = vmatprep.subr.bf16.mxu0 %v3913_v2 }
 0x217   : > { %3680 = vmatpush3.bf16.msra.mxu0 %v3679_v30 }
 0x218   : > { %3681 = vmatprep.subr.bf16.mxu0 %v3913_v2 }
 0x21b   : > { %3683 = vmatpush3.bf16.msra.mxu0 %v3682_v43 }
 0x21c   : > { %3684 = vmatprep.subr.bf16.mxu0 %v3913_v2 }
 0x21f   : > { %3686 = vmatpush3.bf16.msra.mxu0 %v3685_v46 }
 0x220   : > { %3687 = vmatprep.subr.bf16.mxu0 %v3913_v2 }
 0x223   : > { %3689 = vmatpush3.bf16.msra.mxu0 %v3688_v49 }
 0x224   : > { %3693 = vmatprep.subr.bf16.mxu0 %v3913_v2 }
 0x2a7   : > { %v1147_v51 = vpop.f32.mrb[30].mxu0 }
 0x2a8   : > { %v1148_v52 = vadd.f32 %v4527_v50, %v1147_v51  ;;  %v3037_v53 = vpop.f32.mrb[31].mxu0 }
 0x2aa   : > { %v1221_v54 = vmax.f32 %v1148_v52, 0.0 }
 0x2ab   : > { %v1152_v55 = vpop.f32.mrb[32].mxu0 }
 0x2ac   : > { %v1153_v56 = vadd.f32 %v4527_v50, %v1152_v55  ;;  %v3040_v57 = vpop.f32.mrb[33].mxu0  ;;  %3113 = vmatmul.mubr.f32.vlgmr.msra.gmra.mrb[30].mxu1 %v1221_v54 }
 0x2ad   : > { %3115 = vmatprep.mubr.msk.f32.mxu1 %vm3914_vm0, %v3915_v4 }
 0x2ae   : > { %v1222_v58 = vmax.f32 %v1153_v56, 0.0 }
 0x2af   : > { %v1157_v60 = vpop.f32.mrb[34].mxu0 }
 0x2b0   : > { %v1158_v61 = vadd.f32 %v4527_v50, %v1157_v60  ;;  %v3043_v62 = vpop.f32.mrb[35].mxu0  ;;  %3116 = vmatmul.mubr.f32.gmra.mrb[32].mxu1 %v1222_v58 }
 0x2b1   : > { %3118 = vmatprep.mubr.msk.f32.mxu1 %vm3914_vm0, %v3915_v4 }
 0x2b2   : > { %v1223_v63 = vmax.f32 %v1158_v61, 0.0 }
 0x2b3   : > { %v1162_v0 = vpop.f32.mrb[36].mxu0 }
 0x2b4   : > { %v1163_v1 = vadd.f32 %v4527_v50, %v1162_v0  ;;  %v3046_v3 = vpop.f32.mrb[37].mxu0  ;;  %3119 = vmatmul.mubr.f32.gmra.mrb[34].mxu1 %v1223_v63 }
 0x2b5   : > { %3121 = vmatprep.mubr.msk.f32.mxu1 %vm3914_vm0, %v3915_v4  ;;  %v1608_v3 = vld [vmem:[%s5260_s12] sm:$0xff] }
 0x2b6   : > { %v1224_v5 = vmax.f32 %v1163_v1, 0.0 }
 0x2b7   : > { %v1167_v7 = vpop.f32.mrb[38].mxu0 }
 0x2b8   : > { %v1168_v8 = vadd.f32 %v4527_v50, %v1167_v7  ;;  %v3049_v9 = vpop.f32.mrb[39].mxu0  ;;  %3122 = vmatmul.mubr.f32.gmra.mrb[36].mxu1 %v1224_v5  ;;  %v1609_v5 = vld [vmem:[%s5260_s12 + $0x8] sm:$0xff] }
 0x2b9   : > { %3124 = vmatprep.mubr.msk.f32.mxu1 %vm3914_vm0, %v3915_v4  ;;  %v3691_v7 = vpack.c.bf16 %v1609_v5, %v1608_v3 }
 0x2ba   : > { %v1225_v10 = vmax.f32 %v1168_v8, 0.0  ;;  %v1597_v8 = vld [vmem:[%s5259_s11 + $0x28] sm:$0xff] }
 0x2bb   : > { %v1172_v11 = vpop.f32.mrb[40].mxu0  ;;  %3692 = vmatpush3.bf16.msra.mxu1 %v3691_v7 }
 0x2bc   : > { %v1173_v12 = vadd.f32 %v4527_v50, %v1172_v11  ;;  %v3052_v14 = vpop.f32.mrb[41].mxu0  ;;  %3125 = vmatmul.mubr.f32.gmra.mrb[38].mxu1 %v1225_v10  ;;  %3717 = vmatprep.subr.bf16.mxu1 %v3913_v2 }
 0x2bd   : > { %3127 = vmatprep.mubr.msk.f32.mxu1 %vm3914_vm0, %v3915_v4 }
 0x2be   : > { %v1226_v15 = vmax.f32 %v1173_v12, 0.0 }
 0x2bf   : > { %v1177_v59 = vpop.f32.mrb[42].mxu0 }
 0x2c0   : > { %v1178_v16 = vadd.f32 %v4527_v50, %v1177_v59  ;;  %v3055_v18 = vpop.f32.mrb[43].mxu0  ;;  %3128 = vmatmul.mubr.f32.gmra.mrb[40].mxu1 %v1226_v15  ;;  %v1598_v15 = vld [vmem:[%s5259_s11 + $0x30] sm:$0xff]  ;;  %v1599_v59 = vld [vmem:[%s5259_s11 + $0x38] sm:$0xff] }
 0x2c1   : > { %3130 = vmatprep.mubr.msk.f32.mxu1 %vm3914_vm0, %v3915_v4 }
 0x2c2   : > { %v1227_v19 = vmax.f32 %v1178_v16, 0.0 }
 0x2c3   : > { %v1182_v20 = vpop.f32.mrb[44].mxu0 }
 0x2c4   : > { %v1183_v22 = vadd.f32 %v4527_v50, %v1182_v20  ;;  %v3058_v23 = vpop.f32.mrb[45].mxu0  ;;  %3131 = vmatmul.mubr.f32.gmra.mrb[42].mxu1 %v1227_v19  ;;  %v3703_v20 = vpack.c.bf16 %v1599_v59, %v1598_v15 }
 0x2c5   : > { %3133 = vmatprep.mubr.msk.f32.mxu1 %vm3914_vm0, %v3915_v4  ;;  %v1600_v23 = vld [vmem:[%s5259_s11 + $0x40] sm:$0xff] }
 0x2c6   : > { %v1228_v24 = vmax.f32 %v1183_v22, 0.0 }
 0x2c7   : > { %v1187_v26 = vpop.f32.mrb[46].mxu0 }
 0x2c8   : > { %v1188_v6 = vadd.f32 %v4527_v50, %v1187_v26  ;;  %v3061_v27 = vpop.f32.mrb[47].mxu0  ;;  %3134 = vmatmul.mubr.f32.gmra.mrb[44].mxu1 %v1228_v24  ;;  %v1601_v24 = vld [vmem:[%s5259_s11 + $0x48] sm:$0xff] }
 0x2c9   : > { %3136 = vmatprep.mubr.msk.f32.mxu1 %vm3914_vm0, %v3915_v4 }
 0x2ca   : > { %v1229_v28 = vmax.f32 %v1188_v6, 0.0 }
 0x2cb   : > { %v1192_v30 = vpop.f32.mrb[48].mxu0 }
 0x2cc   : > { %v1193_v41 = vadd.f32 %v4527_v50, %v1192_v30  ;;  %v3064_v42 = vpop.f32.mrb[49].mxu0  ;;  %3137 = vmatmul.mubr.f32.gmra.mrb[46].mxu1 %v1229_v28  ;;  %v3706_v28 = vpack.c.bf16 %v1601_v24, %v1600_v23 }
 0x2cd   : > { %3139 = vmatprep.mubr.msk.f32.mxu1 %vm3914_vm0, %v3915_v4  ;;  %v1603_v42 = vld [vmem:[%s5259_s11 + $0x58] sm:$0xff] }
 0x2ce   : > { %v1230_v43 = vmax.f32 %v1193_v41, 0.0  ;;  %v1602_v41 = vld [vmem:[%s5259_s11 + $0x50] sm:$0xff] }
 0x2cf   : > { %v1197_v44 = vpop.f32.mrb[50].mxu0 }
 0x2d0   : > { %v1198_v45 = vadd.f32 %v4527_v50, %v1197_v44  ;;  %v3067_v46 = vpop.f32.mrb[51].mxu0  ;;  %3140 = vmatmul.mubr.f32.gmra.mrb[48].mxu1 %v1230_v43 }
 0x2d1   : > { %3142 = vmatprep.mubr.msk.f32.mxu1 %vm3914_vm0, %v3915_v4  ;;  %v3709_v46 = vpack.c.bf16 %v1603_v42, %v1602_v41  ;;  %v1935_v42 = vld [vmem:[%s5262_s14 + $0x40] sm:$0xff] }
 0x2d2   : > { %v1231_v47 = vmax.f32 %v1198_v45, 0.0 }
 0x2d3   : > { %v1202_v48 = vpop.f32.mrb[52].mxu0 }
 0x2d4   : > { %v1203_v49 = vadd.f32 %v4527_v50, %v1202_v48  ;;  %v3070_v51 = vpop.f32.mrb[53].mxu0  ;;  %3143 = vmatmul.mubr.f32.gmra.mrb[50].mxu1 %v1231_v47  ;;  %v1604_v48 = vld [vmem:[%s5259_s11 + $0x60] sm:$0xff] }
 0x2d5   : > { %3145 = vmatprep.mubr.msk.f32.mxu1 %vm3914_vm0, %v3915_v4 }
 0x2d6   : > { %v1232_v52 = vmax.f32 %v1203_v49, 0.0  ;;  %v1605_v49 = vld [vmem:[%s5259_s11 + $0x68] sm:$0xff] }
 0x2d7   : > { %v1207_v53 = vpop.f32.mrb[54].mxu0 }
 0x2d8   : > { %v1208_v54 = vadd.f32 %v4527_v50, %v1207_v53  ;;  %v3073_v55 = vpop.f32.mrb[55].mxu0  ;;  %3146 = vmatmul.mubr.f32.gmra.mrb[52].mxu1 %v1232_v52 }
 0x2d9   : > { %3148 = vmatprep.mubr.msk.f32.mxu1 %vm3914_vm0, %v3915_v4 }
 0x2da   : > { %v1233_v56 = vmax.f32 %v1208_v54, 0.0  ;;  %v3712_v54 = vpack.c.bf16 %v1605_v49, %v1604_v48  ;;  %v1939_v48 = vld [vmem:[%s5262_s14 + $0x60] sm:$0xff]  ;;  %v1940_v49 = vld [vmem:[%s5262_s14 + $0x68] sm:$0xff] }
 0x2db   : > { %v1212_v57 = vpop.f32.mrb[56].mxu0 }
 0x2dc   : > { %v1213_v58 = vadd.f32 %v4527_v50, %v1212_v57  ;;  %v3076_v60 = vpop.f32.mrb[57].mxu0  ;;  %3149 = vmatmul.mubr.f32.gmra.mrb[54].mxu1 %v1233_v56  ;;  %v1606_v56 = vld [vmem:[%s5259_s11 + $0x70] sm:$0xff]  ;;  %v1607_v57 = vld [vmem:[%s5259_s11 + $0x78] sm:$0xff] }
 0x2dd   : > { %3151 = vmatprep.mubr.msk.f32.mxu1 %vm3914_vm0, %v3915_v4 }
 0x2de   : > { %v1234_v61 = vmax.f32 %v1213_v58, 0.0 }
 0x2df   : > { %v1217_v62 = vpop.f32.mrb[58].mxu0 }
 0x2e0   : > { %v1218_v63 = vadd.f32 %v4527_v50, %v1217_v62  ;;  %v3079_v0 = vpop.f32.mrb[59].mxu0  ;;  %3152 = vmatmul.mubr.f32.gmra.mrb[56].mxu1 %v1234_v61  ;;  %v1596_v50 = vld [vmem:[%s5259_s11 + $0x20] sm:$0xff]  ;;  %v3715_v62 = vpack.c.bf16 %v1607_v57, %v1606_v56 }
 0x2e1   : > { %3154 = vmatprep.mubr.msk.f32.mxu1 %vm3914_vm0, %v3915_v4  ;;  %v3700_v12 = vpack.c.bf16 %v1597_v8, %v1596_v50 }
 0x2e2   : > { %v1235_v1 = vmax.f32 %v1218_v63, 0.0 }
 0x2e4   : > { %3155 = vmatmul.mubr.f32.gmra.mrb[58].mxu1 %v1235_v1 }
 0x2e5   : > { %3238 = vmatprep.mubr.msk.f32.mxu1 %vm3914_vm0, %v3915_v4 }
 0x2e8   : > { %3239 = vmatmul.mubr.msk.f32.vlgmr.msra.gmra.mrb[60].mxu1 %vm679_vm1, %v4115_v13  ;;  %v4644_v13 = vld [vmem:[%s5256_s8] ss:$0 sm:$0xff] }
 0x2e9   : > { %3241 = vmatprep.mubr.msk.f32.mxu1 %vm3914_vm0, %v3915_v4 }
 0x2ec   : > { %3242 = vmatmul.mubr.msk.f32.gmra.mrb[62].mxu1 %vm679_vm1, %v4129_v17  ;;  %v1592_v17 = vld [vmem:[%s5259_s11] sm:$0xff] }
 0x2ed   : > { %3244 = vmatprep.mubr.msk.f32.mxu1 %vm3914_vm0, %v3915_v4 }
 0x2f0   : > { %3245 = vmatmul.mubr.msk.f32.gmra.mrb[64].mxu1 %vm679_vm1, %v4143_v21  ;;  %v1593_v21 = vld [vmem:[%s5259_s11 + $0x8] sm:$0xff] }
 0x2f1   : > { %3247 = vmatprep.mubr.msk.f32.mxu1 %vm3914_vm0, %v3915_v4 }
 0x2f4   : > { %3248 = vmatmul.mubr.msk.f32.gmra.mrb[66].mxu1 %vm679_vm1, %v4157_v25 }
 0x2f5   : > { %3250 = vmatprep.mubr.msk.f32.mxu1 %vm3914_vm0, %v3915_v4 }
 0x2f8   : > { %3251 = vmatmul.mubr.msk.f32.gmra.mrb[68].mxu1 %vm679_vm1, %v4171_v29 }
 0x2f9   : > { %3253 = vmatprep.mubr.msk.f32.mxu1 %vm3914_vm0, %v3915_v4 }
 0x2fc   : > { %3254 = vmatmul.mubr.msk.f32.gmra.mrb[70].mxu1 %vm679_vm1, %v4179_v31 }
 0x2fd   : > { %3256 = vmatprep.mubr.msk.f32.mxu1 %vm3914_vm0, %v3915_v4 }
 0x300   : > { %3257 = vmatmul.mubr.msk.f32.gmra.mrb[72].mxu1 %vm679_vm1, %v4187_v32  ;;  %v3694_v32 = vpack.c.bf16 %v1593_v21, %v1592_v17 }
 0x301   : > { %3259 = vmatprep.mubr.msk.f32.mxu1 %vm3914_vm0, %v3915_v4 }
 0x304   : > { %3260 = vmatmul.mubr.msk.f32.gmra.mrb[74].mxu1 %vm679_vm1, %v4194_v33 }
 0x305   : > { %3262 = vmatprep.mubr.msk.f32.mxu1 %vm3914_vm0, %v3915_v4 }
 0x308   : > { %3263 = vmatmul.mubr.msk.f32.gmra.mrb[76].mxu1 %vm679_vm1, %v4201_v34  ;;  %v1594_v34 = vld [vmem:[%s5259_s11 + $0x10] sm:$0xff] }
 0x309   : > { %3265 = vmatprep.mubr.msk.f32.mxu1 %vm3914_vm0, %v3915_v4 }
 0x30c   : > { %3266 = vmatmul.mubr.msk.f32.gmra.mrb[78].mxu1 %vm679_vm1, %v4208_v35  ;;  %v1595_v35 = vld [vmem:[%s5259_s11 + $0x18] sm:$0xff] }
 0x30d   : > { %3268 = vmatprep.mubr.msk.f32.mxu1 %vm3914_vm0, %v3915_v4 }
 0x310   : > { %3269 = vmatmul.mubr.msk.f32.gmra.mrb[80].mxu1 %vm679_vm1, %v4215_v36 }
 0x311   : > { %3271 = vmatprep.mubr.msk.f32.mxu1 %vm3914_vm0, %v3915_v4 }
 0x314   : > { %3272 = vmatmul.mubr.msk.f32.gmra.mrb[82].mxu1 %vm679_vm1, %v4222_v37 }
 0x315   : > { %3274 = vmatprep.mubr.msk.f32.mxu1 %vm3914_vm0, %v3915_v4 }
 0x318   : > { %3275 = vmatmul.mubr.msk.f32.gmra.mrb[84].mxu1 %vm679_vm1, %v4229_v38 }
 0x319   : > { %3277 = vmatprep.mubr.msk.f32.mxu1 %vm3914_vm0, %v3915_v4 }
 0x31c   : > { %3278 = vmatmul.mubr.msk.f32.gmra.mrb[86].mxu1 %vm679_vm1, %v4236_v39  ;;  %v3697_v39 = vpack.c.bf16 %v1595_v35, %v1594_v34 }
 0x31d   : > { %3280 = vmatprep.mubr.msk.f32.mxu1 %vm3914_vm0, %v3915_v4 }
 0x320   : > { %3281 = vmatmul.mubr.msk.f32.gmra.mrb[88].mxu1 %vm679_vm1, %v4243_v40 }
 0x321   : > { %3392 = vmatprep.mubr.msk.f32.mxu1 %vm3914_vm0, %v3915_v4 }
 0x37f   : > { %v1325_v25 = vpop.f32.mrb[30].mxu1 }
 0x380   : > { %v1326_v29 = vadd.f32 %v4644_v13, %v1325_v25  ;;  %v3114_v31 = vpop.f32.mrb[31].mxu1 }
 0x382   : > { %v1399_v33 = vmax.f32 %v1326_v29, 0.0 }
 0x383   : > { %v1330_v36 = vpop.f32.mrb[32].mxu1 }
 0x384   : > { %v1331_v37 = vadd.f32 %v4644_v13, %v1330_v36  ;;  %v3117_v38 = vpop.f32.mrb[33].mxu1  ;;  %3190 = vmatmul.mubr.f32.vlgmr.msra.gmra.mrb[60].mxu0 %v1399_v33 }
 0x385   : > { %3192 = vmatprep.mubr.msk.f32.mxu0 %vm3914_vm0, %v3915_v4  ;;  %3695 = vmatpush3.bf16.msra.mxu0 %v3694_v32 }
 0x386   : > { %v1400_v40 = vmax.f32 %v1331_v37, 0.0  ;;  %3696 = vmatprep.subr.bf16.mxu0 %v3913_v2 }
 0x387   : > { %v1335_v9 = vpop.f32.mrb[34].mxu1 }
 0x388   : > { %v1336_v10 = vadd.f32 %v4644_v13, %v1335_v9  ;;  %v3120_v11 = vpop.f32.mrb[35].mxu1  ;;  %3193 = vmatmul.mubr.f32.gmra.mrb[62].mxu0 %v1400_v40 }
 0x389   : > { %3195 = vmatprep.mubr.msk.f32.mxu0 %vm3914_vm0, %v3915_v4  ;;  %3698 = vmatpush3.bf16.msra.mxu0 %v3697_v39 }
 0x38a   : > { %v1401_v14 = vmax.f32 %v1336_v10, 0.0  ;;  %3699 = vmatprep.subr.bf16.mxu0 %v3913_v2 }
 0x38b   : > { %v1340_v16 = vpop.f32.mrb[36].mxu1 }
 0x38c   : > { %v1341_v18 = vadd.f32 %v4644_v13, %v1340_v16  ;;  %v3123_v19 = vpop.f32.mrb[37].mxu1  ;;  %3196 = vmatmul.mubr.f32.gmra.mrb[64].mxu0 %v1401_v14  ;;  %v1927_v16 = vld [vmem:[%s5262_s14] sm:$0xff] }
 0x38d   : > { %3198 = vmatprep.mubr.msk.f32.mxu0 %vm3914_vm0, %v3915_v4  ;;  %3701 = vmatpush3.bf16.msra.mxu0 %v3700_v12 }
 0x38e   : > { %v1402_v22 = vmax.f32 %v1341_v18, 0.0  ;;  %3702 = vmatprep.subr.bf16.mxu0 %v3913_v2  ;;  %v1928_v18 = vld [vmem:[%s5262_s14 + $0x8] sm:$0xff] }
 0x38f   : > { %v1345_v26 = vpop.f32.mrb[38].mxu1  ;;  %v3718_v19 = vpack.c.bf16 %v1928_v18, %v1927_v16 }
 0x390   : > { %v1346_v6 = vadd.f32 %v4644_v13, %v1345_v26  ;;  %v3126_v27 = vpop.f32.mrb[39].mxu1  ;;  %3199 = vmatmul.mubr.f32.gmra.mrb[66].mxu0 %v1402_v22  ;;  %v1931_v26 = vld [vmem:[%s5262_s14 + $0x20] sm:$0xff] }
 0x391   : > { %3201 = vmatprep.mubr.msk.f32.mxu0 %vm3914_vm0, %v3915_v4  ;;  %3704 = vmatpush3.bf16.msra.mxu0 %v3703_v20  ;;  %v1930_v20 = vld [vmem:[%s5262_s14 + $0x18] sm:$0xff] }
 0x392   : > { %v1403_v30 = vmax.f32 %v1346_v6, 0.0  ;;  %3705 = vmatprep.subr.bf16.mxu0 %v3913_v2  ;;  %3719 = vmatpush3.bf16.msra.mxu1 %v3718_v19  ;;  %v1932_v6 = vld [vmem:[%s5262_s14 + $0x28] sm:$0xff] }
 0x393   : > { %v1350_v43 = vpop.f32.mrb[40].mxu1  ;;  %3720 = vmatprep.subr.bf16.mxu1 %v3913_v2  ;;  %v3724_v27 = vpack.c.bf16 %v1932_v6, %v1931_v26 }
 0x394   : > { %v1351_v44 = vadd.f32 %v4644_v13, %v1350_v43  ;;  %v3129_v45 = vpop.f32.mrb[41].mxu1  ;;  %3202 = vmatmul.mubr.f32.gmra.mrb[68].mxu0 %v1403_v30  ;;  %v1934_v30 = vld [vmem:[%s5262_s14 + $0x38] sm:$0xff]  ;;  %v1936_v43 = vld [vmem:[%s5262_s14 + $0x48] sm:$0xff] }
 0x395   : > { %3204 = vmatprep.mubr.msk.f32.mxu0 %vm3914_vm0, %v3915_v4  ;;  %3707 = vmatpush3.bf16.msra.mxu0 %v3706_v28  ;;  %v1933_v28 = vld [vmem:[%s5262_s14 + $0x30] sm:$0xff] }
 0x396   : > { %v1404_v47 = vmax.f32 %v1351_v44, 0.0  ;;  %3708 = vmatprep.subr.bf16.mxu0 %v3913_v2  ;;  %v3727_v41 = vpack.c.bf16 %v1934_v30, %v1933_v28  ;;  %v3730_v44 = vpack.c.bf16 %v1936_v43, %v1935_v42  ;;  %v1937_v45 = vld [vmem:[%s5262_s14 + $0x50] sm:$0xff] }
 0x397   : > { %v1355_v51 = vpop.f32.mrb[42].mxu1 }
 0x398   : > { %v1356_v52 = vadd.f32 %v4644_v13, %v1355_v51  ;;  %v3132_v53 = vpop.f32.mrb[43].mxu1  ;;  %3205 = vmatmul.mubr.f32.gmra.mrb[70].mxu0 %v1404_v47  ;;  %v3736_v51 = vpack.c.bf16 %v1940_v49, %v1939_v48 }
 0x399   : > { %3207 = vmatprep.mubr.msk.f32.mxu0 %vm3914_vm0, %v3915_v4  ;;  %3710 = vmatpush3.bf16.msra.mxu0 %v3709_v46  ;;  %v1938_v46 = vld [vmem:[%s5262_s14 + $0x58] sm:$0xff] }
 0x39a   : > { %v1405_v55 = vmax.f32 %v1356_v52, 0.0  ;;  %3711 = vmatprep.subr.bf16.mxu0 %v3913_v2  ;;  %v3733_v47 = vpack.c.bf16 %v1938_v46, %v1937_v45  ;;  %v4801_v52 = vld [vmem:[%s5258_s10] ss:$0 sm:$0xff] }
 0x39b   : > { %v1360_v58 = vpop.f32.mrb[44].mxu1 }
 0x39c   : > { %v1361_v60 = vadd.f32 %v4644_v13, %v1360_v58  ;;  %v3135_v61 = vpop.f32.mrb[45].mxu1  ;;  %3208 = vmatmul.mubr.f32.gmra.mrb[72].mxu0 %v1405_v55 }
 0x39d   : > { %3210 = vmatprep.mubr.msk.f32.mxu0 %vm3914_vm0, %v3915_v4  ;;  %3713 = vmatpush3.bf16.msra.mxu0 %v3712_v54 }
 0x39e   : > { %v1406_v63 = vmax.f32 %v1361_v60, 0.0  ;;  %3714 = vmatprep.subr.bf16.mxu0 %v3913_v2 }
 0x39f   : > { %v1365_v0 = vpop.f32.mrb[46].mxu1 }
 0x3a0   : > { %v1366_v1 = vadd.f32 %v4644_v13, %v1365_v0  ;;  %v3138_v3 = vpop.f32.mrb[47].mxu1  ;;  %3211 = vmatmul.mubr.f32.gmra.mrb[74].mxu0 %v1406_v63 }
 0x3a1   : > { %3213 = vmatprep.mubr.msk.f32.mxu0 %vm3914_vm0, %v3915_v4  ;;  %3716 = vmatpush3.bf16.msra.mxu0 %v3715_v62 }
 0x3a2   : > { %v1407_v5 = vmax.f32 %v1366_v1, 0.0  ;;  %3741 = vmatprep.subr.bf16.mxu0 %v3913_v2 }
 0x3a3   : > { %v1370_v7 = vpop.f32.mrb[48].mxu1 }
 0x3a4   : > { %v1371_v17 = vadd.f32 %v4644_v13, %v1370_v7  ;;  %v3141_v21 = vpop.f32.mrb[49].mxu1  ;;  %3214 = vmatmul.mubr.f32.gmra.mrb[76].mxu0 %v1407_v5 }
 0x3a5   : > { %3216 = vmatprep.mubr.msk.f32.mxu0 %vm3914_vm0, %v3915_v4 }
 0x3a6   : > { %v1408_v25 = vmax.f32 %v1371_v17, 0.0 }
 0x3a7   : > { %v1375_v29 = vpop.f32.mrb[50].mxu1 }
 0x3a8   : > { %v1376_v31 = vadd.f32 %v4644_v13, %v1375_v29  ;;  %v3144_v32 = vpop.f32.mrb[51].mxu1  ;;  %3217 = vmatmul.mubr.f32.gmra.mrb[78].mxu0 %v1408_v25 }
 0x3a9   : > { %3219 = vmatprep.mubr.msk.f32.mxu0 %vm3914_vm0, %v3915_v4 }
 0x3aa   : > { %v1409_v33 = vmax.f32 %v1376_v31, 0.0 }
 0x3ab   : > { %v1380_v34 = vpop.f32.mrb[52].mxu1 }
 0x3ac   : > { %v1381_v35 = vadd.f32 %v4644_v13, %v1380_v34  ;;  %v3147_v36 = vpop.f32.mrb[53].mxu1  ;;  %3220 = vmatmul.mubr.f32.gmra.mrb[80].mxu0 %v1409_v33 }
 0x3ad   : > { %3222 = vmatprep.mubr.msk.f32.mxu0 %vm3914_vm0, %v3915_v4 }
 0x3ae   : > { %v1410_v37 = vmax.f32 %v1381_v35, 0.0 }
 0x3af   : > { %v1385_v38 = vpop.f32.mrb[54].mxu1 }
 0x3b0   : > { %v1386_v39 = vadd.f32 %v4644_v13, %v1385_v38  ;;  %v3150_v40 = vpop.f32.mrb[55].mxu1  ;;  %3223 = vmatmul.mubr.f32.gmra.mrb[82].mxu0 %v1410_v37 }
 0x3b1   : > { %3225 = vmatprep.mubr.msk.f32.mxu0 %vm3914_vm0, %v3915_v4 }
 0x3b2   : > { %v1411_v50 = vmax.f32 %v1386_v39, 0.0 }
 0x3b3   : > { %v1390_v8 = vpop.f32.mrb[56].mxu1 }
 0x3b4   : > { %v1391_v9 = vadd.f32 %v4644_v13, %v1390_v8  ;;  %v3153_v10 = vpop.f32.mrb[57].mxu1  ;;  %3226 = vmatmul.mubr.f32.gmra.mrb[84].mxu0 %v1411_v50 }
 0x3b5   : > { %3228 = vmatprep.mubr.msk.f32.mxu0 %vm3914_vm0, %v3915_v4 }
 0x3b6   : > { %v1412_v11 = vmax.f32 %v1391_v9, 0.0 }
 0x3b7   : > { %v1395_v12 = vpop.f32.mrb[58].mxu1 }
 0x3b8   : > { %v1396_v14 = vadd.f32 %v4644_v13, %v1395_v12  ;;  %v3156_v15 = vpop.f32.mrb[59].mxu1  ;;  %3229 = vmatmul.mubr.f32.gmra.mrb[86].mxu0 %v1412_v11  ;;  %v1929_v13 = vld [vmem:[%s5262_s14 + $0x10] sm:$0xff] }
 0x3b9   : > { %3231 = vmatprep.mubr.msk.f32.mxu0 %vm3914_vm0, %v3915_v4  ;;  %v3721_v24 = vpack.c.bf16 %v1930_v20, %v1929_v13 }
 0x3ba   : > { %v1413_v59 = vmax.f32 %v1396_v14, 0.0 }
 0x3bb   : > { %v4759_v22 = vpop.f32.mrb[60].mxu1  ;;  %3722 = vmatpush3.bf16.msra.mxu1 %v3721_v24 }
 0x3bc   : > { %3232 = vmatmul.mubr.f32.gmra.mrb[88].mxu0 %v1413_v59  ;;  %v3240_v23 = vpop.f32.mrb[61].mxu1  ;;  %3723 = vmatprep.subr.bf16.mxu1 %v3913_v2 }
 0x3bd   : > { %3315 = vmatprep.mubr.msk.f32.mxu0 %vm3914_vm0, %v3915_v4 }
 0x3bf   : > { %3725 = vmatpush3.bf16.msra.mxu1 %v3724_v27 }
 0x3c0   : > { %3726 = vmatprep.subr.bf16.mxu1 %v3913_v2 }
 0x3c3   : > { %3728 = vmatpush3.bf16.msra.mxu1 %v3727_v41 }
 0x3c4   : > { %3729 = vmatprep.subr.bf16.mxu1 %v3913_v2 }
 0x3c7   : > { %3731 = vmatpush3.bf16.msra.mxu1 %v3730_v44 }
 0x3c8   : > { %3732 = vmatprep.subr.bf16.mxu1 %v3913_v2 }
 0x3cb   : > { %3734 = vmatpush3.bf16.msra.mxu1 %v3733_v47 }
 0x3cc   : > { %3735 = vmatprep.subr.bf16.mxu1 %v3913_v2 }
 0x3cf   : > { %3737 = vmatpush3.bf16.msra.mxu1 %v3736_v51 }
 0x3d0   : > { %3738 = vmatprep.subr.bf16.mxu1 %v3913_v2 }
 0x457   : > { %v1503_v53 = vpop.f32.mrb[60].mxu0 }
 0x458   : > { %v1504_v54 = vadd.f32 %v4801_v52, %v1503_v53  ;;  %v3191_v55 = vpop.f32.mrb[61].mxu0  ;;  %v1941_v53 = vld [vmem:[%s5262_s14 + $0x70] sm:$0xff] }
 0x45a   : > { %v1577_v56 = vmax.f32 %v1504_v54, 0.0  ;;  %v1942_v54 = vld [vmem:[%s5262_s14 + $0x78] sm:$0xff] }
 0x45b   : > { %v1508_v57 = vpop.f32.mrb[62].mxu0  ;;  %v3739_v55 = vpack.c.bf16 %v1942_v54, %v1941_v53 }
 0x45c   : > { %v1509_v58 = vadd.f32 %v4801_v52, %v1508_v57  ;;  %v3194_v60 = vpop.f32.mrb[63].mxu0  ;;  %3316 = vmatmul.mubr.f32.vlgmr.msra.gmra.mrb[90].mxu0 %v1577_v56 }
 0x45d   : > { %3318 = vmatprep.mubr.msk.f32.mxu0 %vm3914_vm0, %v3915_v4  ;;  %3740 = vmatpush3.bf16.msra.mxu1 %v3739_v55 }
 0x45e   : > { %v1578_v61 = vmax.f32 %v1509_v58, 0.0  ;;  %3789 = vmatprep.subr.bf16.mxu1 %v3913_v2 }
 0x45f   : > { %v1513_v62 = vpop.f32.mrb[64].mxu0 }
 0x460   : > { %v1514_v63 = vadd.f32 %v4801_v52, %v1513_v62  ;;  %v3197_v0 = vpop.f32.mrb[65].mxu0  ;;  %3319 = vmatmul.mubr.f32.gmra.mrb[92].mxu0 %v1578_v61 }
 0x461   : > { %3321 = vmatprep.mubr.msk.f32.mxu0 %vm3914_vm0, %v3915_v4 }
 0x462   : > { %v1579_v1 = vmax.f32 %v1514_v63, 0.0 }
 0x463   : > { %v1518_v3 = vpop.f32.mrb[66].mxu0 }
 0x464   : > { %v1519_v5 = vadd.f32 %v4801_v52, %v1518_v3  ;;  %v3200_v7 = vpop.f32.mrb[67].mxu0  ;;  %3322 = vmatmul.mubr.f32.gmra.mrb[94].mxu0 %v1579_v1 }
 0x465   : > { %3324 = vmatprep.mubr.msk.f32.mxu0 %vm3914_vm0, %v3915_v4 }
 0x466   : > { %v1580_v17 = vmax.f32 %v1519_v5, 0.0 }
 0x467   : > { %v1523_v21 = vpop.f32.mrb[68].mxu0 }
 0x468   : > { %v1524_v25 = vadd.f32 %v4801_v52, %v1523_v21  ;;  %v3203_v29 = vpop.f32.mrb[69].mxu0  ;;  %3325 = vmatmul.mubr.f32.gmra.mrb[96].mxu0 %v1580_v17 }
 0x469   : > { %3327 = vmatprep.mubr.msk.f32.mxu0 %vm3914_vm0, %v3915_v4 }
 0x46a   : > { %v1581_v31 = vmax.f32 %v1524_v25, 0.0 }
 0x46b   : > { %v1528_v32 = vpop.f32.mrb[70].mxu0 }
 0x46c   : > { %v1529_v33 = vadd.f32 %v4801_v52, %v1528_v32  ;;  %v3206_v34 = vpop.f32.mrb[71].mxu0  ;;  %3328 = vmatmul.mubr.f32.gmra.mrb[98].mxu0 %v1581_v31 }
 0x46d   : > { %3330 = vmatprep.mubr.msk.f32.mxu0 %vm3914_vm0, %v3915_v4 }
 0x46e   : > { %v1582_v35 = vmax.f32 %v1529_v33, 0.0 }
 0x46f   : > { %v1533_v36 = vpop.f32.mrb[72].mxu0 }
 0x470   : > { %v1534_v37 = vadd.f32 %v4801_v52, %v1533_v36  ;;  %v3209_v38 = vpop.f32.mrb[73].mxu0  ;;  %3331 = vmatmul.mubr.f32.gmra.mrb[100].mxu0 %v1582_v35 }
 0x471   : > { %3333 = vmatprep.mubr.msk.f32.mxu0 %vm3914_vm0, %v3915_v4 }
 0x472   : > { %v1583_v39 = vmax.f32 %v1534_v37, 0.0 }
 0x473   : > { %v1538_v40 = vpop.f32.mrb[74].mxu0 }
 0x474   : > { %v1539_v50 = vadd.f32 %v4801_v52, %v1538_v40  ;;  %v3212_v8 = vpop.f32.mrb[75].mxu0  ;;  %3334 = vmatmul.mubr.f32.gmra.mrb[102].mxu0 %v1583_v39 }
 0x475   : > { %3336 = vmatprep.mubr.msk.f32.mxu0 %vm3914_vm0, %v3915_v4  ;;  %v2105_v8 = vld [vmem:[%s5264_s16] sm:$0xff] }
 0x476   : > { %v1584_v9 = vmax.f32 %v1539_v50, 0.0 }
 0x477   : > { %v1543_v10 = vpop.f32.mrb[76].mxu0 }
 0x478   : > { %v1544_v11 = vadd.f32 %v4801_v52, %v1543_v10  ;;  %v3215_v12 = vpop.f32.mrb[77].mxu0  ;;  %3337 = vmatmul.mubr.f32.gmra.mrb[104].mxu0 %v1584_v9  ;;  %v2106_v9 = vld [vmem:[%s5264_s16 + $0x8] sm:$0xff]  ;;  %v2107_v10 = vld [vmem:[%s5264_s16 + $0x10] sm:$0xff] }
 0x479   : > { %3339 = vmatprep.mubr.msk.f32.mxu0 %vm3914_vm0, %v3915_v4  ;;  %v2108_v12 = vld [vmem:[%s5264_s16 + $0x18] sm:$0xff] }
 0x47a   : > { %v1585_v14 = vmax.f32 %v1544_v11, 0.0  ;;  %v3742_v11 = vpack.c.bf16 %v2106_v9, %v2105_v8 }
 0x47b   : > { %v1548_v15 = vpop.f32.mrb[78].mxu0 }
 0x47c   : > { %v1549_v59 = vadd.f32 %v4801_v52, %v1548_v15  ;;  %v3218_v16 = vpop.f32.mrb[79].mxu0  ;;  %3340 = vmatmul.mubr.f32.gmra.mrb[106].mxu0 %v1585_v14  ;;  %v3745_v14 = vpack.c.bf16 %v2108_v12, %v2107_v10  ;;  %v2109_v15 = vld [vmem:[%s5264_s16 + $0x20] sm:$0xff] }
 0x47d   : > { %3342 = vmatprep.mubr.msk.f32.mxu0 %vm3914_vm0, %v3915_v4  ;;  %3743 = vmatpush3.bf16.msra.mxu0 %v3742_v11 }
 0x47e   : > { %v1586_v18 = vmax.f32 %v1549_v59, 0.0  ;;  %3744 = vmatprep.subr.bf16.mxu0 %v3913_v2  ;;  %v2110_v59 = vld [vmem:[%s5264_s16 + $0x28] sm:$0xff] }
 0x47f   : > { %v1553_v13 = vpop.f32.mrb[80].mxu0  ;;  %v3748_v16 = vpack.c.bf16 %v2110_v59, %v2109_v15 }
 0x480   : > { %v1554_v19 = vadd.f32 %v4801_v52, %v1553_v13  ;;  %v3221_v20 = vpop.f32.mrb[81].mxu0  ;;  %3343 = vmatmul.mubr.f32.gmra.mrb[108].mxu0 %v1586_v18  ;;  %v2111_v18 = vld [vmem:[%s5264_s16 + $0x30] sm:$0xff]  ;;  %v2112_v13 = vld [vmem:[%s5264_s16 + $0x38] sm:$0xff] }
 0x481   : > { %3345 = vmatprep.mubr.msk.f32.mxu0 %vm3914_vm0, %v3915_v4  ;;  %3746 = vmatpush3.bf16.msra.mxu0 %v3745_v14  ;;  %v2113_v20 = vld [vmem:[%s5264_s16 + $0x40] sm:$0xff] }
 0x482   : > { %v1587_v23 = vmax.f32 %v1554_v19, 0.0  ;;  %3747 = vmatprep.subr.bf16.mxu0 %v3913_v2  ;;  %v3751_v19 = vpack.c.bf16 %v2112_v13, %v2111_v18 }
 0x483   : > { %v1558_v24 = vpop.f32.mrb[82].mxu0 }
 0x484   : > { %v1559_v26 = vadd.f32 %v4801_v52, %v1558_v24  ;;  %v3224_v6 = vpop.f32.mrb[83].mxu0  ;;  %3346 = vmatmul.mubr.f32.gmra.mrb[110].mxu0 %v1587_v23  ;;  %v2114_v23 = vld [vmem:[%s5264_s16 + $0x48] sm:$0xff] }
 0x485   : > { %3348 = vmatprep.mubr.msk.f32.mxu0 %vm3914_vm0, %v3915_v4  ;;  %3749 = vmatpush3.bf16.msra.mxu0 %v3748_v16  ;;  %v3754_v24 = vpack.c.bf16 %v2114_v23, %v2113_v20  ;;  %v2116_v6 = vld [vmem:[%s5264_s16 + $0x58] sm:$0xff] }
 0x486   : > { %v1588_v27 = vmax.f32 %v1559_v26, 0.0  ;;  %3750 = vmatprep.subr.bf16.mxu0 %v3913_v2  ;;  %v2115_v26 = vld [vmem:[%s5264_s16 + $0x50] sm:$0xff] }
 0x487   : > { %v1563_v28 = vpop.f32.mrb[84].mxu0 }
 0x488   : > { %v1564_v30 = vadd.f32 %v4801_v52, %v1563_v28  ;;  %v3227_v41 = vpop.f32.mrb[85].mxu0  ;;  %3349 = vmatmul.mubr.f32.gmra.mrb[112].mxu0 %v1588_v27  ;;  %v3757_v27 = vpack.c.bf16 %v2116_v6, %v2115_v26  ;;  %v2117_v28 = vld [vmem:[%s5264_s16 + $0x60] sm:$0xff] }
 0x489   : > { %3351 = vmatprep.mubr.msk.f32.mxu0 %vm3914_vm0, %v3915_v4  ;;  %3752 = vmatpush3.bf16.msra.mxu0 %v3751_v19 }
 0x48a   : > { %v1589_v42 = vmax.f32 %v1564_v30, 0.0  ;;  %3753 = vmatprep.subr.bf16.mxu0 %v3913_v2  ;;  %v2118_v30 = vld [vmem:[%s5264_s16 + $0x68] sm:$0xff] }
 0x48b   : > { %v1568_v43 = vpop.f32.mrb[86].mxu0  ;;  %v3760_v41 = vpack.c.bf16 %v2118_v30, %v2117_v28 }
 0x48c   : > { %v1569_v44 = vadd.f32 %v4801_v52, %v1568_v43  ;;  %v3230_v45 = vpop.f32.mrb[87].mxu0  ;;  %3352 = vmatmul.mubr.f32.gmra.mrb[114].mxu0 %v1589_v42  ;;  %v2119_v42 = vld [vmem:[%s5264_s16 + $0x70] sm:$0xff]  ;;  %v2120_v43 = vld [vmem:[%s5264_s16 + $0x78] sm:$0xff] }
 0x48d   : > { %3354 = vmatprep.mubr.msk.f32.mxu0 %vm3914_vm0, %v3915_v4  ;;  %3755 = vmatpush3.bf16.msra.mxu0 %v3754_v24  ;;  %v4942_v45 = vld [vmem:[%s5261_s13] ss:$0 sm:$0xff] }
 0x48e   : > { %v1590_v46 = vmax.f32 %v1569_v44, 0.0  ;;  %3756 = vmatprep.subr.bf16.mxu0 %v3913_v2  ;;  %v3763_v44 = vpack.c.bf16 %v2120_v43, %v2119_v42 }
 0x48f   : > { %v1573_v47 = vpop.f32.mrb[88].mxu0 }
 0x490   : > { %v1574_v48 = vadd.f32 %v4801_v52, %v1573_v47  ;;  %v3233_v49 = vpop.f32.mrb[89].mxu0  ;;  %3355 = vmatmul.mubr.f32.gmra.mrb[116].mxu0 %v1590_v46  ;;  %v4854_v52 = vpop.f32.mrb[62].mxu1 }
 0x491   : > { %3357 = vmatprep.mubr.msk.f32.mxu0 %vm3914_vm0, %v3915_v4  ;;  %v3243_v56 = vpop.f32.mrb[63].mxu1  ;;  %3758 = vmatpush3.bf16.msra.mxu0 %v3757_v27 }
 0x492   : > { %v1591_v51 = vmax.f32 %v1574_v48, 0.0  ;;  %v4857_v57 = vpop.f32.mrb[64].mxu1  ;;  %3759 = vmatprep.subr.bf16.mxu0 %v3913_v2 }
 0x493   : > { %v3246_v58 = vpop.f32.mrb[65].mxu1 }
 0x494   : > { %3358 = vmatmul.mubr.f32.gmra.mrb[118].mxu0 %v1591_v51  ;;  %v4859_v60 = vpop.f32.mrb[66].mxu1 }
 0x495   : > { %3469 = vmatprep.mubr.msk.f32.mxu0 %vm3914_vm0, %v3915_v4  ;;  %v3249_v61 = vpop.f32.mrb[67].mxu1  ;;  %3761 = vmatpush3.bf16.msra.mxu0 %v3760_v41 }
 0x496   : > { %v4861_v62 = vpop.f32.mrb[68].mxu1  ;;  %3762 = vmatprep.subr.bf16.mxu0 %v3913_v2 }
 0x497   : > { %v3252_v63 = vpop.f32.mrb[69].mxu1 }
 0x498   : > { %v4863_v0 = vpop.f32.mrb[70].mxu1 }
 0x499   : > { %v3255_v1 = vpop.f32.mrb[71].mxu1  ;;  %3764 = vmatpush3.bf16.msra.mxu0 %v3763_v44 }
 0x49a   : > { %v4865_v3 = vpop.f32.mrb[72].mxu1  ;;  %3765 = vmatprep.subr.bf16.mxu0 %v3913_v2 }
 0x49b   : > { %v3258_v5 = vpop.f32.mrb[73].mxu1 }
 0x49c   : > { %v4867_v7 = vpop.f32.mrb[74].mxu1 }
 0x49d   : > { %v3261_v17 = vpop.f32.mrb[75].mxu1 }
 0x49e   : > { %v4869_v21 = vpop.f32.mrb[76].mxu1 }
 0x49f   : > { %v3264_v25 = vpop.f32.mrb[77].mxu1 }
 0x4a0   : > { %v4871_v29 = vpop.f32.mrb[78].mxu1 }
 0x4a1   : > { %v3267_v31 = vpop.f32.mrb[79].mxu1 }
 0x4a2   : > { %v4873_v32 = vpop.f32.mrb[80].mxu1 }
 0x4a3   : > { %v3270_v33 = vpop.f32.mrb[81].mxu1 }
 0x4a4   : > { %v4875_v34 = vpop.f32.mrb[82].mxu1 }
 0x4a5   : > { %v3273_v35 = vpop.f32.mrb[83].mxu1 }
 0x4a6   : > { %v4877_v36 = vpop.f32.mrb[84].mxu1 }
 0x4a7   : > { %v3276_v37 = vpop.f32.mrb[85].mxu1 }
 0x4a8   : > { %v4879_v38 = vpop.f32.mrb[86].mxu1 }
 0x4a9   : > { %v3279_v39 = vpop.f32.mrb[87].mxu1 }
 0x4aa   : > { %v4881_v40 = vpop.f32.mrb[88].mxu1 }
 0x4ab   : > { %v3282_v50 = vpop.f32.mrb[89].mxu1 }
 0x52f   : > { %v1817_v46 = vpop.f32.mrb[90].mxu0 }
 0x530   : > { %v1818_v47 = vadd.f32 %v1817_v46, %v4759_v22  ;;  %v3317_v48 = vpop.f32.mrb[91].mxu0 }
 0x532   : > { %v1897_v49 = vadd.f32 %v4942_v45, %v1818_v47 }
 0x533   : > { %v1822_v51 = vpop.f32.mrb[92].mxu0 }
 0x534   : > { %v1912_v53 = vmax.f32 %v1897_v49, 0.0  ;;  %v1823_v54 = vadd.f32 %v1822_v51, %v4854_v52  ;;  %v3320_v55 = vpop.f32.mrb[93].mxu0 }
 0x536   : > { %v1898_v56 = vadd.f32 %v4942_v45, %v1823_v54  ;;  %3393 = vmatmul.mubr.f32.vlgmr.msra.gmra.mrb[90].mxu1 %v1912_v53 }
 0x537   : > { %v1827_v58 = vpop.f32.mrb[94].mxu0  ;;  %3395 = vmatprep.mubr.msk.f32.mxu1 %vm3914_vm0, %v3915_v4 }
 0x538   : > { %v1913_v61 = vmax.f32 %v1898_v56, 0.0  ;;  %v1828_v63 = vadd.f32 %v1827_v58, %v4857_v57  ;;  %v3323_v1 = vpop.f32.mrb[95].mxu0 }
 0x53a   : > { %v1899_v22 = vadd.f32 %v4942_v45, %v1828_v63  ;;  %3396 = vmatmul.mubr.f32.gmra.mrb[92].mxu1 %v1913_v61 }
 0x53b   : > { %v1832_v5 = vpop.f32.mrb[96].mxu0  ;;  %3398 = vmatprep.mubr.msk.f32.mxu1 %vm3914_vm0, %v3915_v4 }
 0x53c   : > { %v1914_v52 = vmax.f32 %v1899_v22, 0.0  ;;  %v1833_v17 = vadd.f32 %v1832_v5, %v4859_v60  ;;  %v3326_v25 = vpop.f32.mrb[97].mxu0 }
 0x53d   : > { %v2286_v25 = vld [vmem:[%s5266_s18 + $0x18] sm:$0xff] }
 0x53e   : > { %v1900_v31 = vadd.f32 %v4942_v45, %v1833_v17  ;;  %3399 = vmatmul.mubr.f32.gmra.mrb[94].mxu1 %v1914_v52 }
 0x53f   : > { %v1837_v33 = vpop.f32.mrb[98].mxu0  ;;  %3401 = vmatprep.mubr.msk.f32.mxu1 %vm3914_vm0, %v3915_v4 }
 0x540   : > { %v1915_v57 = vmax.f32 %v1900_v31, 0.0  ;;  %v1838_v35 = vadd.f32 %v1837_v33, %v4861_v62  ;;  %v3329_v37 = vpop.f32.mrb[99].mxu0  ;;  %v2287_v33 = vld [vmem:[%s5266_s18 + $0x20] sm:$0xff] }
 0x541   : > { %v2289_v37 = vld [vmem:[%s5266_s18 + $0x30] sm:$0xff] }
 0x542   : > { %v1901_v39 = vadd.f32 %v4942_v45, %v1838_v35  ;;  %3402 = vmatmul.mubr.f32.gmra.mrb[96].mxu1 %v1915_v57  ;;  %v2288_v57 = vld [vmem:[%s5266_s18 + $0x28] sm:$0xff] }
 0x543   : > { %v1842_v50 = vpop.f32.mrb[100].mxu0  ;;  %3404 = vmatprep.mubr.msk.f32.mxu1 %vm3914_vm0, %v3915_v4  ;;  %v3772_v35 = vpack.c.bf16 %v2288_v57, %v2287_v33 }
 0x544   : > { %v1916_v60 = vmax.f32 %v1901_v39, 0.0  ;;  %v1843_v8 = vadd.f32 %v1842_v50, %v4863_v0  ;;  %v3332_v9 = vpop.f32.mrb[101].mxu0  ;;  %v2290_v39 = vld [vmem:[%s5266_s18 + $0x38] sm:$0xff] }
 0x545   : > { %v3775_v50 = vpack.c.bf16 %v2290_v39, %v2289_v37 }
 0x546   : > { %v1902_v10 = vadd.f32 %v4942_v45, %v1843_v8  ;;  %3405 = vmatmul.mubr.f32.gmra.mrb[98].mxu1 %v1916_v60  ;;  %v2291_v60 = vld [vmem:[%s5266_s18 + $0x40] sm:$0xff]  ;;  %v2292_v8 = vld [vmem:[%s5266_s18 + $0x48] sm:$0xff] }
 0x547   : > { %v1847_v11 = vpop.f32.mrb[102].mxu0  ;;  %3407 = vmatprep.mubr.msk.f32.mxu1 %vm3914_vm0, %v3915_v4  ;;  %v3778_v9 = vpack.c.bf16 %v2292_v8, %v2291_v60 }
 0x548   : > { %v1917_v62 = vmax.f32 %v1902_v10, 0.0  ;;  %v1848_v12 = vadd.f32 %v1847_v11, %v4865_v3  ;;  %v3335_v14 = vpop.f32.mrb[103].mxu0  ;;  %v2293_v10 = vld [vmem:[%s5266_s18 + $0x50] sm:$0xff]  ;;  %v2294_v11 = vld [vmem:[%s5266_s18 + $0x58] sm:$0xff] }
 0x549   : > { %v2296_v14 = vld [vmem:[%s5266_s18 + $0x68] sm:$0xff] }
 0x54a   : > { %v1903_v15 = vadd.f32 %v4942_v45, %v1848_v12  ;;  %3408 = vmatmul.mubr.f32.gmra.mrb[100].mxu1 %v1917_v62  ;;  %v3781_v62 = vpack.c.bf16 %v2294_v11, %v2293_v10  ;;  %v2295_v12 = vld [vmem:[%s5266_s18 + $0x60] sm:$0xff] }
 0x54b   : > { %v1852_v59 = vpop.f32.mrb[104].mxu0  ;;  %3410 = vmatprep.mubr.msk.f32.mxu1 %vm3914_vm0, %v3915_v4 }
 0x54c   : > { %v1918_v0 = vmax.f32 %v1903_v15, 0.0  ;;  %v1853_v16 = vadd.f32 %v1852_v59, %v4867_v7  ;;  %v3338_v18 = vpop.f32.mrb[105].mxu0  ;;  %v3784_v15 = vpack.c.bf16 %v2296_v14, %v2295_v12  ;;  %v5056_v59 = vld [vmem:[%s5263_s15] ss:$0 sm:$0xff]  ;;  %v2297_v14 = vld [vmem:[%s5266_s18 + $0x70] sm:$0xff] }
 0x54e   : > { %v1904_v13 = vadd.f32 %v4942_v45, %v1853_v16  ;;  %3411 = vmatmul.mubr.f32.gmra.mrb[102].mxu1 %v1918_v0 }
 0x54f   : > { %v1857_v19 = vpop.f32.mrb[106].mxu0  ;;  %3413 = vmatprep.mubr.msk.f32.mxu1 %vm3914_vm0, %v3915_v4 }
 0x550   : > { %v1919_v3 = vmax.f32 %v1904_v13, 0.0  ;;  %v1858_v20 = vadd.f32 %v1857_v19, %v4869_v21  ;;  %v3341_v23 = vpop.f32.mrb[107].mxu0 }
 0x552   : > { %v1905_v24 = vadd.f32 %v4942_v45, %v1858_v20  ;;  %3414 = vmatmul.mubr.f32.gmra.mrb[104].mxu1 %v1919_v3 }
 0x553   : > { %v1862_v26 = vpop.f32.mrb[108].mxu0  ;;  %3416 = vmatprep.mubr.msk.f32.mxu1 %vm3914_vm0, %v3915_v4 }
 0x554   : > { %v1920_v7 = vmax.f32 %v1905_v24, 0.0  ;;  %v1863_v6 = vadd.f32 %v1862_v26, %v4871_v29  ;;  %v3344_v27 = vpop.f32.mrb[109].mxu0 }
 0x556   : > { %v1906_v28 = vadd.f32 %v4942_v45, %v1863_v6  ;;  %3417 = vmatmul.mubr.f32.gmra.mrb[106].mxu1 %v1920_v7 }
 0x557   : > { %v1867_v30 = vpop.f32.mrb[110].mxu0  ;;  %3419 = vmatprep.mubr.msk.f32.mxu1 %vm3914_vm0, %v3915_v4 }
 0x558   : > { %v1921_v21 = vmax.f32 %v1906_v28, 0.0  ;;  %v1868_v41 = vadd.f32 %v1867_v30, %v4873_v32  ;;  %v3347_v42 = vpop.f32.mrb[111].mxu0 }
 0x55a   : > { %v1907_v43 = vadd.f32 %v4942_v45, %v1868_v41  ;;  %3420 = vmatmul.mubr.f32.gmra.mrb[108].mxu1 %v1921_v21 }
 0x55b   : > { %v1872_v44 = vpop.f32.mrb[112].mxu0  ;;  %3422 = vmatprep.mubr.msk.f32.mxu1 %vm3914_vm0, %v3915_v4 }
 0x55c   : > { %v1922_v29 = vmax.f32 %v1907_v43, 0.0  ;;  %v1873_v46 = vadd.f32 %v1872_v44, %v4875_v34  ;;  %v3350_v47 = vpop.f32.mrb[113].mxu0 }
 0x55e   : > { %v1908_v48 = vadd.f32 %v4942_v45, %v1873_v46  ;;  %3423 = vmatmul.mubr.f32.gmra.mrb[110].mxu1 %v1922_v29 }
 0x55f   : > { %v1877_v49 = vpop.f32.mrb[114].mxu0  ;;  %3425 = vmatprep.mubr.msk.f32.mxu1 %vm3914_vm0, %v3915_v4 }
 0x560   : > { %v1923_v32 = vmax.f32 %v1908_v48, 0.0  ;;  %v1878_v51 = vadd.f32 %v1877_v49, %v4877_v36  ;;  %v3353_v53 = vpop.f32.mrb[115].mxu0 }
 0x562   : > { %v1909_v54 = vadd.f32 %v4942_v45, %v1878_v51  ;;  %3426 = vmatmul.mubr.f32.gmra.mrb[112].mxu1 %v1923_v32 }
 0x563   : > { %v1882_v55 = vpop.f32.mrb[116].mxu0  ;;  %3428 = vmatprep.mubr.msk.f32.mxu1 %vm3914_vm0, %v3915_v4 }
 0x564   : > { %v1924_v34 = vmax.f32 %v1909_v54, 0.0  ;;  %v1883_v56 = vadd.f32 %v1882_v55, %v4879_v38  ;;  %v3356_v58 = vpop.f32.mrb[117].mxu0  ;;  %v2283_v38 = vld [vmem:[%s5266_s18] sm:$0xff] }
 0x566   : > { %v1910_v61 = vadd.f32 %v4942_v45, %v1883_v56  ;;  %3429 = vmatmul.mubr.f32.gmra.mrb[114].mxu1 %v1924_v34 }
 0x567   : > { %v1887_v63 = vpop.f32.mrb[118].mxu0  ;;  %3431 = vmatprep.mubr.msk.f32.mxu1 %vm3914_vm0, %v3915_v4 }
 0x568   : > { %v1925_v36 = vmax.f32 %v1910_v61, 0.0  ;;  %v1888_v1 = vadd.f32 %v1887_v63, %v4881_v40  ;;  %v3359_v22 = vpop.f32.mrb[119].mxu0  ;;  %v2284_v40 = vld [vmem:[%s5266_s18 + $0x8] sm:$0xff] }
 0x569   : > { %v3766_v17 = vpack.c.bf16 %v2284_v40, %v2283_v38 }
 0x56a   : > { %v1911_v5 = vadd.f32 %v4942_v45, %v1888_v1  ;;  %3432 = vmatmul.mubr.f32.gmra.mrb[116].mxu1 %v1925_v36  ;;  %v2285_v45 = vld [vmem:[%s5266_s18 + $0x10] sm:$0xff] }
 0x56b   : > { %3434 = vmatprep.mubr.msk.f32.mxu1 %vm3914_vm0, %v3915_v4  ;;  %3797 = vmatpush3.bf16.msra.mxu1 %v3766_v17  ;;  %v3769_v31 = vpack.c.bf16 %v2286_v25, %v2285_v45 }
 0x56c   : > { %v1926_v52 = vmax.f32 %v1911_v5, 0.0  ;;  %3790 = vmatprep.subr.bf16.mxu1 %v3913_v2 }
 0x56e   : > { %3435 = vmatmul.mubr.f32.gmra.mrb[118].mxu1 %v1926_v52 }
 0x56f   : > { %3555 = vmatprep.mubr.msk.f32.mxu1 %vm3914_vm0, %v3915_v4  ;;  %3798 = vmatpush3.bf16.msra.mxu1 %v3769_v31 }
 0x570   : > { %3791 = vmatprep.subr.bf16.mxu1 %v3913_v2 }
 0x573   : > { %3799 = vmatpush3.bf16.msra.mxu1 %v3772_v35 }
 0x574   : > { %3792 = vmatprep.subr.bf16.mxu1 %v3913_v2 }
 0x577   : > { %3800 = vmatpush3.bf16.msra.mxu1 %v3775_v50 }
 0x578   : > { %3793 = vmatprep.subr.bf16.mxu1 %v3913_v2 }
 0x57b   : > { %3801 = vmatpush3.bf16.msra.mxu1 %v3778_v9 }
 0x57c   : > { %3794 = vmatprep.subr.bf16.mxu1 %v3913_v2 }
 0x57f   : > { %3802 = vmatpush3.bf16.msra.mxu1 %v3781_v62 }
 0x580   : > { %3795 = vmatprep.subr.bf16.mxu1 %v3913_v2 }
 0x583   : > { %3803 = vmatpush3.bf16.msra.mxu1 %v3784_v15 }
 0x584   : > { %3796 = vmatprep.subr.bf16.mxu1 %v3913_v2 }
 0x609   : > { %v2016_v0 = vpop.f32.mrb[90].mxu1 }
 0x60a   : > { %v2017_v16 = vadd.f32 %v5056_v59, %v2016_v0  ;;  %v3394_v18 = vpop.f32.mrb[91].mxu1 }
 0x60c   : > { %v2090_v13 = vmax.f32 %v2017_v16, 0.0 }
 0x60d   : > { %v2021_v19 = vpop.f32.mrb[92].mxu1 }
 0x60e   : > { %v2022_v3 = vadd.f32 %v5056_v59, %v2021_v19  ;;  %v3397_v20 = vpop.f32.mrb[93].mxu1  ;;  %3470 = vmatmul.mubr.f32.vlgmr.msra.gmra.mrb[120].mxu0 %v2090_v13 }
 0x60f   : > { %3472 = vmatprep.mubr.msk.f32.mxu0 %vm3914_vm0, %v3915_v4  ;;  %3767 = vmatpush3.bf16.msra.mxu0 %v3766_v17 }
 0x610   : > { %v2091_v23 = vmax.f32 %v2022_v3, 0.0  ;;  %3768 = vmatprep.subr.bf16.mxu0 %v3913_v2 }
 0x611   : > { %v2026_v24 = vpop.f32.mrb[94].mxu1 }
 0x612   : > { %v2027_v26 = vadd.f32 %v5056_v59, %v2026_v24  ;;  %v3400_v7 = vpop.f32.mrb[95].mxu1  ;;  %3473 = vmatmul.mubr.f32.gmra.mrb[122].mxu0 %v2091_v23 }
 0x613   : > { %3475 = vmatprep.mubr.msk.f32.mxu0 %vm3914_vm0, %v3915_v4  ;;  %3770 = vmatpush3.bf16.msra.mxu0 %v3769_v31 }
 0x614   : > { %v2092_v6 = vmax.f32 %v2027_v26, 0.0  ;;  %3771 = vmatprep.subr.bf16.mxu0 %v3913_v2 }
 0x615   : > { %v2031_v27 = vpop.f32.mrb[96].mxu1 }
 0x616   : > { %v2032_v28 = vadd.f32 %v5056_v59, %v2031_v27  ;;  %v3403_v30 = vpop.f32.mrb[97].mxu1  ;;  %3476 = vmatmul.mubr.f32.gmra.mrb[124].mxu0 %v2092_v6 }
 0x617   : > { %3478 = vmatprep.mubr.msk.f32.mxu0 %vm3914_vm0, %v3915_v4  ;;  %3773 = vmatpush3.bf16.msra.mxu0 %v3772_v35 }
 0x618   : > { %v2093_v21 = vmax.f32 %v2032_v28, 0.0  ;;  %3774 = vmatprep.subr.bf16.mxu0 %v3913_v2 }
 0x619   : > { %v2036_v41 = vpop.f32.mrb[98].mxu1 }
 0x61a   : > { %v2037_v42 = vadd.f32 %v5056_v59, %v2036_v41  ;;  %v3406_v43 = vpop.f32.mrb[99].mxu1  ;;  %3479 = vmatmul.mubr.f32.gmra.mrb[126].mxu0 %v2093_v21 }
 0x61b   : > { %3481 = vmatprep.mubr.msk.f32.mxu0 %vm3914_vm0, %v3915_v4  ;;  %3776 = vmatpush3.bf16.msra.mxu0 %v3775_v50 }
 0x61c   : > { %v2094_v44 = vmax.f32 %v2037_v42, 0.0  ;;  %3777 = vmatprep.subr.bf16.mxu0 %v3913_v2 }
 0x61d   : > { %v2041_v29 = vpop.f32.mrb[100].mxu1 }
 0x61e   : > { %v2042_v46 = vadd.f32 %v5056_v59, %v2041_v29  ;;  %v3409_v47 = vpop.f32.mrb[101].mxu1  ;;  %3482 = vmatmul.mubr.f32.gmra.mrb[128].mxu0 %v2094_v44 }
 0x61f   : > { %3484 = vmatprep.mubr.msk.f32.mxu0 %vm3914_vm0, %v3915_v4  ;;  %3779 = vmatpush3.bf16.msra.mxu0 %v3778_v9 }
 0x620   : > { %v2095_v48 = vmax.f32 %v2042_v46, 0.0  ;;  %3780 = vmatprep.subr.bf16.mxu0 %v3913_v2 }
 0x621   : > { %v2046_v49 = vpop.f32.mrb[102].mxu1 }
 0x622   : > { %v2047_v32 = vadd.f32 %v5056_v59, %v2046_v49  ;;  %v3412_v51 = vpop.f32.mrb[103].mxu1  ;;  %3485 = vmatmul.mubr.f32.gmra.mrb[130].mxu0 %v2095_v48 }
 0x623   : > { %3487 = vmatprep.mubr.msk.f32.mxu0 %vm3914_vm0, %v3915_v4  ;;  %3782 = vmatpush3.bf16.msra.mxu0 %v3781_v62 }
 0x624   : > { %v2096_v53 = vmax.f32 %v2047_v32, 0.0  ;;  %3783 = vmatprep.subr.bf16.mxu0 %v3913_v2 }
 0x625   : > { %v2051_v54 = vpop.f32.mrb[104].mxu1 }
 0x626   : > { %v2052_v55 = vadd.f32 %v5056_v59, %v2051_v54  ;;  %v3415_v34 = vpop.f32.mrb[105].mxu1  ;;  %3488 = vmatmul.mubr.f32.gmra.mrb[132].mxu0 %v2096_v53 }
 0x627   : > { %3490 = vmatprep.mubr.msk.f32.mxu0 %vm3914_vm0, %v3915_v4  ;;  %3785 = vmatpush3.bf16.msra.mxu0 %v3784_v15  ;;  %v2298_v15 = vld [vmem:[%s5266_s18 + $0x78] sm:$0xff] }
 0x628   : > { %v2097_v56 = vmax.f32 %v2052_v55, 0.0  ;;  %3786 = vmatprep.subr.bf16.mxu0 %v3913_v2  ;;  %v3787_v0 = vpack.c.bf16 %v2298_v15, %v2297_v14  ;;  %v2586_v15 = vld [vmem:[%s5267_s19] ss:$0 sm:$0xff] }
 0x629   : > { %v2056_v58 = vpop.f32.mrb[106].mxu1 }
 0x62a   : > { %v2057_v61 = vadd.f32 %v5056_v59, %v2056_v58  ;;  %v3418_v63 = vpop.f32.mrb[107].mxu1  ;;  %3491 = vmatmul.mubr.f32.gmra.mrb[134].mxu0 %v2097_v56  ;;  %3804 = vmatpush3.bf16.msra.mxu1 %v3787_v0 }
 0x62b   : > { %3493 = vmatprep.mubr.msk.f32.mxu0 %vm3914_vm0, %v3915_v4  ;;  %3788 = vmatpush3.bf16.msra.mxu0 %v3787_v0 }
 0x62c   : > { %v2098_v36 = vmax.f32 %v2057_v61, 0.0 }
 0x62d   : > { %v2061_v1 = vpop.f32.mrb[108].mxu1 }
 0x62e   : > { %v2062_v22 = vadd.f32 %v5056_v59, %v2061_v1  ;;  %v3421_v5 = vpop.f32.mrb[109].mxu1  ;;  %3494 = vmatmul.mubr.f32.gmra.mrb[136].mxu0 %v2098_v36 }
 0x62f   : > { %3496 = vmatprep.mubr.msk.f32.mxu0 %vm3914_vm0, %v3915_v4 }
 0x630   : > { %v2099_v52 = vmax.f32 %v2062_v22, 0.0 }
 0x631   : > { %v2066_v38 = vpop.f32.mrb[110].mxu1 }
 0x632   : > { %v2067_v2 = vadd.f32 %v5056_v59, %v2066_v38  ;;  %v3424_v40 = vpop.f32.mrb[111].mxu1  ;;  %3497 = vmatmul.mubr.f32.gmra.mrb[138].mxu0 %v2099_v52 }
 0x633   : > { %3499 = vmatprep.mubr.msk.f32.mxu0 %vm3914_vm0, %v3915_v4 }
 0x634   : > { %v2100_v17 = vmax.f32 %v2067_v2, 0.0 }
 0x635   : > { %v2071_v45 = vpop.f32.mrb[112].mxu1 }
 0x636   : > { %v2072_v25 = vadd.f32 %v5056_v59, %v2071_v45  ;;  %v3427_v31 = vpop.f32.mrb[113].mxu1  ;;  %3500 = vmatmul.mubr.f32.gmra.mrb[140].mxu0 %v2100_v17 }
 0x637   : > { %3502 = vmatprep.mubr.msk.f32.mxu0 %vm3914_vm0, %v3915_v4 }
 0x638   : > { %v2101_v33 = vmax.f32 %v2072_v25, 0.0 }
 0x639   : > { %v2076_v57 = vpop.f32.mrb[114].mxu1 }
 0x63a   : > { %v2077_v35 = vadd.f32 %v5056_v59, %v2076_v57  ;;  %v3430_v37 = vpop.f32.mrb[115].mxu1  ;;  %3503 = vmatmul.mubr.f32.gmra.mrb[142].mxu0 %v2101_v33 }
 0x63b   : > { %3505 = vmatprep.mubr.msk.f32.mxu0 %vm3914_vm0, %v3915_v4 }
 0x63c   : > { %v2102_v39 = vmax.f32 %v2077_v35, 0.0 }
 0x63d   : > { %v2081_v50 = vpop.f32.mrb[116].mxu1 }
 0x63e   : > { %v2082_v60 = vadd.f32 %v5056_v59, %v2081_v50  ;;  %v3433_v8 = vpop.f32.mrb[117].mxu1  ;;  %3506 = vmatmul.mubr.f32.gmra.mrb[144].mxu0 %v2102_v39 }
 0x63f   : > { %3508 = vmatprep.mubr.msk.f32.mxu0 %vm3914_vm0, %v3915_v4 }
 0x640   : > { %v2103_v9 = vmax.f32 %v2082_v60, 0.0 }
 0x641   : > { %v2086_v10 = vpop.f32.mrb[118].mxu1 }
 0x642   : > { %v2087_v11 = vadd.f32 %v5056_v59, %v2086_v10  ;;  %v3436_v62 = vpop.f32.mrb[119].mxu1  ;;  %3509 = vmatmul.mubr.f32.gmra.mrb[146].mxu0 %v2103_v9  ;;  %v5119_v59 = vld [vmem:[%s5265_s17] ss:$0 sm:$0xff] }
 0x643   : > { %3511 = vmatprep.mubr.msk.f32.mxu0 %vm3914_vm0, %v3915_v4 }
 0x644   : > { %v2104_v12 = vmax.f32 %v2087_v11, 0.0 }
 0x646   : > { %3512 = vmatmul.mubr.f32.gmra.mrb[148].mxu0 %v2104_v12 }
 0x647   : > { %3546 = vmatprep.mubr.msk.f32.mxu0 %vm3914_vm0, %v3915_v4 }
 0x6e1   : > { %v2194_v16 = vpop.f32.mrb[120].mxu0 }
 0x6e2   : > { %v2195_v18 = vadd.f32 %v5119_v59, %v2194_v16  ;;  %v3471_v13 = vpop.f32.mrb[121].mxu0 }
 0x6e4   : > { %v2268_v19 = vmax.f32 %v2195_v18, 0.0 }
 0x6e5   : > { %v2199_v3 = vpop.f32.mrb[122].mxu0 }
 0x6e6   : > { %v2200_v20 = vadd.f32 %v5119_v59, %v2199_v3  ;;  %v3474_v23 = vpop.f32.mrb[123].mxu0  ;;  %3547 = vmatmul.mubr.f32.vlgmr.msra.gmra.mrb[150].mxu0 %v2268_v19 }
 0x6e7   : > { %3549 = vmatprep.mubr.msk.f32.mxu0 %vm3914_vm0, %v3915_v4 }
 0x6e8   : > { %v2269_v24 = vmax.f32 %v2200_v20, 0.0 }
 0x6e9   : > { %v2204_v26 = vpop.f32.mrb[124].mxu0 }
 0x6ea   : > { %v2205_v7 = vadd.f32 %v5119_v59, %v2204_v26  ;;  %v3477_v6 = vpop.f32.mrb[125].mxu0  ;;  %3550 = vmatmul.mubr.f32.gmra.mrb[152].mxu0 %v2269_v24 }
 0x6eb   : > { %3552 = vmatprep.mubr.msk.f32.mxu0 %vm3914_vm0, %v3915_v4 }
 0x6ec   : > { %v2270_v27 = vmax.f32 %v2205_v7, 0.0 }
 0x6ed   : > { %v2209_v28 = vpop.f32.mrb[126].mxu0 }
 0x6ee   : > { %v2210_v30 = vadd.f32 %v5119_v59, %v2209_v28  ;;  %v3480_v21 = vpop.f32.mrb[127].mxu0  ;;  %3553 = vmatmul.mubr.f32.gmra.mrb[154].mxu0 %v2270_v27 }
 0x6f0   : > { %v2271_v41 = vmax.f32 %v2210_v30, 0.0 }
 0x6f1   : > { %v2214_v42 = vpop.f32.mrb[128].mxu0 }
 0x6f2   : > { %v2215_v43 = vadd.f32 %v5119_v59, %v2214_v42  ;;  %v3483_v44 = vpop.f32.mrb[129].mxu0  ;;  %3556 = vmatmul.mubr.f32.vlgmr.msra.gmra.mrb[120].mxu1 %v2271_v41 }
 0x6f3   : > { %3558 = vmatprep.mubr.msk.f32.mxu1 %vm3914_vm0, %v3915_v4 }
 0x6f4   : > { %v2272_v29 = vmax.f32 %v2215_v43, 0.0 }
 0x6f5   : > { %v2219_v46 = vpop.f32.mrb[130].mxu0 }
 0x6f6   : > { %v2220_v47 = vadd.f32 %v5119_v59, %v2219_v46  ;;  %v3486_v48 = vpop.f32.mrb[131].mxu0  ;;  %3559 = vmatmul.mubr.f32.gmra.mrb[122].mxu1 %v2272_v29 }
 0x6f7   : > { %3561 = vmatprep.mubr.msk.f32.mxu1 %vm3914_vm0, %v3915_v4 }
 0x6f8   : > { %v2273_v49 = vmax.f32 %v2220_v47, 0.0 }
 0x6f9   : > { %v2224_v32 = vpop.f32.mrb[132].mxu0 }
 0x6fa   : > { %v2225_v51 = vadd.f32 %v5119_v59, %v2224_v32  ;;  %v3489_v53 = vpop.f32.mrb[133].mxu0  ;;  %3562 = vmatmul.mubr.f32.gmra.mrb[124].mxu1 %v2273_v49 }
 0x6fb   : > { %3564 = vmatprep.mubr.msk.f32.mxu1 %vm3914_vm0, %v3915_v4 }
 0x6fc   : > { %v2274_v54 = vmax.f32 %v2225_v51, 0.0 }
 0x6fd   : > { %v2229_v55 = vpop.f32.mrb[134].mxu0 }
 0x6fe   : > { %v2230_v34 = vadd.f32 %v5119_v59, %v2229_v55  ;;  %v3492_v56 = vpop.f32.mrb[135].mxu0  ;;  %3565 = vmatmul.mubr.f32.gmra.mrb[126].mxu1 %v2274_v54 }
 0x6ff   : > { %3567 = vmatprep.mubr.msk.f32.mxu1 %vm3914_vm0, %v3915_v4 }
 0x700   : > { %v2275_v58 = vmax.f32 %v2230_v34, 0.0 }
 0x701   : > { %v2234_v61 = vpop.f32.mrb[136].mxu0 }
 0x702   : > { %v2235_v63 = vadd.f32 %v5119_v59, %v2234_v61  ;;  %v3495_v36 = vpop.f32.mrb[137].mxu0  ;;  %3568 = vmatmul.mubr.f32.gmra.mrb[128].mxu1 %v2275_v58 }
 0x703   : > { %3570 = vmatprep.mubr.msk.f32.mxu1 %vm3914_vm0, %v3915_v4 }
 0x704   : > { %v2276_v1 = vmax.f32 %v2235_v63, 0.0 }
 0x705   : > { %v2239_v22 = vpop.f32.mrb[138].mxu0 }
 0x706   : > { %v2240_v5 = vadd.f32 %v5119_v59, %v2239_v22  ;;  %v3498_v52 = vpop.f32.mrb[139].mxu0  ;;  %3571 = vmatmul.mubr.f32.gmra.mrb[130].mxu1 %v2276_v1 }
 0x707   : > { %3573 = vmatprep.mubr.msk.f32.mxu1 %vm3914_vm0, %v3915_v4 }
 0x708   : > { %v2277_v38 = vmax.f32 %v2240_v5, 0.0 }
 0x709   : > { %v2244_v2 = vpop.f32.mrb[140].mxu0 }
 0x70a   : > { %v2245_v40 = vadd.f32 %v5119_v59, %v2244_v2  ;;  %v3501_v17 = vpop.f32.mrb[141].mxu0  ;;  %3574 = vmatmul.mubr.f32.gmra.mrb[132].mxu1 %v2277_v38 }
 0x70b   : > { %3576 = vmatprep.mubr.msk.f32.mxu1 %vm3914_vm0, %v3915_v4 }
 0x70c   : > { %v2278_v45 = vmax.f32 %v2245_v40, 0.0 }
 0x70d   : > { %v2249_v25 = vpop.f32.mrb[142].mxu0 }
 0x70e   : > { %v2250_v31 = vadd.f32 %v5119_v59, %v2249_v25  ;;  %v3504_v33 = vpop.f32.mrb[143].mxu0  ;;  %3577 = vmatmul.mubr.f32.gmra.mrb[134].mxu1 %v2278_v45 }
 0x70f   : > { %3579 = vmatprep.mubr.msk.f32.mxu1 %vm3914_vm0, %v3915_v4 }
 0x710   : > { %v2279_v57 = vmax.f32 %v2250_v31, 0.0 }
 0x711   : > { %v2254_v35 = vpop.f32.mrb[144].mxu0 }
 0x712   : > { %v2255_v37 = vadd.f32 %v5119_v59, %v2254_v35  ;;  %v3507_v39 = vpop.f32.mrb[145].mxu0  ;;  %3580 = vmatmul.mubr.f32.gmra.mrb[136].mxu1 %v2279_v57 }
 0x713   : > { %3582 = vmatprep.mubr.msk.f32.mxu1 %vm3914_vm0, %v3915_v4 }
 0x714   : > { %v2280_v50 = vmax.f32 %v2255_v37, 0.0 }
 0x715   : > { %v2259_v60 = vpop.f32.mrb[146].mxu0 }
 0x716   : > { %v2260_v8 = vadd.f32 %v5119_v59, %v2259_v60  ;;  %v3510_v9 = vpop.f32.mrb[147].mxu0  ;;  %3583 = vmatmul.mubr.f32.gmra.mrb[138].mxu1 %v2280_v50 }
 0x717   : > { %3585 = vmatprep.mubr.msk.f32.mxu1 %vm3914_vm0, %v3915_v4 }
 0x718   : > { %v2281_v10 = vmax.f32 %v2260_v8, 0.0 }
 0x719   : > { %v2264_v11 = vpop.f32.mrb[148].mxu0 }
 0x71a   : > { %v2265_v62 = vadd.f32 %v5119_v59, %v2264_v11  ;;  %v3513_v12 = vpop.f32.mrb[149].mxu0  ;;  %3586 = vmatmul.mubr.f32.gmra.mrb[140].mxu1 %v2281_v10 }
 0x71b   : > { %3588 = vmatprep.mubr.msk.f32.mxu1 %vm3914_vm0, %v3915_v4 }
 0x71c   : > { %v2282_v14 = vmax.f32 %v2265_v62, 0.0 }
 0x71e   : > { %3589 = vmatmul.mubr.f32.gmra.mrb[142].mxu1 %v2282_v14 }
 0x7b9   : > { %v2372_v0 = vpop.f32.mrb[150].mxu0 }
 0x7ba   : > { %v2373_v16 = vadd.f32 %v2586_v15, %v2372_v0  ;;  %v3548_v18 = vpop.f32.mrb[151].mxu0 }
 0x7bc   : > { %2446 = vst [vmem:[%s5168_s24] sm:$0xff] %v2373_v16 }
 0x7bd   : > { %v2377_v4 = vpop.f32.mrb[152].mxu0 }
 0x7be   : > { %v2378_v59 = vadd.f32 %v2586_v15, %v2377_v4  ;;  %v3551_v13 = vpop.f32.mrb[153].mxu0 }
 0x7c0   : > { %2447 = vst [vmem:[%s5168_s24 + $0x8] sm:$0xff] %v2378_v59 }
 0x7c1   : > { %v2382_v19 = vpop.f32.mrb[154].mxu0 }
 0x7c2   : > { %v2383_v3 = vadd.f32 %v2586_v15, %v2382_v19  ;;  %v3554_v20 = vpop.f32.mrb[155].mxu0 }
 0x7c4   : > { %2448 = vst [vmem:[%s5168_s24 + $0x10] sm:$0xff] %v2383_v3 }
 0x7c5   : > { %v2387_v23 = vpop.f32.mrb[120].mxu1 }
 0x7c6   : > { %v2388_v24 = vadd.f32 %v2586_v15, %v2387_v23  ;;  %v3557_v26 = vpop.f32.mrb[121].mxu1 }
 0x7c8   : > { %2449 = vst [vmem:[%s5168_s24 + $0x18] sm:$0xff] %v2388_v24 }
 0x7c9   : > { %v2392_v7 = vpop.f32.mrb[122].mxu1 }
 0x7ca   : > { %v2393_v6 = vadd.f32 %v2586_v15, %v2392_v7  ;;  %v3560_v27 = vpop.f32.mrb[123].mxu1 }
 0x7cc   : > { %2450 = vst [vmem:[%s5168_s24 + $0x20] sm:$0xff] %v2393_v6 }
 0x7cd   : > { %v2397_v28 = vpop.f32.mrb[124].mxu1 }
 0x7ce   : > { %v2398_v30 = vadd.f32 %v2586_v15, %v2397_v28  ;;  %v3563_v21 = vpop.f32.mrb[125].mxu1 }
 0x7d0   : > { %2451 = vst [vmem:[%s5168_s24 + $0x28] sm:$0xff] %v2398_v30 }
 0x7d1   : > { %v2402_v41 = vpop.f32.mrb[126].mxu1 }
 0x7d2   : > { %v2403_v42 = vadd.f32 %v2586_v15, %v2402_v41  ;;  %v3566_v43 = vpop.f32.mrb[127].mxu1 }
 0x7d4   : > { %2452 = vst [vmem:[%s5168_s24 + $0x30] sm:$0xff] %v2403_v42 }
 0x7d5   : > { %v2407_v44 = vpop.f32.mrb[128].mxu1 }
 0x7d6   : > { %v2408_v29 = vadd.f32 %v2586_v15, %v2407_v44  ;;  %v3569_v46 = vpop.f32.mrb[129].mxu1 }
 0x7d8   : > { %2453 = vst [vmem:[%s5168_s24 + $0x38] sm:$0xff] %v2408_v29 }
 0x7d9   : > { %v2412_v47 = vpop.f32.mrb[130].mxu1 }
 0x7da   : > { %v2413_v48 = vadd.f32 %v2586_v15, %v2412_v47  ;;  %v3572_v49 = vpop.f32.mrb[131].mxu1 }
 0x7dc   : > { %2454 = vst [vmem:[%s5168_s24 + $0x40] sm:$0xff] %v2413_v48 }
 0x7dd   : > { %v2417_v32 = vpop.f32.mrb[132].mxu1 }
 0x7de   : > { %v2418_v51 = vadd.f32 %v2586_v15, %v2417_v32  ;;  %v3575_v53 = vpop.f32.mrb[133].mxu1 }
 0x7e0   : > { %2455 = vst [vmem:[%s5168_s24 + $0x48] sm:$0xff] %v2418_v51 }
 0x7e1   : > { %v2422_v54 = vpop.f32.mrb[134].mxu1 }
 0x7e2   : > { %v2423_v55 = vadd.f32 %v2586_v15, %v2422_v54  ;;  %v3578_v34 = vpop.f32.mrb[135].mxu1 }
 0x7e4   : > { %2456 = vst [vmem:[%s5168_s24 + $0x50] sm:$0xff] %v2423_v55 }
 0x7e5   : > { %v2427_v56 = vpop.f32.mrb[136].mxu1 }
 0x7e6   : > { %v2428_v58 = vadd.f32 %v2586_v15, %v2427_v56  ;;  %v3581_v61 = vpop.f32.mrb[137].mxu1 }
 0x7e8   : > { %2457 = vst [vmem:[%s5168_s24 + $0x58] sm:$0xff] %v2428_v58 }
 0x7e9   : > { %v2432_v63 = vpop.f32.mrb[138].mxu1 }
 0x7ea   : > { %v2433_v36 = vadd.f32 %v2586_v15, %v2432_v63  ;;  %v3584_v1 = vpop.f32.mrb[139].mxu1 }
 0x7ec   : > { %2458 = vst [vmem:[%s5168_s24 + $0x60] sm:$0xff] %v2433_v36 }
 0x7ed   : > { %v2437_v22 = vpop.f32.mrb[140].mxu1 }
 0x7ee   : > { %v2438_v5 = vadd.f32 %v2586_v15, %v2437_v22  ;;  %v3587_v52 = vpop.f32.mrb[141].mxu1  ;;  %2468 = sbr.rel (!%p4062_p5) target bundleno = 2065 (0x811), region = 104 }
 0x7f0   : > { %2459 = vst [vmem:[%s5168_s24 + $0x68] sm:$0xff] %v2438_v5 }
 0x7f1   : > { %v2442_v38 = vpop.f32.mrb[142].mxu1 }
 0x7f2   : > { %v2443_v2 = vadd.f32 %v2586_v15, %v2442_v38  ;;  %v3590_v40 = vpop.f32.mrb[143].mxu1 }
 0x7f4   : > { %2460 = vst [vmem:[%s5168_s24 + $0x70] sm:$0xff] %v2443_v2 }
 0x7f5   : > { %s5305_s0 = smov (!%p2471_p11, %s2470_s0), 15 }
 0x7f6   : > { %s5192_s1 = sshll.u32 %s5305_s0, 7 }
 0x7f7   : > { %s2475_s25 = ssub.s32 1920, %s5192_s1 }
 0x7f8   : > { %2476 = vsyncadd %s5187_s21, %s2475_s25  ;;  %p2588_p12 = scmp.ne.s32.totalorder %s5192_s1, 0  ;;  %s2594_s3 = smul.u32 1920, %s4045_s2 }
 0x7f9   : > { %s2481_s29 = sshll.u32 %s5168_s24, 4  ;;  %s3916_s30 = smov [#allocation2]   ;;  %s5204_s29 = int_to_ptr.vmem [resolvable:$true] %s2481_s29 }
 0x7fa   : > { %s5202_s23 = scalar_lea.hbm %s5268_s20, %s2594_s3  ;;  %s3849_s27 = scalar_lea.vmem %s5204_s29, %s5192_s1 }
 0x7fb   : > { %p3850_p13 = scmp.ne.s32.totalorder %s5204_s29, %s3849_s27  ;;  %s3853_s0 = sshll.u32 %s3916_s30, 4  ;;  %s3854_s0 = int_to_ptr.vmem [resolvable:$false] %s3853_s0 }
 0x7fc   : > { %s3855_s2 = scalar_lea.vmem %s3854_s0, 3840  ;;  %p3856_p2 = scmp.lt.s32.totalorder %s5204_s29, %s3854_s0 }
 0x7fd   : > { %p3851_p0 = pnand %p3850_p13, %p2588_p12  ;;  %p3857_p3 = scmp.lt.s32.totalorder %s3855_s2, %s3849_s27 }
 0x7ff   : > { %p3852_p1 = pneg %p3851_p0  ;;  %p3858_p4 = por %p3857_p3, %p3856_p2 }
 0x801   : > { %p3859_p5 = pnand %p3858_p4, %p3852_p1 }
 0x803   : > { %3862 = shalt.err (!%p3859_p5)
}
 0x804   : > { %s3863_s24 = scalar_lea.hbm %s5202_s23, %s5192_s1  ;;  %s3867_s4 = scalar_lea.hbm %s5268_s20, 16000 }
 0x805   : > { %p3864_p7 = scmp.ne.s32.totalorder %s5202_s23, %s3863_s24  ;;  %p3868_p10 = scmp.lt.u32.totalorder %s5202_s23, %s5268_s20 }
 0x806   : > { %p3869_p11 = scmp.lt.u32.totalorder %s3867_s4, %s3863_s24  ;;  %p3871_p0 = scmp.lt.u32.totalorder %s3863_s24, %s5202_s23 }
 0x807   : > { %p3865_p8 = pnand %p3864_p7, %p2588_p12 }
 0x808   : > { %p3870_p13 = por %p3869_p11, %p3868_p10 }
 0x809   : > { %p3866_p9 = pneg %p3865_p8 }
 0x80a   : > { %p3872_p1 = por %p3871_p0, %p3870_p13 }
 0x80c   : > { %p3873_p2 = pnand %p3872_p1, %p3866_p9 }
 0x80e   : > { %3876 = shalt.err (!%p3873_p2)
}
 0x80f   : > { %s3917_s30 = smov 128   ;;  %s3918_s0 = smov 8  }
 0x810   : > { %2487 = dma.vmem_to_hbm [thread:$0]  (%p2588_p12), %s5204_s29, %s5192_s1, %s5202_s23, %s5187_s21, %s3917_s30, %s3917_s30, %s3918_s0  }
 0x811 PF: > { %s5296_s2 = sld [smem:[#allocation7_spill]]  ;;  %s5297_s25 = sld [smem:[#allocation5_spill]] }
 0x817   : > { %p3811_p3 = scmp.ge.s32.totalorder %s5296_s2, 2  ;;  %s2496_s4 = sand.u32 1, %s5297_s25  }
 0x818   : > { %s2497_s24 = scalar_lea.sflag [#allocation3], %s2496_s4 }
 0x819   : > { %p3808_p4 = pnand %p3811_p3, %p4066_p6 }
 0x81b   : > { %3894 = dma.done.wait (!%p3808_p4), %s2497_s24, 1920  }
 0x81c   : > { %3896 = vsyncadd (!%p3808_p4), %s2497_s24, 4294965376  ;;  %s5299_s24 = sld [smem:[#allocation8_spill]]  ;;  %s5300_s26 = sld [smem:[#allocation6_spill]] }
 0x81d   : > { %s5301_s23 = sld [smem:[#allocation9_spill]]  ;;  %s5302_s1 = smov %s3903_s22 }
 0x822   : > { %p30_p5 = scmp.ge.s32.totalorder %s5299_s24, 11   ;;  %s5303_s22 = smov %s5300_s26 }
 0x824   :  { %32 = sbr.rel (!%p30_p5) target bundleno = 9 (0x9), region = 135 }
 0x82b   :  { %2502 = vsyncpa [#allocation3], 1 }
 0x82c   :  { %2504 = vsyncpa [#allocation3 + $0x1], 1 }

</bundles_post_ra>
